<compile_context>
chip_gen: v5e
topology: v5e:2x2
jax: 0.10.0
libtpu: 0.0.40
codegen_flags: <defaults>
</compile_context>

<pallas_src>
import functools

import jax
import jax.numpy as jnp
from jax import lax
from jax.experimental import pallas as pl
from jax.experimental.pallas import tpu as pltpu

EPS = 1e-5
LANE = 128


def _round_up(x, m):
    return (x + m - 1) // m * m


def _vmem_limit_bytes():
    cap = 64 * 1024 * 1024
    try:
        info = pltpu.get_tpu_info()
        cap = int(getattr(info, "vmem_capacity_bytes", cap))
    except Exception:
        pass
    # leave headroom below physical capacity (v7x is 64 MiB, v5e/v6e 128 MiB)
    return int(min(cap * 3 // 4, 96 * 1024 * 1024))


def _pick_batch_tile(n, per_sample_bytes, shared_bytes, budget):
    """Largest divisor of n that fits the VMEM budget and leaves >=2 grid steps."""
    best = 1
    for b in range(1, n + 1):
        if n % b:
            continue
        if n >= 2 and n // b < 2:       # keep both v7x TensorCores busy
            continue
        if b * per_sample_bytes * 2 + shared_bytes * 2 <= budget:
            best = b
    return best


def _pick_row_tile(m, row_bytes, budget, cap=4096):
    tm = min(cap, max(8, budget // max(row_bytes, 1)))
    if m > 8:
        tm = min(tm, _round_up(-(-m // 2), 8))   # >= 2 grid steps (v7x)
    return max(8, tm // 8 * 8)


def _compiler_params(vmem_limit):
    return pltpu.CompilerParams(
        dimension_semantics=("parallel",),
        vmem_limit_bytes=int(vmem_limit),
    )


# ---------------------------------------------------------------------------
# Pallas kernels
# ---------------------------------------------------------------------------
def _conv_stats_kernel(x_ref, w_ref, y_ref, stats_ref, *, stride):
    """3x3 conv as 9 accumulated matmuls + per-tile BN partial stats.

    x_ref:    (bt, s*s, Hpp, Wpp, Cin_p)  phase-decomposed, spatially padded, bf16
    w_ref:    (9, Cin_p, Cout_p)          per-tap weight matrices, bf16
    y_ref:    (bt, Ho, Wo, Cout_p)        raw conv output, bf16
    stats_ref:(1, 2, Cout_p)              row0 = sum(Y), row1 = sum(Y*Y), f32
    """
    bt, ho, wo, cout = y_ref.shape
    cin = x_ref.shape[-1]
    rows = bt * ho * wo
    acc = jnp.zeros((rows, cout), jnp.float32)
    for t in range(9):                      # unrolled 9-tap accumulation
        kh, kw = t // 3, t % 3
        ph = (kh % stride) * stride + (kw % stride)
        a = x_ref[:, ph:ph + 1,
                  pl.ds(kh // stride, ho),
                  pl.ds(kw // stride, wo), :]
        acc = acc + jnp.dot(a.reshape(rows, cin), w_ref[t],
                            preferred_element_type=jnp.float32)
    y_ref[...] = acc.reshape(bt, ho, wo, cout).astype(y_ref.dtype)
    # TODO(synk): E[Y^2]-E[Y]^2 variance can cancel for large means; switch to
    # a shifted/two-pass variance if tolerances tighten.
    stats_ref[...] = jnp.concatenate(
        [jnp.sum(acc, axis=0, keepdims=True),
         jnp.sum(acc * acc, axis=0, keepdims=True)], axis=0)[None]


def _bn_relu_kernel(y_ref, scale_ref, bias_ref, o_ref):
    y = y_ref[...].astype(jnp.float32)
    o_ref[...] = jnp.maximum(y * scale_ref[...] + bias_ref[...], 0.0
                             ).astype(o_ref.dtype)


def _bn_add_relu_kernel(y_ref, scale_ref, bias_ref, res_ref, o_ref):
    y = y_ref[...].astype(jnp.float32) * scale_ref[...] + bias_ref[...]
    y = y + res_ref[...].astype(jnp.float32)
    o_ref[...] = jnp.maximum(y, 0.0).astype(o_ref.dtype)


# ---------------------------------------------------------------------------
# Fused conv (9-tap, in-kernel) + training-mode BN + optional residual + ReLU
# ---------------------------------------------------------------------------
def fused_conv_bn_act(x_phased, w_taps, gamma_p, beta_p, stride, ho, wo, *,
                      res2d=None, out_dtype=jnp.float32):
    """x_phased: (N, s*s, Hpp, Wpp, Cin_p) bf16; w_taps: (9, Cin_p, Cout_p) bf16.

    Returns (N*Ho*Wo, Cout_p) out_dtype = relu( BN_train(conv(x)) [+ res] ).
    Batch statistics are taken over all N*Ho*Wo output rows.
    """
    n = x_phased.shape[0]
    ss, hpp, wpp, cin = x_phased.shape[1:]
    cout = w_taps.shape[-1]

    vmem_limit = _vmem_limit_bytes()
    budget = vmem_limit // 4

    # ---- pass 1: conv + Y(bf16) + per-tile partial stats --------------------
    per_sample = (ss * hpp * wpp * cin * 2        # x tile (bf16)
                  + ho * wo * cout * 2            # y tile (bf16)
                  + ho * wo * cout * 4            # f32 accumulator
                  + 2 * ho * wo * cin * 2)        # tap-slice temporaries
    shared = 9 * cin * cout * 2                   # weights (grid-invariant)
    bt = _pick_batch_tile(n, per_sample, shared, budget)
    t_grid = n // bt

    y4d, stats = pl.pallas_call(
        functools.partial(_conv_stats_kernel, stride=stride),
        out_shape=(jax.ShapeDtypeStruct((n, ho, wo, cout), jnp.bfloat16),
                   jax.ShapeDtypeStruct((t_grid, 2, cout), jnp.float32)),
        grid=(t_grid,),
        in_specs=[
            pl.BlockSpec((bt, ss, hpp, wpp, cin), lambda i: (i, 0, 0, 0, 0)),
            pl.BlockSpec((9, cin, cout), lambda i: (0, 0, 0)),
        ],
        out_specs=[
            pl.BlockSpec((bt, ho, wo, cout), lambda i: (i, 0, 0, 0)),
            pl.BlockSpec((1, 2, cout), lambda i: (i, 0, 0)),
        ],
        compiler_params=_compiler_params(vmem_limit),
    )(x_phased, w_taps)

    # ---- tiny batch-global reduction in JAX ---------------------------------
    m = n * ho * wo
    col_sum = jnp.sum(stats[:, 0, :], axis=0)
    col_sq = jnp.sum(stats[:, 1, :], axis=0)
    mean = col_sum / float(m)
    var = jnp.maximum(col_sq / float(m) - mean * mean, 0.0)
    inv_std = lax.rsqrt(var + EPS)
    # NOTE: padded channels have gamma=beta=0 => scale=bias=0 => output 0.
    scale = (gamma_p * inv_std).reshape(1, cout).astype(jnp.float32)
    bias = (beta_p - mean * gamma_p * inv_std).reshape(1, cout).astype(jnp.float32)

    # ---- pass 2: elementwise only (no matmul recompute) ---------------------
    out_bytes = jnp.dtype(out_dtype).itemsize
    row_bytes = cout * (2 + out_bytes + (2 if res2d is not None else 0)) * 2
    tm = _pick_row_tile(m, row_bytes, budget)
    mp = _round_up(m, tm)

    y2p = jnp.pad(y4d.reshape(m, cout), ((0, mp - m), (0, 0)))
    in_specs = [pl.BlockSpec((tm, cout), lambda i: (i, 0)),
                pl.BlockSpec((1, cout), lambda i: (0, 0)),
                pl.BlockSpec((1, cout), lambda i: (0, 0))]
    args = [y2p, scale, bias]
    if res2d is None:
        kern2 = _bn_relu_kernel
    else:
        kern2 = _bn_add_relu_kernel
        in_specs.append(pl.BlockSpec((tm, cout), lambda i: (i, 0)))
        args.append(jnp.pad(res2d, ((0, mp - m), (0, 0))))

    out = pl.pallas_call(
        kern2,
        out_shape=jax.ShapeDtypeStruct((mp, cout), out_dtype),
        grid=(mp // tm,),
        in_specs=in_specs,
        out_specs=pl.BlockSpec((tm, cout), lambda i: (i, 0)),
        compiler_params=_compiler_params(vmem_limit),
    )(*args)
    return out[:m]


# ---------------------------------------------------------------------------
# JAX glue: spatial pad + phase decomposition, weight layout, shortcut
# ---------------------------------------------------------------------------
def _phase_input(x_nhwc, stride, cp_in):
    """Zero-pad spatially by 1, pad channels to cp_in, split into stride^2
    phases so every conv tap is a contiguous slice. No 9x blow-up: total size
    equals the (padded) input."""
    n, h, w, c = x_nhwc.shape
    ho = (h + 2 - 3) // stride + 1
    wo = (w + 2 - 3) // stride + 1
    xp = jnp.pad(x_nhwc, ((0, 0), (1, 1), (1, 1), (0, cp_in - c)))
    hp, wp = h + 2, w + 2
    hpp = -(-hp // stride)
    wpp = -(-wp // stride)
    xp = jnp.pad(xp, ((0, 0), (0, hpp * stride - hp),
                      (0, wpp * stride - wp), (0, 0)))
    xp = xp.reshape(n, hpp, stride, wpp, stride, cp_in)
    xp = jnp.transpose(xp, (0, 2, 4, 1, 3, 5))          # (N, s, s, Hpp, Wpp, C)
    xp = xp.reshape(n, stride * stride, hpp, wpp, cp_in)
    return xp.astype(jnp.bfloat16), (ho, wo)


def _weight_taps(w_oihw, cp_in, cp_out):
    """PyTorch (Cout, Cin, 3, 3) -> (9, Cin_p, Cout_p) bf16 per-tap matrices."""
    cout, cin = w_oihw.shape[:2]
    w = jnp.transpose(w_oihw, (2, 3, 1, 0)).reshape(9, cin, cout)
    w = jnp.pad(w, ((0, 0), (0, cp_in - cin), (0, cp_out - cout)))
    return w.astype(jnp.bfloat16)


# ---------------------------------------------------------------------------
# BasicBlock forward
# ---------------------------------------------------------------------------
def basic_block_forward(x_nchw, params, *, in_planes, planes, stride, option="A"):
    x = jnp.transpose(x_nchw, (0, 2, 3, 1)).astype(jnp.float32)     # NHWC
    n = x.shape[0]
    cp = _round_up(planes, LANE)
    cin1 = _round_up(in_planes, LANE)

    # ---- conv1 + bn1 + relu (no residual) -----------------------------------
    xph1, (ho, wo) = _phase_input(x, stride, cin1)
    w1 = _weight_taps(params["conv1_w"], cin1, cp)
    g1 = jnp.pad(params["bn1_gamma"], (0, cp - planes)).astype(jnp.float32)
    b1 = jnp.pad(params["bn1_beta"], (0, cp - planes)).astype(jnp.float32)
    out1_2d = fused_conv_bn_act(xph1, w1, g1, b1, stride, ho, wo,
                                res2d=None, out_dtype=jnp.bfloat16)
    m = n * ho * wo

    # ---- shortcut (option A) -------------------------------------------------
    if stride != 1 or in_planes != planes:
        if option == "A":
            sc = x_nchw[:, :, ::2, ::2]
            pad_c = planes // 4
            sc = jnp.pad(sc, ((0, 0), (pad_c, pad_c), (0, 0), (0, 0)))
            sc = jnp.transpose(sc, (0, 2, 3, 1))
        else:
            # TODO(synk): option 'B' (1x1 conv + BN shortcut) not wired up.
            raise NotImplementedError("only option 'A' shortcut implemented")
    else:
        sc = x
    res2d = jnp.pad(sc.reshape(m, planes),
                    ((0, 0), (0, cp - planes))).astype(jnp.bfloat16)

    # ---- conv2 + bn2 + residual add + relu -----------------------------------
    out1_nhwc = out1_2d.reshape(n, ho, wo, cp)       # padded channels are exactly 0
    xph2, _ = _phase_input(out1_nhwc, 1, cp)
    w2 = _weight_taps(params["conv2_w"], cp, cp)
    g2 = jnp.pad(params["bn2_gamma"], (0, cp - planes)).astype(jnp.float32)
    b2 = jnp.pad(params["bn2_beta"], (0, cp - planes)).astype(jnp.float32)
    out2_2d = fused_conv_bn_act(xph2, w2, g2, b2, 1, ho, wo,
                                res2d=res2d, out_dtype=jnp.float32)

    out = out2_2d[:, :planes].reshape(n, ho, wo, planes)
    return jnp.transpose(out, (0, 3, 1, 2))                          # NCHW


# ------------------------- pure-JAX reference --------------------------------
def _bn_train_ref(y_nhwc, gamma, beta):
    mean = y_nhwc.mean(axis=(0, 1, 2))
    var = ((y_nhwc - mean) ** 2).mean(axis=(0, 1, 2))
    return (y_nhwc - mean) * lax.rsqrt(var + EPS) * gamma + beta


def basic_block_ref(x_nchw, params, *, in_planes, planes, stride):
    dn = ("NHWC", "HWIO", "NHWC")
    x = jnp.transpose(x_nchw, (0, 2, 3, 1)).astype(jnp.float32)
    w1 = jnp.transpose(params["conv1_w"], (2, 3, 1, 0))
    y = lax.conv_general_dilated(x, w1, (stride, stride), ((1, 1), (1, 1)),
                                 dimension_numbers=dn)
    y = jnp.maximum(_bn_train_ref(y, params["bn1_gamma"], params["bn1_beta"]), 0.0)
    w2 = jnp.transpose(params["conv2_w"], (2, 3, 1, 0))
    z = lax.conv_general_dilated(y, w2, (1, 1), ((1, 1), (1, 1)),
                                 dimension_numbers=dn)
    z = _bn_train_ref(z, params["bn2_gamma"], params["bn2_beta"])
    if stride != 1 or in_planes != planes:
        sc = x_nchw[:, :, ::2, ::2]
        pad_c = planes // 4
        sc = jnp.pad(sc, ((0, 0), (pad_c, pad_c), (0, 0), (0, 0)))
        sc = jnp.transpose(sc, (0, 2, 3, 1)).astype(jnp.float32)
    else:
        sc = x
    z = jnp.maximum(z + sc, 0.0)
    return jnp.transpose(z, (0, 3, 1, 2))


if __name__ == "__main__":
    # Small shapes consistent with the module: a downsampling BasicBlock.
    N, in_planes, planes, H, W, stride = 2, 4, 8, 16, 16, 2

    key = jax.random.PRNGKey(0)
    k1, k2, k3, k4, k5, k6, kx = jax.random.split(key, 7)
    params = {
        "conv1_w": 0.1 * jax.random.normal(k1, (planes, in_planes, 3, 3), jnp.float32),
        "conv2_w": 0.1 * jax.random.normal(k2, (planes, planes, 3, 3), jnp.float32),
        "bn1_gamma": 1.0 + 0.1 * jax.random.normal(k3, (planes,), jnp.float32),
        "bn1_beta": 0.05 * jax.random.normal(k4, (planes,), jnp.float32),
        "bn2_gamma": 1.0 + 0.1 * jax.random.normal(k5, (planes,), jnp.float32),
        "bn2_beta": 0.05 * jax.random.normal(k6, (planes,), jnp.float32),
    }
    x = jax.random.normal(kx, (N, in_planes, H, W), jnp.float32)

    fwd = jax.jit(lambda xx: basic_block_forward(
        xx, params, in_planes=in_planes, planes=planes, stride=stride, option="A"))
    out = jax.block_until_ready(fwd(x))

    ref = basic_block_ref(x, params, in_planes=in_planes, planes=planes, stride=stride)
    assert out.shape == (N, planes, H // stride, W // stride), out.shape
    # bf16 activations/weights with f32 accumulation and training-mode BN:
    # compare against the f32 reference with a relaxed tolerance.
    err = float(jnp.max(jnp.abs(out - ref)))
    assert jnp.allclose(out, ref, rtol=5e-2, atol=5e-2), err
    print("KERNEL_OK")
</pallas_src>

<mosaic_0001>
module attributes {stable_mosaic.version = 11 : i64} {
  func.func @_bn_relu_kernel(%arg0: i32, %arg1: memref<64x128xbf16, #tpu.memory_space<vmem>>, %arg2: memref<1x128xf32, #tpu.memory_space<vmem>>, %arg3: memref<1x128xf32, #tpu.memory_space<vmem>>, %arg4: memref<64x128xbf16, #tpu.memory_space<vmem>>) attributes {dimension_semantics = [#tpu.dimension_semantics<parallel>], iteration_bounds = array<i64: 2>, scalar_prefetch = 0 : i64, scratch_operands = 0 : i64, tpu.core_type = #tpu.core_type<tc>, window_params = [{transform_indices = @transform_0, window_bounds = array<i64: 64, 128>}, {pipeline_mode = #tpu.pipeline_mode<synchronous>, transform_indices = @transform_1, window_bounds = array<i64: 1, 128>}, {pipeline_mode = #tpu.pipeline_mode<synchronous>, transform_indices = @transform_2, window_bounds = array<i64: 1, 128>}, {transform_indices = @transform_3, window_bounds = array<i64: 64, 128>}]} {
    %c0 = arith.constant 0 : index
    %c0_0 = arith.constant 0 : index
    %0 = vector.load %arg1[%c0, %c0_0] : memref<64x128xbf16, #tpu.memory_space<vmem>>, vector<64x128xbf16>
    %1 = arith.extf %0 : vector<64x128xbf16> to vector<64x128xf32>
    %c0_1 = arith.constant 0 : index
    %c0_2 = arith.constant 0 : index
    %2 = vector.load %arg2[%c0_1, %c0_2] : memref<1x128xf32, #tpu.memory_space<vmem>>, vector<1x128xf32>
    %3 = vector.broadcast %2 : vector<1x128xf32> to vector<64x128xf32>
    %4 = arith.mulf %1, %3 : vector<64x128xf32>
    %c0_3 = arith.constant 0 : index
    %c0_4 = arith.constant 0 : index
    %5 = vector.load %arg3[%c0_3, %c0_4] : memref<1x128xf32, #tpu.memory_space<vmem>>, vector<1x128xf32>
    %6 = vector.broadcast %5 : vector<1x128xf32> to vector<64x128xf32>
    %7 = arith.addf %4, %6 : vector<64x128xf32>
    %cst = arith.constant 0.000000e+00 : f32
    %8 = vector.broadcast %cst : f32 to vector<64x128xf32>
    %9 = arith.maximumf %7, %8 : vector<64x128xf32>
    %10 = arith.truncf %9 : vector<64x128xf32> to vector<64x128xbf16>
    %c0_5 = arith.constant 0 : index
    %c0_6 = arith.constant 0 : index
    %11 = vector.load %arg4[%c0_5, %c0_6] : memref<64x128xbf16, #tpu.memory_space<vmem>>, vector<64x128xbf16>
    tpu.vector_store %arg4[%c0_5, %c0_6], %10 {strides = array<i32>} : memref<64x128xbf16, #tpu.memory_space<vmem>>, vector<64x128xbf16>,
    return
  }
  func.func @transform_0(%arg0: i32) -> (i32, i32) {
    %c0_i32 = arith.constant 0 : i32
    %c0_i32_0 = arith.constant 0 : i32
    return %arg0, %c0_i32 : i32, i32
  }
  func.func @transform_1(%arg0: i32) -> (i32, i32) {
    %c0_i32 = arith.constant 0 : i32
    %c0_i32_0 = arith.constant 0 : i32
    %c0_i32_1 = arith.constant 0 : i32
    return %c0_i32, %c0_i32_0 : i32, i32
  }
  func.func @transform_2(%arg0: i32) -> (i32, i32) {
    %c0_i32 = arith.constant 0 : i32
    %c0_i32_0 = arith.constant 0 : i32
    %c0_i32_1 = arith.constant 0 : i32
    return %c0_i32, %c0_i32_0 : i32, i32
  }
  func.func @transform_3(%arg0: i32) -> (i32, i32) {
    %c0_i32 = arith.constant 0 : i32
    %c0_i32_0 = arith.constant 0 : i32
    return %arg0, %c0_i32 : i32, i32
  }
}

module attributes {stable_mosaic.version = 11 : i64} {
  func.func @_conv_stats_kernel(%arg0: i32, %arg1: memref<1x4x9x9x128xbf16, #tpu.memory_space<vmem>>, %arg2: memref<9x128x128xbf16, #tpu.memory_space<vmem>>, %arg3: memref<1x8x8x128xbf16, #tpu.memory_space<vmem>>, %arg4: memref<1x2x128xf32, #tpu.memory_space<vmem>>) attributes {dimension_semantics = [#tpu.dimension_semantics<parallel>], iteration_bounds = array<i64: 2>, scalar_prefetch = 0 : i64, scratch_operands = 0 : i64, tpu.core_type = #tpu.core_type<tc>, window_params = [{transform_indices = @transform_0, window_bounds = array<i64: 1, 4, 9, 9, 128>}, {pipeline_mode = #tpu.pipeline_mode<synchronous>, transform_indices = @transform_1, window_bounds = array<i64: 9, 128, 128>}, {transform_indices = @transform_2, window_bounds = array<i64: 1, 8, 8, 128>}, {transform_indices = @transform_3, window_bounds = array<i64: 1, 2, 128>}]} {
    %cst = arith.constant 0.000000e+00 : f32
    %0 = vector.broadcast %cst : f32 to vector<64x128xf32>
    %c0 = arith.constant 0 : index
    %c0_0 = arith.constant 0 : index
    %c0_1 = arith.constant 0 : index
    %c0_2 = arith.constant 0 : index
    %c0_3 = arith.constant 0 : index
    %1 = vector.load %arg1[%c0, %c0_0, %c0_1, %c0_2, %c0_3] : memref<1x4x9x9x128xbf16, #tpu.memory_space<vmem>>, vector<1x1x8x8x128xbf16>
    %2 = vector.shape_cast %1 : vector<1x1x8x8x128xbf16> to vector<64x128xbf16>
    %c0_4 = arith.constant 0 : index
    %c0_5 = arith.constant 0 : index
    %c0_6 = arith.constant 0 : index
    %3 = vector.load %arg2[%c0_4, %c0_5, %c0_6] : memref<9x128x128xbf16, #tpu.memory_space<vmem>>, vector<1x128x128xbf16>
    %4 = vector.shape_cast %3 : vector<1x128x128xbf16> to vector<128x128xbf16>
    %cst_7 = arith.constant dense<0.000000e+00> : vector<64x128xf32>
    %5 = tpu.matmul %2, %4, %cst_7 {dimension_numbers = #tpu.dot_dimension_numbers<[1], [0], [0], [1], [0, 0, 1, 1], [], []>} : vector<64x128xbf16>, vector<128x128xbf16>, vector<64x128xf32> -> vector<64x128xf32>
    %6 = arith.addf %0, %5 : vector<64x128xf32>
    %c0_8 = arith.constant 0 : index
    %c1 = arith.constant 1 : index
    %c0_9 = arith.constant 0 : index
    %c0_10 = arith.constant 0 : index
    %c0_11 = arith.constant 0 : index
    %7 = vector.load %arg1[%c0_8, %c1, %c0_9, %c0_10, %c0_11] : memref<1x4x9x9x128xbf16, #tpu.memory_space<vmem>>, vector<1x1x8x8x128xbf16>
    %8 = vector.shape_cast %7 : vector<1x1x8x8x128xbf16> to vector<64x128xbf16>
    %c1_12 = arith.constant 1 : index
    %c0_13 = arith.constant 0 : index
    %c0_14 = arith.constant 0 : index
    %9 = vector.load %arg2[%c1_12, %c0_13, %c0_14] : memref<9x128x128xbf16, #tpu.memory_space<vmem>>, vector<1x128x128xbf16>
    %10 = vector.shape_cast %9 : vector<1x128x128xbf16> to vector<128x128xbf16>
    %cst_15 = arith.constant dense<0.000000e+00> : vector<64x128xf32>
    %11 = tpu.matmul %8, %10, %cst_15 {dimension_numbers = #tpu.dot_dimension_numbers<[1], [0], [0], [1], [0, 0, 1, 1], [], []>} : vector<64x128xbf16>, vector<128x128xbf16>, vector<64x128xf32> -> vector<64x128xf32>
    %12 = arith.addf %6, %11 : vector<64x128xf32>
    %c0_16 = arith.constant 0 : index
    %c0_17 = arith.constant 0 : index
    %c0_18 = arith.constant 0 : index
    %c1_19 = arith.constant 1 : index
    %c0_20 = arith.constant 0 : index
    %13 = vector.load %arg1[%c0_16, %c0_17, %c0_18, %c1_19, %c0_20] : memref<1x4x9x9x128xbf16, #tpu.memory_space<vmem>>, vector<1x1x8x8x128xbf16>
    %14 = vector.shape_cast %13 : vector<1x1x8x8x128xbf16> to vector<64x128xbf16>
    %c2 = arith.constant 2 : index
    %c0_21 = arith.constant 0 : index
    %c0_22 = arith.constant 0 : index
    %15 = vector.load %arg2[%c2, %c0_21, %c0_22] : memref<9x128x128xbf16, #tpu.memory_space<vmem>>, vector<1x128x128xbf16>
    %16 = vector.shape_cast %15 : vector<1x128x128xbf16> to vector<128x128xbf16>
    %cst_23 = arith.constant dense<0.000000e+00> : vector<64x128xf32>
    %17 = tpu.matmul %14, %16, %cst_23 {dimension_numbers = #tpu.dot_dimension_numbers<[1], [0], [0], [1], [0, 0, 1, 1], [], []>} : vector<64x128xbf16>, vector<128x128xbf16>, vector<64x128xf32> -> vector<64x128xf32>
    %18 = arith.addf %12, %17 : vector<64x128xf32>
    %c0_24 = arith.constant 0 : index
    %c2_25 = arith.constant 2 : index
    %c0_26 = arith.constant 0 : index
    %c0_27 = arith.constant 0 : index
    %c0_28 = arith.constant 0 : index
    %19 = vector.load %arg1[%c0_24, %c2_25, %c0_26, %c0_27, %c0_28] : memref<1x4x9x9x128xbf16, #tpu.memory_space<vmem>>, vector<1x1x8x8x128xbf16>
    %20 = vector.shape_cast %19 : vector<1x1x8x8x128xbf16> to vector<64x128xbf16>
    %c3 = arith.constant 3 : index
    %c0_29 = arith.constant 0 : index
    %c0_30 = arith.constant 0 : index
    %21 = vector.load %arg2[%c3, %c0_29, %c0_30] : memref<9x128x128xbf16, #tpu.memory_space<vmem>>, vector<1x128x128xbf16>
    %22 = vector.shape_cast %21 : vector<1x128x128xbf16> to vector<128x128xbf16>
    %cst_31 = arith.constant dense<0.000000e+00> : vector<64x128xf32>
    %23 = tpu.matmul %20, %22, %cst_31 {dimension_numbers = #tpu.dot_dimension_numbers<[1], [0], [0], [1], [0, 0, 1, 1], [], []>} : vector<64x128xbf16>, vector<128x128xbf16>, vector<64x128xf32> -> vector<64x128xf32>
    %24 = arith.addf %18, %23 : vector<64x128xf32>
    %c0_32 = arith.constant 0 : index
    %c3_33 = arith.constant 3 : index
    %c0_34 = arith.constant 0 : index
    %c0_35 = arith.constant 0 : index
    %c0_36 = arith.constant 0 : index
    %25 = vector.load %arg1[%c0_32, %c3_33, %c0_34, %c0_35, %c0_36] : memref<1x4x9x9x128xbf16, #tpu.memory_space<vmem>>, vector<1x1x8x8x128xbf16>
    %26 = vector.shape_cast %25 : vector<1x1x8x8x128xbf16> to vector<64x128xbf16>
    %c4 = arith.constant 4 : index
    %c0_37 = arith.constant 0 : index
    %c0_38 = arith.constant 0 : index
    %27 = vector.load %arg2[%c4, %c0_37, %c0_38] : memref<9x128x128xbf16, #tpu.memory_space<vmem>>, vector<1x128x128xbf16>
    %28 = vector.shape_cast %27 : vector<1x128x128xbf16> to vector<128x128xbf16>
    %cst_39 = arith.constant dense<0.000000e+00> : vector<64x128xf32>
    %29 = tpu.matmul %26, %28, %cst_39 {dimension_numbers = #tpu.dot_dimension_numbers<[1], [0], [0], [1], [0, 0, 1, 1], [], []>} : vector<64x128xbf16>, vector<128x128xbf16>, vector<64x128xf32> -> vector<64x128xf32>
    %30 = arith.addf %24, %29 : vector<64x128xf32>
    %c0_40 = arith.constant 0 : index
    %c2_41 = arith.constant 2 : index
    %c0_42 = arith.constant 0 : index
    %c1_43 = arith.constant 1 : index
    %c0_44 = arith.constant 0 : index
    %31 = vector.load %arg1[%c0_40, %c2_41, %c0_42, %c1_43, %c0_44] : memref<1x4x9x9x128xbf16, #tpu.memory_space<vmem>>, vector<1x1x8x8x128xbf16>
    %32 = vector.shape_cast %31 : vector<1x1x8x8x128xbf16> to vector<64x128xbf16>
    %c5 = arith.constant 5 : index
    %c0_45 = arith.constant 0 : index
    %c0_46 = arith.constant 0 : index
    %33 = vector.load %arg2[%c5, %c0_45, %c0_46] : memref<9x128x128xbf16, #tpu.memory_space<vmem>>, vector<1x128x128xbf16>
    %34 = vector.shape_cast %33 : vector<1x128x128xbf16> to vector<128x128xbf16>
    %cst_47 = arith.constant dense<0.000000e+00> : vector<64x128xf32>
    %35 = tpu.matmul %32, %34, %cst_47 {dimension_numbers = #tpu.dot_dimension_numbers<[1], [0], [0], [1], [0, 0, 1, 1], [], []>} : vector<64x128xbf16>, vector<128x128xbf16>, vector<64x128xf32> -> vector<64x128xf32>
    %36 = arith.addf %30, %35 : vector<64x128xf32>
    %c0_48 = arith.constant 0 : index
    %c0_49 = arith.constant 0 : index
    %c1_50 = arith.constant 1 : index
    %c0_51 = arith.constant 0 : index
    %c0_52 = arith.constant 0 : index
    %37 = vector.load %arg1[%c0_48, %c0_49, %c1_50, %c0_51, %c0_52] : memref<1x4x9x9x128xbf16, #tpu.memory_space<vmem>>, vector<1x1x8x8x128xbf16>
    %38 = vector.shape_cast %37 : vector<1x1x8x8x128xbf16> to vector<64x128xbf16>
    %c6 = arith.constant 6 : index
    %c0_53 = arith.constant 0 : index
    %c0_54 = arith.constant 0 : index
    %39 = vector.load %arg2[%c6, %c0_53, %c0_54] : memref<9x128x128xbf16, #tpu.memory_space<vmem>>, vector<1x128x128xbf16>
    %40 = vector.shape_cast %39 : vector<1x128x128xbf16> to vector<128x128xbf16>
    %cst_55 = arith.constant dense<0.000000e+00> : vector<64x128xf32>
    %41 = tpu.matmul %38, %40, %cst_55 {dimension_numbers = #tpu.dot_dimension_numbers<[1], [0], [0], [1], [0, 0, 1, 1], [], []>} : vector<64x128xbf16>, vector<128x128xbf16>, vector<64x128xf32> -> vector<64x128xf32>
    %42 = arith.addf %36, %41 : vector<64x128xf32>
    %c0_56 = arith.constant 0 : index
    %c1_57 = arith.constant 1 : index
    %c1_58 = arith.constant 1 : index
    %c0_59 = arith.constant 0 : index
    %c0_60 = arith.constant 0 : index
    %43 = vector.load %arg1[%c0_56, %c1_57, %c1_58, %c0_59, %c0_60] : memref<1x4x9x9x128xbf16, #tpu.memory_space<vmem>>, vector<1x1x8x8x128xbf16>
    %44 = vector.shape_cast %43 : vector<1x1x8x8x128xbf16> to vector<64x128xbf16>
    %c7 = arith.constant 7 : index
    %c0_61 = arith.constant 0 : index
    %c0_62 = arith.constant 0 : index
    %45 = vector.load %arg2[%c7, %c0_61, %c0_62] : memref<9x128x128xbf16, #tpu.memory_space<vmem>>, vector<1x128x128xbf16>
    %46 = vector.shape_cast %45 : vector<1x128x128xbf16> to vector<128x128xbf16>
    %cst_63 = arith.constant dense<0.000000e+00> : vector<64x128xf32>
    %47 = tpu.matmul %44, %46, %cst_63 {dimension_numbers = #tpu.dot_dimension_numbers<[1], [0], [0], [1], [0, 0, 1, 1], [], []>} : vector<64x128xbf16>, vector<128x128xbf16>, vector<64x128xf32> -> vector<64x128xf32>
    %48 = arith.addf %42, %47 : vector<64x128xf32>
    %c0_64 = arith.constant 0 : index
    %c0_65 = arith.constant 0 : index
    %c1_66 = arith.constant 1 : index
    %c1_67 = arith.constant 1 : index
    %c0_68 = arith.constant 0 : index
    %49 = vector.load %arg1[%c0_64, %c0_65, %c1_66, %c1_67, %c0_68] : memref<1x4x9x9x128xbf16, #tpu.memory_space<vmem>>, vector<1x1x8x8x128xbf16>
    %50 = vector.shape_cast %49 : vector<1x1x8x8x128xbf16> to vector<64x128xbf16>
    %c8 = arith.constant 8 : index
    %c0_69 = arith.constant 0 : index
    %c0_70 = arith.constant 0 : index
    %51 = vector.load %arg2[%c8, %c0_69, %c0_70] : memref<9x128x128xbf16, #tpu.memory_space<vmem>>, vector<1x128x128xbf16>
    %52 = vector.shape_cast %51 : vector<1x128x128xbf16> to vector<128x128xbf16>
    %cst_71 = arith.constant dense<0.000000e+00> : vector<64x128xf32>
    %53 = tpu.matmul %50, %52, %cst_71 {dimension_numbers = #tpu.dot_dimension_numbers<[1], [0], [0], [1], [0, 0, 1, 1], [], []>} : vector<64x128xbf16>, vector<128x128xbf16>, vector<64x128xf32> -> vector<64x128xf32>
    %54 = arith.addf %48, %53 : vector<64x128xf32>
    %55 = vector.shape_cast %54 : vector<64x128xf32> to vector<1x8x8x128xf32>
    %56 = arith.truncf %55 : vector<1x8x8x128xf32> to vector<1x8x8x128xbf16>
    %c0_72 = arith.constant 0 : index
    %c0_73 = arith.constant 0 : index
    %c0_74 = arith.constant 0 : index
    %c0_75 = arith.constant 0 : index
    %57 = vector.load %arg3[%c0_72, %c0_73, %c0_74, %c0_75] : memref<1x8x8x128xbf16, #tpu.memory_space<vmem>>, vector<1x8x8x128xbf16>
    tpu.vector_store %arg3[%c0_72, %c0_73, %c0_74, %c0_75], %56 {strides = array<i32>} : memref<1x8x8x128xbf16, #tpu.memory_space<vmem>>, vector<1x8x8x128xbf16>,
    %cst_76 = arith.constant dense<0.000000e+00> : vector<128xf32>
    %58 = vector.multi_reduction <add>, %54, %cst_76 [0] : vector<64x128xf32> to vector<128xf32>
    %59 = vector.shape_cast %58 : vector<128xf32> to vector<1x128xf32>
    %60 = arith.mulf %54, %54 : vector<64x128xf32>
    %cst_77 = arith.constant dense<0.000000e+00> : vector<128xf32>
    %61 = vector.multi_reduction <add>, %60, %cst_77 [0] : vector<64x128xf32> to vector<128xf32>
    %62 = vector.shape_cast %61 : vector<128xf32> to vector<1x128xf32>
    %63 = tpu.concatenate %59, %62 in 0 : vector<1x128xf32>, vector<1x128xf32> -> vector<2x128xf32>
    %64 = vector.shape_cast %63 : vector<2x128xf32> to vector<1x2x128xf32>
    %c0_78 = arith.constant 0 : index
    %c0_79 = arith.constant 0 : index
    %c0_80 = arith.constant 0 : index
    %65 = vector.load %arg4[%c0_78, %c0_79, %c0_80] : memref<1x2x128xf32, #tpu.memory_space<vmem>>, vector<1x2x128xf32>
    tpu.vector_store %arg4[%c0_78, %c0_79, %c0_80], %64 {strides = array<i32>} : memref<1x2x128xf32, #tpu.memory_space<vmem>>, vector<1x2x128xf32>,
    return
  }
  func.func @transform_0(%arg0: i32) -> (i32, i32, i32, i32, i32) {
    %c0_i32 = arith.constant 0 : i32
    %c0_i32_0 = arith.constant 0 : i32
    %c0_i32_1 = arith.constant 0 : i32
    %c0_i32_2 = arith.constant 0 : i32
    %c0_i32_3 = arith.constant 0 : i32
    return %arg0, %c0_i32, %c0_i32_0, %c0_i32_1, %c0_i32_2 : i32, i32, i32, i32, i32
  }
  func.func @transform_1(%arg0: i32) -> (i32, i32, i32) {
    %c0_i32 = arith.constant 0 : i32
    %c0_i32_0 = arith.constant 0 : i32
    %c0_i32_1 = arith.constant 0 : i32
    %c0_i32_2 = arith.constant 0 : i32
    return %c0_i32, %c0_i32_0, %c0_i32_1 : i32, i32, i32
  }
  func.func @transform_2(%arg0: i32) -> (i32, i32, i32, i32) {
    %c0_i32 = arith.constant 0 : i32
    %c0_i32_0 = arith.constant 0 : i32
    %c0_i32_1 = arith.constant 0 : i32
    %c0_i32_2 = arith.constant 0 : i32
    return %arg0, %c0_i32, %c0_i32_0, %c0_i32_1 : i32, i32, i32, i32
  }
  func.func @transform_3(%arg0: i32) -> (i32, i32, i32) {
    %c0_i32 = arith.constant 0 : i32
    %c0_i32_0 = arith.constant 0 : i32
    %c0_i32_1 = arith.constant 0 : i32
    return %arg0, %c0_i32, %c0_i32_0 : i32, i32, i32
  }
}

module attributes {stable_mosaic.version = 11 : i64} {
  func.func @_conv_stats_kernel(%arg0: i32, %arg1: memref<1x1x10x10x128xbf16, #tpu.memory_space<vmem>>, %arg2: memref<9x128x128xbf16, #tpu.memory_space<vmem>>, %arg3: memref<1x8x8x128xbf16, #tpu.memory_space<vmem>>, %arg4: memref<1x2x128xf32, #tpu.memory_space<vmem>>) attributes {dimension_semantics = [#tpu.dimension_semantics<parallel>], iteration_bounds = array<i64: 2>, scalar_prefetch = 0 : i64, scratch_operands = 0 : i64, tpu.core_type = #tpu.core_type<tc>, window_params = [{transform_indices = @transform_0, window_bounds = array<i64: 1, 1, 10, 10, 128>}, {pipeline_mode = #tpu.pipeline_mode<synchronous>, transform_indices = @transform_1, window_bounds = array<i64: 9, 128, 128>}, {transform_indices = @transform_2, window_bounds = array<i64: 1, 8, 8, 128>}, {transform_indices = @transform_3, window_bounds = array<i64: 1, 2, 128>}]} {
    %cst = arith.constant 0.000000e+00 : f32
    %0 = vector.broadcast %cst : f32 to vector<64x128xf32>
    %c0 = arith.constant 0 : index
    %c0_0 = arith.constant 0 : index
    %c0_1 = arith.constant 0 : index
    %c0_2 = arith.constant 0 : index
    %c0_3 = arith.constant 0 : index
    %1 = vector.load %arg1[%c0, %c0_0, %c0_1, %c0_2, %c0_3] : memref<1x1x10x10x128xbf16, #tpu.memory_space<vmem>>, vector<1x1x8x8x128xbf16>
    %2 = vector.shape_cast %1 : vector<1x1x8x8x128xbf16> to vector<64x128xbf16>
    %c0_4 = arith.constant 0 : index
    %c0_5 = arith.constant 0 : index
    %c0_6 = arith.constant 0 : index
    %3 = vector.load %arg2[%c0_4, %c0_5, %c0_6] : memref<9x128x128xbf16, #tpu.memory_space<vmem>>, vector<1x128x128xbf16>
    %4 = vector.shape_cast %3 : vector<1x128x128xbf16> to vector<128x128xbf16>
    %cst_7 = arith.constant dense<0.000000e+00> : vector<64x128xf32>
    %5 = tpu.matmul %2, %4, %cst_7 {dimension_numbers = #tpu.dot_dimension_numbers<[1], [0], [0], [1], [0, 0, 1, 1], [], []>} : vector<64x128xbf16>, vector<128x128xbf16>, vector<64x128xf32> -> vector<64x128xf32>
    %6 = arith.addf %0, %5 : vector<64x128xf32>
    %c0_8 = arith.constant 0 : index
    %c0_9 = arith.constant 0 : index
    %c0_10 = arith.constant 0 : index
    %c1 = arith.constant 1 : index
    %c0_11 = arith.constant 0 : index
    %7 = vector.load %arg1[%c0_8, %c0_9, %c0_10, %c1, %c0_11] : memref<1x1x10x10x128xbf16, #tpu.memory_space<vmem>>, vector<1x1x8x8x128xbf16>
    %8 = vector.shape_cast %7 : vector<1x1x8x8x128xbf16> to vector<64x128xbf16>
    %c1_12 = arith.constant 1 : index
    %c0_13 = arith.constant 0 : index
    %c0_14 = arith.constant 0 : index
    %9 = vector.load %arg2[%c1_12, %c0_13, %c0_14] : memref<9x128x128xbf16, #tpu.memory_space<vmem>>, vector<1x128x128xbf16>
    %10 = vector.shape_cast %9 : vector<1x128x128xbf16> to vector<128x128xbf16>
    %cst_15 = arith.constant dense<0.000000e+00> : vector<64x128xf32>
    %11 = tpu.matmul %8, %10, %cst_15 {dimension_numbers = #tpu.dot_dimension_numbers<[1], [0], [0], [1], [0, 0, 1, 1], [], []>} : vector<64x128xbf16>, vector<128x128xbf16>, vector<64x128xf32> -> vector<64x128xf32>
    %12 = arith.addf %6, %11 : vector<64x128xf32>
    %c0_16 = arith.constant 0 : index
    %c0_17 = arith.constant 0 : index
    %c0_18 = arith.constant 0 : index
    %c2 = arith.constant 2 : index
    %c0_19 = arith.constant 0 : index
    %13 = vector.load %arg1[%c0_16, %c0_17, %c0_18, %c2, %c0_19] : memref<1x1x10x10x128xbf16, #tpu.memory_space<vmem>>, vector<1x1x8x8x128xbf16>
    %14 = vector.shape_cast %13 : vector<1x1x8x8x128xbf16> to vector<64x128xbf16>
    %c2_20 = arith.constant 2 : index
    %c0_21 = arith.constant 0 : index
    %c0_22 = arith.constant 0 : index
    %15 = vector.load %arg2[%c2_20, %c0_21, %c0_22] : memref<9x128x128xbf16, #tpu.memory_space<vmem>>, vector<1x128x128xbf16>
    %16 = vector.shape_cast %15 : vector<1x128x128xbf16> to vector<128x128xbf16>
    %cst_23 = arith.constant dense<0.000000e+00> : vector<64x128xf32>
    %17 = tpu.matmul %14, %16, %cst_23 {dimension_numbers = #tpu.dot_dimension_numbers<[1], [0], [0], [1], [0, 0, 1, 1], [], []>} : vector<64x128xbf16>, vector<128x128xbf16>, vector<64x128xf32> -> vector<64x128xf32>
    %18 = arith.addf %12, %17 : vector<64x128xf32>
    %c0_24 = arith.constant 0 : index
    %c0_25 = arith.constant 0 : index
    %c1_26 = arith.constant 1 : index
    %c0_27 = arith.constant 0 : index
    %c0_28 = arith.constant 0 : index
    %19 = vector.load %arg1[%c0_24, %c0_25, %c1_26, %c0_27, %c0_28] : memref<1x1x10x10x128xbf16, #tpu.memory_space<vmem>>, vector<1x1x8x8x128xbf16>
    %20 = vector.shape_cast %19 : vector<1x1x8x8x128xbf16> to vector<64x128xbf16>
    %c3 = arith.constant 3 : index
    %c0_29 = arith.constant 0 : index
    %c0_30 = arith.constant 0 : index
    %21 = vector.load %arg2[%c3, %c0_29, %c0_30] : memref<9x128x128xbf16, #tpu.memory_space<vmem>>, vector<1x128x128xbf16>
    %22 = vector.shape_cast %21 : vector<1x128x128xbf16> to vector<128x128xbf16>
    %cst_31 = arith.constant dense<0.000000e+00> : vector<64x128xf32>
    %23 = tpu.matmul %20, %22, %cst_31 {dimension_numbers = #tpu.dot_dimension_numbers<[1], [0], [0], [1], [0, 0, 1, 1], [], []>} : vector<64x128xbf16>, vector<128x128xbf16>, vector<64x128xf32> -> vector<64x128xf32>
    %24 = arith.addf %18, %23 : vector<64x128xf32>
    %c0_32 = arith.constant 0 : index
    %c0_33 = arith.constant 0 : index
    %c1_34 = arith.constant 1 : index
    %c1_35 = arith.constant 1 : index
    %c0_36 = arith.constant 0 : index
    %25 = vector.load %arg1[%c0_32, %c0_33, %c1_34, %c1_35, %c0_36] : memref<1x1x10x10x128xbf16, #tpu.memory_space<vmem>>, vector<1x1x8x8x128xbf16>
    %26 = vector.shape_cast %25 : vector<1x1x8x8x128xbf16> to vector<64x128xbf16>
    %c4 = arith.constant 4 : index
    %c0_37 = arith.constant 0 : index
    %c0_38 = arith.constant 0 : index
    %27 = vector.load %arg2[%c4, %c0_37, %c0_38] : memref<9x128x128xbf16, #tpu.memory_space<vmem>>, vector<1x128x128xbf16>
    %28 = vector.shape_cast %27 : vector<1x128x128xbf16> to vector<128x128xbf16>
    %cst_39 = arith.constant dense<0.000000e+00> : vector<64x128xf32>
    %29 = tpu.matmul %26, %28, %cst_39 {dimension_numbers = #tpu.dot_dimension_numbers<[1], [0], [0], [1], [0, 0, 1, 1], [], []>} : vector<64x128xbf16>, vector<128x128xbf16>, vector<64x128xf32> -> vector<64x128xf32>
    %30 = arith.addf %24, %29 : vector<64x128xf32>
    %c0_40 = arith.constant 0 : index
    %c0_41 = arith.constant 0 : index
    %c1_42 = arith.constant 1 : index
    %c2_43 = arith.constant 2 : index
    %c0_44 = arith.constant 0 : index
    %31 = vector.load %arg1[%c0_40, %c0_41, %c1_42, %c2_43, %c0_44] : memref<1x1x10x10x128xbf16, #tpu.memory_space<vmem>>, vector<1x1x8x8x128xbf16>
    %32 = vector.shape_cast %31 : vector<1x1x8x8x128xbf16> to vector<64x128xbf16>
    %c5 = arith.constant 5 : index
    %c0_45 = arith.constant 0 : index
    %c0_46 = arith.constant 0 : index
    %33 = vector.load %arg2[%c5, %c0_45, %c0_46] : memref<9x128x128xbf16, #tpu.memory_space<vmem>>, vector<1x128x128xbf16>
    %34 = vector.shape_cast %33 : vector<1x128x128xbf16> to vector<128x128xbf16>
    %cst_47 = arith.constant dense<0.000000e+00> : vector<64x128xf32>
    %35 = tpu.matmul %32, %34, %cst_47 {dimension_numbers = #tpu.dot_dimension_numbers<[1], [0], [0], [1], [0, 0, 1, 1], [], []>} : vector<64x128xbf16>, vector<128x128xbf16>, vector<64x128xf32> -> vector<64x128xf32>
    %36 = arith.addf %30, %35 : vector<64x128xf32>
    %c0_48 = arith.constant 0 : index
    %c0_49 = arith.constant 0 : index
    %c2_50 = arith.constant 2 : index
    %c0_51 = arith.constant 0 : index
    %c0_52 = arith.constant 0 : index
    %37 = vector.load %arg1[%c0_48, %c0_49, %c2_50, %c0_51, %c0_52] : memref<1x1x10x10x128xbf16, #tpu.memory_space<vmem>>, vector<1x1x8x8x128xbf16>
    %38 = vector.shape_cast %37 : vector<1x1x8x8x128xbf16> to vector<64x128xbf16>
    %c6 = arith.constant 6 : index
    %c0_53 = arith.constant 0 : index
    %c0_54 = arith.constant 0 : index
    %39 = vector.load %arg2[%c6, %c0_53, %c0_54] : memref<9x128x128xbf16, #tpu.memory_space<vmem>>, vector<1x128x128xbf16>
    %40 = vector.shape_cast %39 : vector<1x128x128xbf16> to vector<128x128xbf16>
    %cst_55 = arith.constant dense<0.000000e+00> : vector<64x128xf32>
    %41 = tpu.matmul %38, %40, %cst_55 {dimension_numbers = #tpu.dot_dimension_numbers<[1], [0], [0], [1], [0, 0, 1, 1], [], []>} : vector<64x128xbf16>, vector<128x128xbf16>, vector<64x128xf32> -> vector<64x128xf32>
    %42 = arith.addf %36, %41 : vector<64x128xf32>
    %c0_56 = arith.constant 0 : index
    %c0_57 = arith.constant 0 : index
    %c2_58 = arith.constant 2 : index
    %c1_59 = arith.constant 1 : index
    %c0_60 = arith.constant 0 : index
    %43 = vector.load %arg1[%c0_56, %c0_57, %c2_58, %c1_59, %c0_60] : memref<1x1x10x10x128xbf16, #tpu.memory_space<vmem>>, vector<1x1x8x8x128xbf16>
    %44 = vector.shape_cast %43 : vector<1x1x8x8x128xbf16> to vector<64x128xbf16>
    %c7 = arith.constant 7 : index
    %c0_61 = arith.constant 0 : index
    %c0_62 = arith.constant 0 : index
    %45 = vector.load %arg2[%c7, %c0_61, %c0_62] : memref<9x128x128xbf16, #tpu.memory_space<vmem>>, vector<1x128x128xbf16>
    %46 = vector.shape_cast %45 : vector<1x128x128xbf16> to vector<128x128xbf16>
    %cst_63 = arith.constant dense<0.000000e+00> : vector<64x128xf32>
    %47 = tpu.matmul %44, %46, %cst_63 {dimension_numbers = #tpu.dot_dimension_numbers<[1], [0], [0], [1], [0, 0, 1, 1], [], []>} : vector<64x128xbf16>, vector<128x128xbf16>, vector<64x128xf32> -> vector<64x128xf32>
    %48 = arith.addf %42, %47 : vector<64x128xf32>
    %c0_64 = arith.constant 0 : index
    %c0_65 = arith.constant 0 : index
    %c2_66 = arith.constant 2 : index
    %c2_67 = arith.constant 2 : index
    %c0_68 = arith.constant 0 : index
    %49 = vector.load %arg1[%c0_64, %c0_65, %c2_66, %c2_67, %c0_68] : memref<1x1x10x10x128xbf16, #tpu.memory_space<vmem>>, vector<1x1x8x8x128xbf16>
    %50 = vector.shape_cast %49 : vector<1x1x8x8x128xbf16> to vector<64x128xbf16>
    %c8 = arith.constant 8 : index
    %c0_69 = arith.constant 0 : index
    %c0_70 = arith.constant 0 : index
    %51 = vector.load %arg2[%c8, %c0_69, %c0_70] : memref<9x128x128xbf16, #tpu.memory_space<vmem>>, vector<1x128x128xbf16>
    %52 = vector.shape_cast %51 : vector<1x128x128xbf16> to vector<128x128xbf16>
    %cst_71 = arith.constant dense<0.000000e+00> : vector<64x128xf32>
    %53 = tpu.matmul %50, %52, %cst_71 {dimension_numbers = #tpu.dot_dimension_numbers<[1], [0], [0], [1], [0, 0, 1, 1], [], []>} : vector<64x128xbf16>, vector<128x128xbf16>, vector<64x128xf32> -> vector<64x128xf32>
    %54 = arith.addf %48, %53 : vector<64x128xf32>
    %55 = vector.shape_cast %54 : vector<64x128xf32> to vector<1x8x8x128xf32>
    %56 = arith.truncf %55 : vector<1x8x8x128xf32> to vector<1x8x8x128xbf16>
    %c0_72 = arith.constant 0 : index
    %c0_73 = arith.constant 0 : index
    %c0_74 = arith.constant 0 : index
    %c0_75 = arith.constant 0 : index
    %57 = vector.load %arg3[%c0_72, %c0_73, %c0_74, %c0_75] : memref<1x8x8x128xbf16, #tpu.memory_space<vmem>>, vector<1x8x8x128xbf16>
    tpu.vector_store %arg3[%c0_72, %c0_73, %c0_74, %c0_75], %56 {strides = array<i32>} : memref<1x8x8x128xbf16, #tpu.memory_space<vmem>>, vector<1x8x8x128xbf16>,
    %cst_76 = arith.constant dense<0.000000e+00> : vector<128xf32>
    %58 = vector.multi_reduction <add>, %54, %cst_76 [0] : vector<64x128xf32> to vector<128xf32>
    %59 = vector.shape_cast %58 : vector<128xf32> to vector<1x128xf32>
    %60 = arith.mulf %54, %54 : vector<64x128xf32>
    %cst_77 = arith.constant dense<0.000000e+00> : vector<128xf32>
    %61 = vector.multi_reduction <add>, %60, %cst_77 [0] : vector<64x128xf32> to vector<128xf32>
    %62 = vector.shape_cast %61 : vector<128xf32> to vector<1x128xf32>
    %63 = tpu.concatenate %59, %62 in 0 : vector<1x128xf32>, vector<1x128xf32> -> vector<2x128xf32>
    %64 = vector.shape_cast %63 : vector<2x128xf32> to vector<1x2x128xf32>
    %c0_78 = arith.constant 0 : index
    %c0_79 = arith.constant 0 : index
    %c0_80 = arith.constant 0 : index
    %65 = vector.load %arg4[%c0_78, %c0_79, %c0_80] : memref<1x2x128xf32, #tpu.memory_space<vmem>>, vector<1x2x128xf32>
    tpu.vector_store %arg4[%c0_78, %c0_79, %c0_80], %64 {strides = array<i32>} : memref<1x2x128xf32, #tpu.memory_space<vmem>>, vector<1x2x128xf32>,
    return
  }
  func.func @transform_0(%arg0: i32) -> (i32, i32, i32, i32, i32) {
    %c0_i32 = arith.constant 0 : i32
    %c0_i32_0 = arith.constant 0 : i32
    %c0_i32_1 = arith.constant 0 : i32
    %c0_i32_2 = arith.constant 0 : i32
    %c0_i32_3 = arith.constant 0 : i32
    return %arg0, %c0_i32, %c0_i32_0, %c0_i32_1, %c0_i32_2 : i32, i32, i32, i32, i32
  }
  func.func @transform_1(%arg0: i32) -> (i32, i32, i32) {
    %c0_i32 = arith.constant 0 : i32
    %c0_i32_0 = arith.constant 0 : i32
    %c0_i32_1 = arith.constant 0 : i32
    %c0_i32_2 = arith.constant 0 : i32
    return %c0_i32, %c0_i32_0, %c0_i32_1 : i32, i32, i32
  }
  func.func @transform_2(%arg0: i32) -> (i32, i32, i32, i32) {
    %c0_i32 = arith.constant 0 : i32
    %c0_i32_0 = arith.constant 0 : i32
    %c0_i32_1 = arith.constant 0 : i32
    %c0_i32_2 = arith.constant 0 : i32
    return %arg0, %c0_i32, %c0_i32_0, %c0_i32_1 : i32, i32, i32, i32
  }
  func.func @transform_3(%arg0: i32) -> (i32, i32, i32) {
    %c0_i32 = arith.constant 0 : i32
    %c0_i32_0 = arith.constant 0 : i32
    %c0_i32_1 = arith.constant 0 : i32
    return %arg0, %c0_i32, %c0_i32_0 : i32, i32, i32
  }
}

module attributes {stable_mosaic.version = 11 : i64} {
  func.func @_bn_add_relu_kernel(%arg0: i32, %arg1: memref<64x128xbf16, #tpu.memory_space<vmem>>, %arg2: memref<1x128xf32, #tpu.memory_space<vmem>>, %arg3: memref<1x128xf32, #tpu.memory_space<vmem>>, %arg4: memref<64x128xbf16, #tpu.memory_space<vmem>>, %arg5: memref<64x128xf32, #tpu.memory_space<vmem>>) attributes {dimension_semantics = [#tpu.dimension_semantics<parallel>], iteration_bounds = array<i64: 2>, scalar_prefetch = 0 : i64, scratch_operands = 0 : i64, tpu.core_type = #tpu.core_type<tc>, window_params = [{transform_indices = @transform_0, window_bounds = array<i64: 64, 128>}, {pipeline_mode = #tpu.pipeline_mode<synchronous>, transform_indices = @transform_1, window_bounds = array<i64: 1, 128>}, {pipeline_mode = #tpu.pipeline_mode<synchronous>, transform_indices = @transform_2, window_bounds = array<i64: 1, 128>}, {transform_indices = @transform_3, window_bounds = array<i64: 64, 128>}, {transform_indices = @transform_4, window_bounds = array<i64: 64, 128>}]} {
    %c0 = arith.constant 0 : index
    %c0_0 = arith.constant 0 : index
    %0 = vector.load %arg1[%c0, %c0_0] : memref<64x128xbf16, #tpu.memory_space<vmem>>, vector<64x128xbf16>
    %1 = arith.extf %0 : vector<64x128xbf16> to vector<64x128xf32>
    %c0_1 = arith.constant 0 : index
    %c0_2 = arith.constant 0 : index
    %2 = vector.load %arg2[%c0_1, %c0_2] : memref<1x128xf32, #tpu.memory_space<vmem>>, vector<1x128xf32>
    %3 = vector.broadcast %2 : vector<1x128xf32> to vector<64x128xf32>
    %4 = arith.mulf %1, %3 : vector<64x128xf32>
    %c0_3 = arith.constant 0 : index
    %c0_4 = arith.constant 0 : index
    %5 = vector.load %arg3[%c0_3, %c0_4] : memref<1x128xf32, #tpu.memory_space<vmem>>, vector<1x128xf32>
    %6 = vector.broadcast %5 : vector<1x128xf32> to vector<64x128xf32>
    %7 = arith.addf %4, %6 : vector<64x128xf32>
    %c0_5 = arith.constant 0 : index
    %c0_6 = arith.constant 0 : index
    %8 = vector.load %arg4[%c0_5, %c0_6] : memref<64x128xbf16, #tpu.memory_space<vmem>>, vector<64x128xbf16>
    %9 = arith.extf %8 : vector<64x128xbf16> to vector<64x128xf32>
    %10 = arith.addf %7, %9 : vector<64x128xf32>
    %cst = arith.constant 0.000000e+00 : f32
    %11 = vector.broadcast %cst : f32 to vector<64x128xf32>
    %12 = arith.maximumf %10, %11 : vector<64x128xf32>
    %c0_7 = arith.constant 0 : index
    %c0_8 = arith.constant 0 : index
    %13 = vector.load %arg5[%c0_7, %c0_8] : memref<64x128xf32, #tpu.memory_space<vmem>>, vector<64x128xf32>
    tpu.vector_store %arg5[%c0_7, %c0_8], %12 {strides = array<i32>} : memref<64x128xf32, #tpu.memory_space<vmem>>, vector<64x128xf32>,
    return
  }
  func.func @transform_0(%arg0: i32) -> (i32, i32) {
    %c0_i32 = arith.constant 0 : i32
    %c0_i32_0 = arith.constant 0 : i32
    return %arg0, %c0_i32 : i32, i32
  }
  func.func @transform_1(%arg0: i32) -> (i32, i32) {
    %c0_i32 = arith.constant 0 : i32
    %c0_i32_0 = arith.constant 0 : i32
    %c0_i32_1 = arith.constant 0 : i32
    return %c0_i32, %c0_i32_0 : i32, i32
  }
  func.func @transform_2(%arg0: i32) -> (i32, i32) {
    %c0_i32 = arith.constant 0 : i32
    %c0_i32_0 = arith.constant 0 : i32
    %c0_i32_1 = arith.constant 0 : i32
    return %c0_i32, %c0_i32_0 : i32, i32
  }
  func.func @transform_3(%arg0: i32) -> (i32, i32) {
    %c0_i32 = arith.constant 0 : i32
    %c0_i32_0 = arith.constant 0 : i32
    return %arg0, %c0_i32 : i32, i32
  }
  func.func @transform_4(%arg0: i32) -> (i32, i32) {
    %c0_i32 = arith.constant 0 : i32
    %c0_i32_0 = arith.constant 0 : i32
    return %arg0, %c0_i32 : i32, i32
  }
}

</mosaic_0001>

<bundles_post_ra>
// kernel: _lambda_.5
= control target key start
LH: loop header
LB: loop body
LE: loop exit
PB: predicated region body
PF: predicated region fallthrough
CT: control target
= control target key end

     0   :  { %s385_s12 = smov 0   ;;  %s415_s0 = inlined_call_operand.vmem [shape: bf16[128,128], index: 0, kind: input, shape index: {}]   ;;  %s416_s1 = inlined_call_operand.vmem [shape: f32[1,128], index: 1, kind: input, shape index: {}]   ;;  %s417_s2 = inlined_call_operand.vmem [shape: f32[1,128], index: 2, kind: input, shape index: {}]   ;;  %s418_s3 = inlined_call_operand.vmem [shape: bf16[128,128], index: 3, kind: output, shape index: {}]  }
   0x1 LB: > { %s294_s13 = sadd.s32 4294967295, %s363_s12   ;;  %p298_p0 = scmp.ge.s32.totalorder %s363_s12, 1  ;;  %s363_s12 = sphi %s385_s12, %s13_s12  }
   0x2   : > { %p138_p1 = scmp.lt.s32.totalorder %s363_s12, 3 }
   0x4   : > { %p139_p2 = pnand %p298_p0, %p138_p1 }
   0x5   : > { %s299_s14 = sshll.u32 (!%p139_p2), %s294_s13, 3 }
   0x6   : > { %142 = sbr.rel (%p139_p2) target bundleno = 29 (0x1d), region = 32  ;;  %p163_p3 = scmp.lt.s32.totalorder (!%p139_p2), %s299_s14, 15 }
   0xb   : > { %s420_s14 = smov (!%p163_p3, %s299_s14), 15  ;;  %v355_v0 = vld [vmem:[%s416_s1] ss:$0 sm:$0xff] }
   0xc   : > { %s300_s15 = sshll.u32 %s420_s14, 2  ;;  %v356_v6 = vld [vmem:[%s417_s2] ss:$0 sm:$0xff] }
   0xd   : > { %s166_s18 = scalar_lea.vmem %s415_s0, %s300_s15  ;;  %s172_s25 = scalar_lea.vmem %s418_s3, %s300_s15 }
   0xe   : > { %v306_v1 = vld [vmem:[%s166_s18] sm:$0xff]   ;;  %v341_v2 = vld [vmem:[%s166_s18 + $0x8] sm:$0xff]   ;;  %v342_v3 = vld [vmem:[%s166_s18 + $0x10] sm:$0xff]  }
   0xf   : > { %v307_v4 = vunpack.c.l.bf16 %v306_v1  ;;  %v308_v5 = vunpack.c.h.bf16 %v306_v1  ;;  %v311_v7 = vunpack.c.l.bf16 %v341_v2  ;;  %v312_v8 = vunpack.c.h.bf16 %v341_v2  ;;  %v343_v9 = vld [vmem:[%s166_s18 + $0x18] sm:$0xff]  }
  0x10   : > { %v315_v10 = vunpack.c.l.bf16 %v342_v3  ;;  %v316_v11 = vunpack.c.h.bf16 %v342_v3  ;;  %v319_v12 = vunpack.c.l.bf16 %v343_v9  ;;  %v320_v13 = vunpack.c.h.bf16 %v343_v9 }
  0x11   : > { %v194_v14 = vmul.f32 %v355_v0, %v307_v4  ;;  %v195_v15 = vmul.f32 %v355_v0, %v308_v5  ;;  %v196_v16 = vmul.f32 %v355_v0, %v311_v7  ;;  %v197_v17 = vmul.f32 %v355_v0, %v312_v8 }
  0x12   : > { %v198_v18 = vmul.f32 %v355_v0, %v315_v10  ;;  %v199_v19 = vmul.f32 %v355_v0, %v316_v11  ;;  %v200_v20 = vmul.f32 %v355_v0, %v319_v12  ;;  %v201_v21 = vmul.f32 %v355_v0, %v320_v13 }
  0x13   : > { %v206_v22 = vadd.f32 %v356_v6, %v194_v14  ;;  %v207_v23 = vadd.f32 %v356_v6, %v195_v15  ;;  %v208_v24 = vadd.f32 %v356_v6, %v196_v16  ;;  %v209_v25 = vadd.f32 %v356_v6, %v197_v17 }
  0x14   : > { %v210_v26 = vadd.f32 %v356_v6, %v198_v18  ;;  %v211_v27 = vadd.f32 %v356_v6, %v199_v19  ;;  %v212_v28 = vadd.f32 %v356_v6, %v200_v20  ;;  %v213_v29 = vadd.f32 %v356_v6, %v201_v21 }
  0x15   : > { %v214_v30 = vmax.f32 %v206_v22, 0.0  ;;  %v215_v31 = vmax.f32 %v207_v23, 0.0  ;;  %v216_v32 = vmax.f32 %v208_v24, 0.0  ;;  %v217_v33 = vmax.f32 %v209_v25, 0.0 }
  0x16   : > { %v218_v34 = vmax.f32 %v210_v26, 0.0  ;;  %v219_v35 = vmax.f32 %v211_v27, 0.0  ;;  %v220_v36 = vmax.f32 %v212_v28, 0.0  ;;  %v221_v37 = vmax.f32 %v213_v29, 0.0 }
  0x17   : > { %v324_v38 = vpack.c.bf16 %v215_v31, %v214_v30  ;;  %v329_v39 = vpack.c.bf16 %v217_v33, %v216_v32 }
  0x18   : > { %v334_v40 = vpack.c.bf16 %v219_v35, %v218_v34  ;;  %v339_v41 = vpack.c.bf16 %v221_v37, %v220_v36 }
  0x19   : > { %325 = vst [vmem:[%s172_s25] sm:$0xff] %v324_v38  }
  0x1a   : > { %344 = vst [vmem:[%s172_s25 + $0x8] sm:$0xff] %v329_v39  }
  0x1b   : > { %345 = vst [vmem:[%s172_s25 + $0x10] sm:$0xff] %v334_v40  }
  0x1c   : > { %346 = vst [vmem:[%s172_s25 + $0x18] sm:$0xff] %v339_v41  }
  0x1d PF: > { %s13_s12 = sadd.s32 1, %s363_s12  }
  0x1e   : > { %p10_p4 = scmp.ge.s32.totalorder %s13_s12, 4  }
  0x20   :  { %12 = sbr.rel (!%p10_p4) target bundleno = 1 (0x1), region = 62 }

// kernel: _lambda_.6
= control target key start
LH: loop header
LB: loop body
LE: loop exit
PB: predicated region body
PF: predicated region fallthrough
CT: control target
= control target key end

     0   :  { %s2690_s12 = smov 0   ;;  %s3303_s0 = inlined_call_operand.vmem [shape: bf16[2,1,10,10,128], index: 0, kind: input, shape index: {}]   ;;  %s3304_s1 = inlined_call_operand.vmem [shape: bf16[9,128,128], index: 1, kind: input, shape index: {}]   ;;  %s3305_s2 = inlined_call_operand.vmem [shape: bf16[2,8,8,128], index: 2, kind: output, shape index: {0}]   ;;  %s3306_s3 = inlined_call_operand.vmem [shape: f32[2,2,128], index: 3, kind: output, shape index: {1}]  }
   0x1 LB: > { %s1966_s13 = sadd.s32 4294967295, %s2668_s12   ;;  %p1970_p0 = scmp.ge.s32.totalorder %s2668_s12, 1  ;;  %s2668_s12 = sphi %s2690_s12, %s14_s12  }
   0x2   : > { %p140_p1 = scmp.lt.s32.totalorder %s2668_s12, 3 }
   0x4   : > { %p141_p2 = pnand %p1970_p0, %p140_p1 }
   0x5   : > { %p168_p3 = scmp.lt.s32.totalorder (!%p141_p2), %s1966_s13, 1 }
   0x6   : > { %144 = sbr.rel (%p141_p2) target bundleno = 347 (0x15b), region = 28 }
   0xb   : > { %v2549_v0 = vld [vmem:[%s3304_s1 + $0x78] sm:$0xff]  ;;  %v2548_v2 = vld [vmem:[%s3304_s1 + $0x70] sm:$0xff]  ;;  %s3312_s13 = smov (!%p168_p3, %s1966_s13), 1  ;;  %v2547_v6 = vld [vmem:[%s3304_s1 + $0x68] sm:$0xff]  ;;  %vm214_vm0 = vsmask.f32 3328 }
   0xc   : > { %v2557_v1 = vld [vmem:[%s3304_s1 + $0xb8] sm:$0xff]  ;;  %2637 = vmatpush.bf16.msra.mxu1 %v2549_v0  ;;  %410 = vmatpush.bf16.msra.mxu0 %v2549_v0  ;;  %v2556_v3 = vld [vmem:[%s3304_s1 + $0xb0] sm:$0xff]  ;;  %s2653_s24 = smul.u32 80, %s3312_s13  ;;  %v2555_v7 = vld [vmem:[%s3304_s1 + $0xa8] sm:$0xff]  ;;  %vm215_vm1 = vsmask.f32 7440 }
   0xd   : > { %680 = vmatpush.bf16.msra.mxu2 %v2557_v1  ;;  %v2569_v4 = vld [vmem:[%s3304_s1 + $0xf8] sm:$0xff]  ;;  %v2568_v5 = vld [vmem:[%s3304_s1 + $0xf0] sm:$0xff]  ;;  %v2546_v11 = vld [vmem:[%s3304_s1 + $0x60] sm:$0xff]  ;;  %vm564_vm2 = vcmask 1042432   ;;  %vm565_vm3 = vcmask 1046532   ;;  %s1974_s20 = sshll.u32 %s3312_s13, 1 }
   0xe   : > { %815 = vmatpush.bf16.msra.mxu3 %v2569_v4  ;;  %s2728_s6 = scalar_lea.vmem %s3303_s0, %s2653_s24  ;;  %v2554_v16 = vld [vmem:[%s3304_s1 + $0xa0] sm:$0xff]  ;;  %v2567_v17 = vld [vmem:[%s3304_s1 + $0xe8] sm:$0xff]  ;;  %v2545_v29 = vld [vmem:[%s3304_s1 + $0x58] sm:$0xff]  ;;  %vm1877_vm6 = vcmask 1040384   ;;  %s181_s23 = scalar_lea.vmem %s3306_s3, %s1974_s20 }
   0xf   : > { %v186_v8 = vld [vmem:[%s2728_s6 + $0x20] sm:$0xf]  ;;  %v187_v9 = vld [vmem:[%s2728_s6 + $0x28] sm:$0xf]  ;;  %v2733_v10 = vld [vmem:[%s2728_s6 + $0x24] sm:$0x1] }
  0x10   : > { %2638 = vmatpush.bf16.msra.mxu1 %v2548_v2  ;;  %411 = vmatpush.bf16.msra.mxu0 %v2548_v2  ;;  %v2739_v12 = vld [vmem:[%s2728_s6 + $0x2c] sm:$0x1]  ;;  %v274_v13 = vshrl.u32 %v186_v8, 16  ;;  %v277_v14 = vshll.u32 %v186_v8, 16  ;;  %v288_v15 = vshrl.u32 %v187_v9, 16  ;;  %v291_v18 = vshll.u32 %v187_v9, 16  ;;  %vm2766_vm4 = vmor %vm214_vm0, %vm215_vm1 }
  0x11   : > { %681 = vmatpush.bf16.msra.mxu2 %v2556_v3  ;;  %v182_v19 = vld [vmem:[%s2728_s6] sm:$0xf]  ;;  %v283_v22 = vshll.u32 %v2733_v10, 16  ;;  %v183_v24 = vld [vmem:[%s2728_s6 + $0x8] sm:$0xf]  ;;  %v297_v26 = vshll.u32 %v2739_v12, 16  ;;  %vm2775_vm5 = vmor %vm564_vm2, %vm565_vm3 }
  0x12   : > { %816 = vmatpush.bf16.msra.mxu3 %v2568_v5  ;;  %v276_v20 = vrot.slane %v274_v13, 4  ;;  %v279_v21 = vrot.slane %v277_v14, 5  ;;  %v290_v23 = vrot.slane %v288_v15, 4  ;;  %v293_v25 = vrot.slane %v291_v18, 5  ;;  %v206_v27 = vld [vmem:[%s2728_s6 + $0x4] sm:$0x1] }
  0x13   : > { %v207_v28 = vld [vmem:[%s2728_s6 + $0xc] sm:$0x1]  ;;  %v218_v31 = vshrl.u32 %v182_v19, 16  ;;  %v221_v32 = vshll.u32 %v182_v19, 16  ;;  %v2566_v34 = vld [vmem:[%s3304_s1 + $0xe0] sm:$0xff]  ;;  %v227_v35 = vshll.u32 %v206_v27, 16 }
  0x14   : > { %2639 = vmatpush.bf16.msra.mxu1 %v2547_v6  ;;  %412 = vmatpush.bf16.msra.mxu0 %v2547_v6  ;;  %v280_v30 = vor.u32 %v279_v21, %v276_v20  ;;  %v294_v33 = vor.u32 %v293_v25, %v290_v23  ;;  %v232_v36 = vshrl.u32 %v183_v24, 16  ;;  %v235_v37 = vshll.u32 %v183_v24, 16  ;;  %v540_v38 = vld [vmem:[%s2728_s6] sm:$0xe]  ;;  %v541_v43 = vld [vmem:[%s2728_s6 + $0x8] sm:$0xe] }
  0x15   : > { %682 = vmatpush.bf16.msra.mxu2 %v2555_v7  ;;  %v285_v39 = vrot.slane %v283_v22, 5  ;;  %v220_v40 = vrot.slane %v218_v31, 4  ;;  %v223_v41 = vrot.slane %v221_v32, 5  ;;  %v241_v42 = vshll.u32 %v207_v28, 16  ;;  %v2553_v44 = vld [vmem:[%s3304_s1 + $0x98] sm:$0xff]  ;;  %v2544_v60 = vld [vmem:[%s3304_s1 + $0x50] sm:$0xff] }
  0x16   : > { %817 = vmatpush.bf16.msra.mxu3 %v2567_v17  ;;  %v281_v45 = vrot.slane %v280_v30, 4  ;;  %v299_v46 = vrot.slane %v297_v26, 5  ;;  %v234_v47 = vrot.slane %v232_v36, 4  ;;  %v237_v48 = vrot.slane %v235_v37, 5  ;;  %v2565_v56 = vld [vmem:[%s3304_s1 + $0xd8] sm:$0xff]  ;;  %v2552_v0 = vld [vmem:[%s3304_s1 + $0x90] sm:$0xff] }
  0x17   : > { %v295_v50 = vrot.slane %v294_v33, 4  ;;  %v224_v51 = vor.u32 %v223_v41, %v220_v40  ;;  %v2071_v52 = vrot.slane %v540_v38, 9  ;;  %v569_v53 = vrot.slane %v206_v27, 5  ;;  %v188_v59 = vld [vmem:[%s2728_s6 + $0x30] sm:$0xf]  ;;  %v2543_v14 = vld [vmem:[%s3304_s1 + $0x48] sm:$0xff] }
  0x18   : > { %2640 = vmatpush.bf16.msra.mxu1 %v2546_v11  ;;  %413 = vmatpush.bf16.msra.mxu0 %v2546_v11  ;;  %v229_v54 = vrot.slane %v227_v35, 5  ;;  %v238_v55 = vor.u32 %v237_v48, %v234_v47  ;;  %v2072_v58 = vrot.slane %v541_v43, 9  ;;  %v243_v62 = vrot.slane %v241_v42, 5  ;;  %v189_v3 = vld [vmem:[%s2728_s6 + $0x38] sm:$0xf]  ;;  %v2564_v11 = vld [vmem:[%s3304_s1 + $0xd0] sm:$0xff] }
  0x19   : > { %683 = vmatpush.bf16.msra.mxu2 %v2554_v16  ;;  %v225_v61 = vrot.slane %v224_v51, 4  ;;  %v573_v63 = vrot.slane %v207_v28, 5  ;;  %v286_v1 = vsel %vm2766_vm4, %v281_v45, %v285_v39  ;;  %v300_v4 = vsel %vm2766_vm4, %v295_v50, %v299_v46  ;;  %v184_v7 = vld [vmem:[%s2728_s6 + $0x10] sm:$0xf]  ;;  %v2551_v19 = vld [vmem:[%s3304_s1 + $0x88] sm:$0xff]  ;;  %v2542_v24 = vld [vmem:[%s3304_s1 + $0x40] sm:$0xff] }
  0x1a   : > { %818 = vmatpush.bf16.msra.mxu3 %v2566_v34  ;;  %v239_v2 = vrot.slane %v238_v55, 4  ;;  %v570_v5 = vsel %vm2775_vm5, %v2071_v52, %v569_v53  ;;  %v302_v6 = vshrl.u32 %v188_v59, 16  ;;  %v305_v13 = vshll.u32 %v188_v59, 16  ;;  %v185_v22 = vld [vmem:[%s2728_s6 + $0x18] sm:$0xf]  ;;  %v2563_v31 = vld [vmem:[%s3304_s1 + $0xc8] sm:$0xff] }
  0x1b   : > { %v230_v8 = vsel %vm2766_vm4, %v225_v61, %v229_v54  ;;  %v574_v9 = vsel %vm2775_vm5, %v2072_v58, %v573_v63  ;;  %v2804_v15 = vunpack.c.l.b16 %v286_v1  ;;  %v316_v17 = vshrl.u32 %v189_v3, 16  ;;  %v2822_v32 = vld [vmem:[%s2728_s6 + $0x34] sm:$0x1]  ;;  %v2825_v36 = vld [vmem:[%s2728_s6 + $0x3c] sm:$0x1]  ;;  %v2550_v42 = vld [vmem:[%s3304_s1 + $0x80] sm:$0xff] }
  0x1c   : > { %2641 = vmatpush.bf16.msra.mxu1 %v2545_v29  ;;  %414 = vmatpush.bf16.msra.mxu0 %v2545_v29  ;;  %v244_v16 = vsel %vm2766_vm4, %v239_v2, %v243_v62  ;;  %v351_v18 = vunpack.c.l.b16 %v300_v4  ;;  %v616_v20 = vunpack.c.l.b16 %v570_v5  ;;  %v319_v21 = vshll.u32 %v189_v3, 16  ;;  %v2541_v29 = vld [vmem:[%s3304_s1 + $0x38] sm:$0xff]  ;;  %v2832_v43 = vld [vmem:[%s2728_s6 + $0x14] sm:$0x1]  ;;  %v2153_v62 = vld [vmem:[%s2728_s6 + $0x8] sm:$0xf] }
  0x1d   : > { %684 = vmatpush.bf16.msra.mxu2 %v2553_v44  ;;  %v246_v23 = vshrl.u32 %v184_v7, 16  ;;  %v346_v25 = vunpack.c.l.b16 %v230_v8  ;;  %v617_v26 = vunpack.c.l.b16 %v574_v9  ;;  %v304_v27 = vrot.slane %v302_v6, 4  ;;  %v2835_v44 = vld [vmem:[%s2728_s6 + $0x1c] sm:$0x1]  ;;  %v2558_v63 = vld [vmem:[%s2728_s6 + $0xc] sm:$0xf0] }
  0x1e   : > { %819 = vmatpush.bf16.msra.mxu3 %v2565_v56  ;;  %v249_v28 = vshll.u32 %v184_v7, 16  ;;  %v347_v30 = vunpack.c.l.b16 %v244_v16  ;;  %v307_v33 = vrot.slane %v305_v13, 5  ;;  %v318_v34 = vrot.slane %v316_v17, 4  ;;  %v2577_v45 = vld [vmem:[%s3304_s1 + $0x138] sm:$0xff]  ;;  %v2562_v56 = vld [vmem:[%s3304_s1 + $0xc0] sm:$0xff]  ;;  %v2576_v1 = vld [vmem:[%s3304_s1 + $0x130] sm:$0xff] }
  0x1f   : > { %v321_v35 = vrot.slane %v319_v21, 5  ;;  %v248_v37 = vrot.slane %v246_v23, 4  ;;  %v260_v39 = vshrl.u32 %v185_v22, 16  ;;  %v263_v40 = vshll.u32 %v185_v22, 16  ;;  %v2597_v48 = vld [vmem:[%s3304_s1 + $0x1b8] sm:$0xff]  ;;  %v2596_v6 = vld [vmem:[%s3304_s1 + $0x1b0] sm:$0xff] }
  0x20   : > { %2642 = vmatpush.bf16.msra.mxu1 %v2544_v60  ;;  %415 = vmatpush.bf16.msra.mxu0 %v2544_v60  ;;  %v251_v38 = vrot.slane %v249_v28, 5  ;;  %v356_v41 = vpack.c.b16 %v351_v18, %v2804_v15  ;;  %v624_v46 = vpack.c.b16 %v617_v26, %v616_v20  ;;  %v311_v47 = vshll.u32 %v2822_v32, 16  ;;  %v2605_v2 = vld [vmem:[%s3304_s1 + $0x1f8] sm:$0xff]  ;;  %v542_v4 = vld [vmem:[%s2728_s6 + $0x10] sm:$0xe]  ;;  %v2595_v26 = vld [vmem:[%s3304_s1 + $0x1a8] sm:$0xff] }
  0x21   : > { %685 = vmatpush.bf16.msra.mxu2 %v2552_v0  ;;  %v262_v50 = vrot.slane %v260_v39, 4  ;;  %v265_v51 = vrot.slane %v263_v40, 5  ;;  %v354_v52 = vpack.c.b16 %v347_v30, %v346_v25  ;;  %v308_v53 = vor.u32 %v307_v33, %v304_v27  ;;  %v2540_v0 = vld [vmem:[%s3304_s1 + $0x30] sm:$0xff]  ;;  %v543_v5 = vld [vmem:[%s2728_s6 + $0x18] sm:$0xe]  ;;  %v2575_v25 = vld [vmem:[%s3304_s1 + $0x128] sm:$0xff] }
  0x22   : > { %820 = vmatpush.bf16.msra.mxu3 %v2564_v11  ;;  %v322_v54 = vor.u32 %v321_v35, %v318_v34  ;;  %v325_v55 = vshll.u32 %v2825_v36, 16  ;;  %v252_v58 = vor.u32 %v251_v38, %v248_v37  ;;  %v255_v59 = vshll.u32 %v2832_v43, 16  ;;  %v2199_v13 = vld [vmem:[%s2728_s6 + $0x8] sm:$0xf]  ;;  %v2201_v18 = vld [vmem:[%s2728_s6 + $0x10] sm:$0xf] }
  0x23   : > { %v266_v60 = vor.u32 %v265_v51, %v262_v50  ;;  %v269_v61 = vshll.u32 %v2835_v44, 16  ;;  %v313_v3 = vrot.slane %v311_v47, 5  ;;  %v309_v7 = vrot.slane %v308_v53, 4  ;;  %v2538_v37 = vld [vmem:[%s3304_s1 + $0x20] sm:$0xff]  ;;  %v2603_v40 = vld [vmem:[%s3304_s1 + $0x1e8] sm:$0xff] }
  0x24   : > { %2643 = vmatpush.bf16.msra.mxu1 %v2543_v14  ;;  %416 = vmatpush.bf16.msra.mxu0 %v2543_v14  ;;  %v323_v8 = vrot.slane %v322_v54, 4  ;;  %v327_v9 = vrot.slane %v325_v55, 5  ;;  %v2154_v11 = vor.u32 %v2558_v63, %v2153_v62  ;;  %v253_v14 = vrot.slane %v252_v58, 4  ;;  %v2907_v47 = vld [vmem:[%s2728_s6 + $0xc] sm:$0x1]  ;;  %v2537_v55 = vld [vmem:[%s3304_s1 + $0x18] sm:$0xff] }
  0x25   : > { %686 = vmatpush.bf16.msra.mxu2 %v2551_v19  ;;  %v257_v15 = vrot.slane %v255_v59, 5  ;;  %v267_v16 = vrot.slane %v266_v60, 4  ;;  %v271_v17 = vrot.slane %v269_v61, 5  ;;  %v2539_v19 = vld [vmem:[%s3304_s1 + $0x28] sm:$0xff]  ;;  %v2073_v20 = vrot.slane %v542_v4, 9  ;;  %v2573_v58 = vld [vmem:[%s3304_s1 + $0x118] sm:$0xff] }
  0x26   : > { %821 = vmatpush.bf16.msra.mxu3 %v2563_v31  ;;  %v577_v21 = vrot.slane %v2832_v43, 5  ;;  %v2074_v22 = vrot.slane %v543_v5, 9  ;;  %v581_v23 = vrot.slane %v2835_v44, 5  ;;  %v314_v27 = vsel %vm2766_vm4, %v309_v7, %v313_v3  ;;  %v2574_v43 = vld [vmem:[%s3304_s1 + $0x120] sm:$0xff]  ;;  %v2157_v62 = vld [vmem:[%s2728_s6 + $0x18] sm:$0xf] }
  0x27   : > { %v328_v28 = vsel %vm2766_vm4, %v323_v8, %v327_v9  ;;  %v872_v30 = vshll.u32 %v2199_v13, 16  ;;  %v258_v31 = vsel %vm2766_vm4, %v253_v14, %v257_v15  ;;  %v272_v33 = vsel %vm2766_vm4, %v267_v16, %v271_v17  ;;  %v2594_v44 = vld [vmem:[%s3304_s1 + $0x1a0] sm:$0xff]  ;;  %v545_v5 = vld [vmem:[%s2728_s6 + $0x28] sm:$0xe]  ;;  %v2572_v7 = vld [vmem:[%s3304_s1 + $0x110] sm:$0xff] }
  0x28   : > { %2644 = vmatpush.bf16.msra.mxu1 %v2542_v24  ;;  %417 = vmatpush.bf16.msra.mxu0 %v2542_v24  ;;  %v2604_v24 = vld [vmem:[%s3304_s1 + $0x1f0] sm:$0xff]  ;;  %v883_v34 = vshrl.u32 %v2201_v18, 16  ;;  %v886_v35 = vshll.u32 %v2201_v18, 16  ;;  %v578_v38 = vsel %vm2775_vm5, %v2073_v20, %v577_v21  ;;  %v582_v39 = vsel %vm2775_vm5, %v2074_v22, %v581_v23  ;;  %v2559_v63 = vld [vmem:[%s2728_s6 + $0x1c] sm:$0xf0]  ;;  %v2593_v17 = vld [vmem:[%s3304_s1 + $0x198] sm:$0xff] }
  0x29   : > { %687 = vmatpush.bf16.msra.mxu2 %v2550_v42  ;;  %v353_v42 = vunpack.c.l.b16 %v328_v28  ;;  %v874_v50 = vrot.slane %v872_v30, 5  ;;  %v618_v51 = vunpack.c.l.b16 %v578_v38  ;;  %v878_v59 = vshll.u32 %v2907_v47, 16  ;;  %v2203_v20 = vld [vmem:[%s2728_s6 + $0x18] sm:$0xf]  ;;  %v2602_v21 = vld [vmem:[%s3304_s1 + $0x1e0] sm:$0xff]  ;;  %v2592_v23 = vld [vmem:[%s3304_s1 + $0x190] sm:$0xff] }
  0x2a   : > { %822 = vmatpush.bf16.msra.mxu3 %v2562_v56  ;;  %v885_v53 = vrot.slane %v883_v34, 4  ;;  %v888_v54 = vrot.slane %v886_v35, 5  ;;  %v2913_v56 = vld [vmem:[%s2728_s6 + $0x14] sm:$0x1]  ;;  %v2158_v8 = vor.u32 %v2559_v63, %v2157_v62  ;;  %v585_v14 = vrot.slane %v2733_v10, 5  ;;  %v2535_v10 = vld [vmem:[%s3304_s1 + $0x8] sm:$0xff] }
  0x2b   : > { %428 = vmatmul.bf16.vlgmr.msra.gmra.mxu1 %v356_v41  ;;  %418 = vmatmul.bf16.vlgmr.msra.gmra.mxu0 %v354_v52  ;;  %v352_v41 = vunpack.c.l.b16 %v314_v27  ;;  %v619_v52 = vunpack.c.l.b16 %v582_v39  ;;  %v892_v4 = vshll.u32 %v2913_v56, 16  ;;  %v880_v9 = vrot.slane %v878_v59, 5  ;;  %v2205_v22 = vld [vmem:[%s2728_s6 + $0x20] sm:$0xf]  ;;  %v2530_v39 = vld [vmem:[%s2728_s6 + $0x4] sm:$0xf0] }
  0x2c   : > { %511 = vmatpush.bf16.msrb.mxu1 %v2541_v29  ;;  %1061 = vmatpush.bf16.msrb.mxu0 %v2577_v45  ;;  %v869_v29 = vshrl.u32 %v2199_v13, 16  ;;  %v348_v45 = vunpack.c.l.b16 %v258_v31  ;;  %v889_v3 = vor.u32 %v888_v54, %v885_v53  ;;  %v2076_v15 = vrot.slane %v545_v5, 9  ;;  %v2534_v34 = vld [vmem:[%s3304_s1] sm:$0xff]  ;;  %v2584_v53 = vld [vmem:[%s3304_s1 + $0x170] sm:$0xff]  ;;  %v547_v5 = vld [vmem:[%s2728_s6 + $0x38] sm:$0xe] }
  0x2d   : > { %1370 = vmatpush.bf16.msrb.mxu2 %v2597_v48  ;;  %823 = vmatmul.bf16.vlgmr.msra.gmra.mxu3 %v2154_v11  ;;  %v357_v60 = vpack.c.b16 %v353_v42, %v352_v41  ;;  %v589_v16 = vrot.slane %v2739_v12, 5  ;;  %v2571_v12 = vld [vmem:[%s3304_s1 + $0x108] sm:$0xff]  ;;  %v897_v28 = vshrl.u32 %v2203_v20, 16  ;;  %v900_v30 = vshll.u32 %v2203_v20, 16  ;;  %v2025_v35 = vld [vmem:[%s2728_s6] sm:$0xf] }
  0x2e   : > { %688 = vmatmul.bf16.vlgmr.msra.gmra.mxu2 %v624_v46  ;;  %1616 = vmatpush.bf16.msrb.mxu3 %v2605_v2  ;;  %v349_v46 = vunpack.c.l.b16 %v272_v33  ;;  %v871_v48 = vrot.slane %v869_v29, 4  ;;  %v625_v2 = vpack.c.b16 %v619_v52, %v618_v51  ;;  %v890_v18 = vrot.slane %v889_v3, 4  ;;  %v2570_v38 = vld [vmem:[%s3304_s1 + $0x100] sm:$0xff]  ;;  %v2560_v62 = vld [vmem:[%s2728_s6 + $0x2c] sm:$0xf0] }
  0x2f   : > { %v590_v27 = vsel %vm2775_vm5, %v2076_v15, %v589_v16  ;;  %v911_v31 = vshrl.u32 %v2205_v22, 16  ;;  %v914_v33 = vshll.u32 %v2205_v22, 16  ;;  %v2026_v54 = vor.u32 %v2530_v39, %v2025_v35  ;;  %v2207_v3 = vld [vmem:[%s2728_s6 + $0x28] sm:$0xf]  ;;  %v2590_v22 = vld [vmem:[%s3304_s1 + $0x180] sm:$0xff] }
  0x30   : > { %512 = vmatpush.bf16.msrb.mxu1 %v2540_v0  ;;  %1062 = vmatpush.bf16.msrb.mxu0 %v2576_v1  ;;  %v355_v61 = vpack.c.b16 %v349_v46, %v348_v45  ;;  %v875_v0 = vor.u32 %v874_v50, %v871_v48  ;;  %v544_v1 = vld [vmem:[%s2728_s6 + $0x20] sm:$0xe]  ;;  %v2977_v45 = vld [vmem:[%s2728_s6 + $0x1c] sm:$0x1]  ;;  %v2980_v46 = vld [vmem:[%s2728_s6 + $0x24] sm:$0x1] }
  0x31   : > { %1371 = vmatpush.bf16.msrb.mxu2 %v2596_v6  ;;  %v2536_v6 = vld [vmem:[%s3304_s1 + $0x10] sm:$0xff]  ;;  %v2075_v11 = vrot.slane %v544_v1, 9  ;;  %v899_v48 = vrot.slane %v897_v28, 4  ;;  %v902_v50 = vrot.slane %v900_v30, 5  ;;  %v913_v51 = vrot.slane %v911_v31, 4  ;;  %v3009_v15 = vld [vmem:[%s3304_s1 + $0x228] sm:$0xff] }
  0x32   : > { %1617 = vmatpush.bf16.msrb.mxu3 %v2604_v24  ;;  %v876_v13 = vrot.slane %v875_v0, 4  ;;  %v2601_v24 = vld [vmem:[%s3304_s1 + $0x1d8] sm:$0xff]  ;;  %v916_v52 = vrot.slane %v914_v33, 5  ;;  %v920_v59 = vshll.u32 %v2980_v46, 16  ;;  %v2993_v1 = vld [vmem:[%s3304_s1 + $0x230] sm:$0xff]  ;;  %v925_v16 = vshrl.u32 %v2207_v3, 16 }
  0x33   : > { %v903_v63 = vor.u32 %v902_v50, %v899_v48  ;;  %v593_v20 = vrot.slane %v2822_v32, 5  ;;  %v2599_v32 = vld [vmem:[%s3304_s1 + $0x1c8] sm:$0xff]  ;;  %v3033_v28 = vld [vmem:[%s3304_s1 + $0x220] sm:$0xff]  ;;  %v2581_v31 = vld [vmem:[%s3304_s1 + $0x158] sm:$0xff] }
  0x34   : > { %513 = vmatpush.bf16.msrb.mxu1 %v2539_v19  ;;  %1063 = vmatpush.bf16.msrb.mxu0 %v2575_v25  ;;  %v894_v19 = vrot.slane %v892_v4, 5  ;;  %v881_v25 = vsel %vm2766_vm4, %v876_v13, %v880_v9  ;;  %v917_v0 = vor.u32 %v916_v52, %v913_v51  ;;  %v546_v4 = vld [vmem:[%s2728_s6 + $0x30] sm:$0xe]  ;;  %v922_v9 = vrot.slane %v920_v59, 5  ;;  %v3043_v33 = vld [vmem:[%s2728_s6 + $0x2c] sm:$0x1] }
  0x35   : > { %1372 = vmatpush.bf16.msrb.mxu2 %v2595_v26  ;;  %v586_v26 = vsel %vm2775_vm5, %v2075_v11, %v585_v14  ;;  %v2209_v11 = vld [vmem:[%s2728_s6 + $0x30] sm:$0xf]  ;;  %v904_v13 = vrot.slane %v903_v63, 4  ;;  %v3046_v39 = vld [vmem:[%s2728_s6 + $0x34] sm:$0x1]  ;;  %v934_v52 = vshll.u32 %v3043_v33, 16 }
  0x36   : > { %1618 = vmatpush.bf16.msrb.mxu3 %v2603_v40  ;;  %v895_v29 = vsel %vm2766_vm4, %v890_v18, %v894_v19  ;;  %v997_v40 = vunpack.c.l.b16 %v881_v25  ;;  %v620_v42 = vunpack.c.l.b16 %v586_v26  ;;  %v918_v14 = vrot.slane %v917_v0, 4  ;;  %v2600_v18 = vld [vmem:[%s3304_s1 + $0x1d0] sm:$0xff]  ;;  %v2401_v51 = vld [vmem:[%s2728_s6 + $0x18] sm:$0xf]  ;;  %v2561_v63 = vld [vmem:[%s2728_s6 + $0x3c] sm:$0xf0] }
  0x37   : > { %v998_v41 = vunpack.c.l.b16 %v895_v29  ;;  %v2077_v19 = vrot.slane %v546_v4, 9  ;;  %v927_v26 = vrot.slane %v925_v16, 4  ;;  %v948_v59 = vshll.u32 %v3046_v39, 16  ;;  %v2211_v0 = vld [vmem:[%s2728_s6 + $0x38] sm:$0xf] }
  0x38   : > { %514 = vmatpush.bf16.msrb.mxu1 %v2538_v37  ;;  %1064 = vmatpush.bf16.msrb.mxu0 %v2574_v43  ;;  %v2585_v37 = vld [vmem:[%s3304_s1 + $0x178] sm:$0xff]  ;;  %v621_v43 = vunpack.c.l.b16 %v590_v27  ;;  %v923_v25 = vsel %vm2766_vm4, %v918_v14, %v922_v9 }
  0x39   : > { %1373 = vmatpush.bf16.msrb.mxu2 %v2594_v44  ;;  %v2974_v44 = vld [vmem:[%s3304_s1 + $0x238] sm:$0xff]  ;;  %v594_v29 = vsel %vm2775_vm5, %v2077_v19, %v593_v20  ;;  %v950_v16 = vrot.slane %v948_v59, 5  ;;  %v2598_v20 = vld [vmem:[%s3304_s1 + $0x1c0] sm:$0xff] }
  0x3a   : > { %1619 = vmatpush.bf16.msrb.mxu3 %v2602_v21  ;;  %v2078_v21 = vrot.slane %v547_v5, 9  ;;  %v3064_v5 = vld [vmem:[%s2728_s6 + $0x14] sm:$0x1]  ;;  %v3076_v19 = vld [vmem:[%s3304_s1 + $0x218] sm:$0xff] }
  0x3b   : > { %433 = vmatmul.bf16.gmra.mxu1 %v357_v60  ;;  %423 = vmatmul.bf16.gmra.mxu0 %v355_v61  ;;  %v626_v60 = vpack.c.b16 %v621_v43, %v620_v42  ;;  %v2161_v61 = vld [vmem:[%s2728_s6 + $0x28] sm:$0xf]  ;;  %v2531_v42 = vld [vmem:[%s2728_s6 + $0x14] sm:$0xf0]  ;;  %v622_v43 = vunpack.c.l.b16 %v594_v29 }
  0x3c   : > { %515 = vmatpush.bf16.msrb.mxu1 %v2537_v55  ;;  %1065 = vmatpush.bf16.msrb.mxu0 %v2573_v58  ;;  %v1005_v55 = vpack.c.b16 %v998_v41, %v997_v40  ;;  %v906_v58 = vshll.u32 %v2977_v45, 16  ;;  %v2399_v40 = vld [vmem:[%s2728_s6 + $0x10] sm:$0xf]  ;;  %v2263_v29 = vld [vmem:[%s2728_s6 + $0x8] sm:$0xe] }
  0x3d   : > { %1374 = vmatpush.bf16.msrb.mxu2 %v2593_v17  ;;  %828 = vmatmul.bf16.gmra.mxu3 %v2158_v8  ;;  %v928_v17 = vshll.u32 %v2207_v3, 16  ;;  %v2029_v41 = vld [vmem:[%s2728_s6 + $0x10] sm:$0xf] }
  0x3e   : > { %693 = vmatmul.bf16.gmra.mxu2 %v625_v2  ;;  %1620 = vmatpush.bf16.msrb.mxu3 %v2601_v24  ;;  %v2583_v2 = vld [vmem:[%s3304_s1 + $0x168] sm:$0xff]  ;;  %v908_v8 = vrot.slane %v906_v58, 5  ;;  %v942_v24 = vshll.u32 %v2209_v11, 16 }
  0x3f   : > { %v930_v27 = vrot.slane %v928_v17, 5  ;;  %v2213_v17 = vld [vmem:[%s2728_s6 + $0x40] sm:$0xf] }
  0x40   : > { %516 = vmatpush.bf16.msrb.mxu1 %v2536_v6  ;;  %1066 = vmatpush.bf16.msrb.mxu0 %v2572_v7  ;;  %v2591_v6 = vld [vmem:[%s3304_s1 + $0x188] sm:$0xff]  ;;  %v2162_v7 = vor.u32 %v2560_v62, %v2161_v61  ;;  %v944_v35 = vrot.slane %v942_v24, 5  ;;  %v2030_v61 = vor.u32 %v2531_v42, %v2029_v41  ;;  %v3102_v42 = vld [vmem:[%s2728_s6 + $0x3c] sm:$0x1] }
  0x41   : > { %1375 = vmatpush.bf16.msrb.mxu2 %v2592_v23  ;;  %v939_v23 = vshrl.u32 %v2209_v11, 16  ;;  %v931_v50 = vor.u32 %v930_v27, %v927_v26  ;;  %v3089_v27 = vld [vmem:[%s3304_s1 + $0x210] sm:$0xff] }
  0x42   : > { %1621 = vmatpush.bf16.msrb.mxu3 %v2600_v18  ;;  %v953_v18 = vshrl.u32 %v2211_v0, 16 }
  0x43   : > { %v932_v4 = vrot.slane %v931_v50, 4 }
  0x44   : > { %517 = vmatpush.bf16.msrb.mxu1 %v2535_v10  ;;  %1067 = vmatpush.bf16.msrb.mxu0 %v2571_v12  ;;  %v597_v10 = vrot.slane %v2825_v36, 5  ;;  %v2582_v12 = vld [vmem:[%s3304_s1 + $0x160] sm:$0xff]  ;;  %v909_v36 = vsel %vm2766_vm4, %v904_v13, %v908_v8 }
  0x45   : > { %1376 = vmatpush.bf16.msrb.mxu2 %v2591_v6  ;;  %v936_v6 = vrot.slane %v934_v52, 5 }
  0x46   : > { %v598_v30 = vsel %vm2775_vm5, %v2078_v21, %v597_v10  ;;  %1622 = vmatpush.bf16.msrb.mxu3 %v2599_v32  ;;  %v956_v21 = vshll.u32 %v2211_v0, 16  ;;  %v1128_v32 = vrot.slane %v2913_v56, 5  ;;  %v955_v56 = vrot.slane %v953_v18, 4 }
  0x47   : > { %v623_v48 = vunpack.c.l.b16 %v598_v30 }
  0x48   : > { %518 = vmatpush.bf16.msrb.mxu1 %v2534_v34  ;;  %1068 = vmatpush.bf16.msrb.mxu0 %v2570_v38  ;;  %v941_v34 = vrot.slane %v939_v23, 4  ;;  %v1000_v38 = vunpack.c.l.b16 %v923_v25  ;;  %v1124_v23 = vrot.slane %v2907_v47, 5  ;;  %v970_v25 = vshll.u32 %v2213_v17, 16 }
  0x49   : > { %1377 = vmatpush.bf16.msrb.mxu2 %v2590_v22  ;;  %v627_v3 = vpack.c.b16 %v623_v48, %v622_v43  ;;  %v1433_v22 = vshll.u32 %v3064_v5, 16  ;;  %v937_v47 = vsel %vm2766_vm4, %v932_v4, %v936_v6  ;;  %v2353_v4 = vld [vmem:[%s2728_s6 + $0x10] sm:$0xf] }
  0x4a   : > { %v945_v58 = vor.u32 %v944_v35, %v941_v34  ;;  %1623 = vmatpush.bf16.msrb.mxu3 %v2598_v20  ;;  %v2264_v34 = vld [vmem:[%s2728_s6 + $0x10] sm:$0xe]  ;;  %v2271_v35 = vrot.slane %v2263_v29, 9  ;;  %v972_v52 = vrot.slane %v970_v25, 5 }
  0x4b   : > { %519 = vmatmul.bf16.vlgmr.msrb.gmra.mxu1 %v2026_v54  ;;  %1069 = vmatmul.bf16.vlgmr.msrb.gmra.mxu0 %v1005_v55  ;;  %v1427_v54 = vshll.u32 %v2399_v40, 16  ;;  %v1438_v55 = vshrl.u32 %v2401_v51, 16  ;;  %v2272_v41 = vrot.slane %v2264_v34, 9  ;;  %v2606_v34 = vld [vmem:[%s3304_s1 + $0x200] sm:$0xff] }
  0x4c   : > { %1235 = vmatpush.bf16.msra.mxu1 %v2585_v37  ;;  %1790 = vmatpush.bf16.msra.mxu0 %v2974_v44  ;;  %v999_v37 = vunpack.c.l.b16 %v909_v36  ;;  %v946_v14 = vrot.slane %v945_v58, 4  ;;  %v967_v36 = vshrl.u32 %v2213_v17, 16  ;;  %v1125_v50 = vsel %vm2775_vm5, %v2271_v35, %v1124_v23  ;;  %v3135_v23 = vld [vmem:[%s2728_s6 + $0x2c] sm:$0x1] }
  0x4d   : > { %833 = vmatmul.bf16.gmra.mxu3 %v2162_v7  ;;  %2645 = vmatpush.bf16.msra.mxu2 %v2974_v44  ;;  %v2165_v44 = vld [vmem:[%s2728_s6 + $0x38] sm:$0xf]  ;;  %v3067_v7 = vld [vmem:[%s2728_s6 + $0x1c] sm:$0x1]  ;;  %v1429_v9 = vrot.slane %v1427_v54, 5  ;;  %v1440_v11 = vrot.slane %v1438_v55, 4  ;;  %v1171_v54 = vunpack.c.l.b16 %v1125_v50  ;;  %v1001_v58 = vunpack.c.l.b16 %v937_v47 }
  0x4e   : > { %698 = vmatmul.bf16.gmra.mxu2 %v626_v60  ;;  %v2580_v60 = vld [vmem:[%s3304_s1 + $0x150] sm:$0xff]  ;;  %v1006_v62 = vpack.c.b16 %v1000_v38, %v999_v37  ;;  %v2166_v13 = vor.u32 %v2561_v63, %v2165_v44  ;;  %v1447_v24 = vshll.u32 %v3067_v7, 16  ;;  %v951_v30 = vsel %vm2766_vm4, %v946_v14, %v950_v16  ;;  %v2033_v55 = vld [vmem:[%s2728_s6 + $0x20] sm:$0xf]  ;;  %v2532_v44 = vld [vmem:[%s2728_s6 + $0x24] sm:$0xf0] }
  0x4f   : > { %v958_v37 = vrot.slane %v956_v21, 5  ;;  %v1002_v59 = vunpack.c.l.b16 %v951_v30  ;;  %v962_v63 = vshll.u32 %v3102_v42, 16  ;;  %v2034_v18 = vor.u32 %v2532_v44, %v2033_v55  ;;  %v2037_v55 = vld [vmem:[%s2728_s6 + $0x30] sm:$0xf] }
  0x50   : > { %1236 = vmatpush.bf16.msra.mxu1 %v2584_v53  ;;  %1791 = vmatpush.bf16.msra.mxu0 %v2993_v1  ;;  %v1424_v53 = vshrl.u32 %v2399_v40, 16  ;;  %v1435_v40 = vrot.slane %v1433_v22, 5  ;;  %v1449_v48 = vrot.slane %v1447_v24, 5 }
  0x51   : > { %2646 = vmatpush.bf16.msra.mxu2 %v2993_v1  ;;  %v2579_v1 = vld [vmem:[%s3304_s1 + $0x148] sm:$0xff] }
  0x52   : > { %v1426_v8 = vrot.slane %v1424_v53, 4  ;;  %v1129_v53 = vsel %vm2775_vm5, %v2272_v41, %v1128_v32 }
  0x54   : > { %1237 = vmatpush.bf16.msra.mxu1 %v2583_v2  ;;  %1792 = vmatpush.bf16.msra.mxu0 %v3009_v15  ;;  %v1441_v2 = vshll.u32 %v2401_v51, 16  ;;  %v1430_v10 = vor.u32 %v1429_v9, %v1426_v8  ;;  %v969_v51 = vrot.slane %v967_v36, 4 }
  0x55   : > { %2647 = vmatpush.bf16.msra.mxu2 %v3009_v15  ;;  %v2607_v15 = vld [vmem:[%s3304_s1 + $0x208] sm:$0xff] }
  0x56   : > { %v1431_v38 = vrot.slane %v1430_v10, 4 }
  0x58   : > { %1238 = vmatpush.bf16.msra.mxu1 %v2582_v12  ;;  %1793 = vmatpush.bf16.msra.mxu0 %v3033_v28  ;;  %v1443_v12 = vrot.slane %v1441_v2, 5  ;;  %v1436_v0 = vsel %vm2766_vm4, %v1431_v38, %v1435_v40  ;;  %v2403_v2 = vld [vmem:[%s2728_s6 + $0x20] sm:$0xf] }
  0x59   : > { %2648 = vmatpush.bf16.msra.mxu2 %v3033_v28  ;;  %v1452_v9 = vshrl.u32 %v2403_v2, 16  ;;  %v973_v28 = vor.u32 %v972_v52, %v969_v51  ;;  %v1552_v10 = vunpack.c.l.b16 %v1436_v0  ;;  %v2266_v38 = vld [vmem:[%s2728_s6 + $0x20] sm:$0xe]  ;;  %v1132_v52 = vrot.slane %v2977_v45, 5 }
  0x5a   : > { %v1444_v26 = vor.u32 %v1443_v12, %v1440_v11  ;;  %v1455_v11 = vshll.u32 %v2403_v2, 16  ;;  %v3132_v12 = vld [vmem:[%s2728_s6 + $0x24] sm:$0x1] }
  0x5b   : > { %524 = vmatmul.bf16.gmra.mxu1 %v2030_v61  ;;  %1074 = vmatmul.bf16.gmra.mxu0 %v1006_v62  ;;  %v1172_v61 = vunpack.c.l.b16 %v1129_v53  ;;  %v959_v62 = vor.u32 %v958_v37, %v955_v56  ;;  %v1454_v20 = vrot.slane %v1452_v9, 4  ;;  %v974_v29 = vrot.slane %v973_v28, 4  ;;  %v2265_v37 = vld [vmem:[%s2728_s6 + $0x18] sm:$0xe] }
  0x5c   : > { %1239 = vmatpush.bf16.msra.mxu1 %v2581_v31  ;;  %1794 = vmatpush.bf16.msra.mxu0 %v3076_v19  ;;  %v2578_v31 = vld [vmem:[%s3304_s1 + $0x140] sm:$0xff]  ;;  %v1445_v43 = vrot.slane %v1444_v26, 4  ;;  %v1457_v21 = vrot.slane %v1455_v11, 5  ;;  %v964_v26 = vrot.slane %v962_v63, 5  ;;  %v1461_v56 = vshll.u32 %v3132_v12, 16 }
  0x5d   : > { %838 = vmatmul.bf16.gmra.mxu3 %v2166_v13  ;;  %v3126_v8 = vpack.c.b16 %v1172_v61, %v1171_v54  ;;  %v2586_v13 = vld [vmem:[%s2728_s6 + $0x14] sm:$0xf0]  ;;  %2649 = vmatpush.bf16.msra.mxu2 %v3076_v19  ;;  %v960_v25 = vrot.slane %v959_v62, 4  ;;  %v1475_v19 = vshll.u32 %v3135_v23, 16  ;;  %v2273_v50 = vrot.slane %v2265_v37, 9 }
  0x5e   : > { %703 = vmatmul.bf16.gmra.mxu2 %v627_v3  ;;  %v2405_v3 = vld [vmem:[%s2728_s6 + $0x28] sm:$0xf]  ;;  %v1450_v6 = vsel %vm2766_vm4, %v1445_v43, %v1449_v48  ;;  %v2354_v36 = vor.u32 %v2586_v13, %v2353_v4  ;;  %v1458_v30 = vor.u32 %v1457_v21, %v1454_v20  ;;  %v1463_v43 = vrot.slane %v1461_v56, 5  ;;  %v2463_v63 = vld [vmem:[%s2728_s6 + $0x10] sm:$0xe] }
  0x5f   : > { %v1466_v16 = vshrl.u32 %v2405_v3, 16  ;;  %v1469_v17 = vshll.u32 %v2405_v3, 16  ;;  %v1553_v22 = vunpack.c.l.b16 %v1450_v6  ;;  %v965_v40 = vsel %vm2766_vm4, %v960_v25, %v964_v26  ;;  %v2464_v3 = vld [vmem:[%s2728_s6 + $0x18] sm:$0xe]  ;;  %v2407_v4 = vld [vmem:[%s2728_s6 + $0x30] sm:$0xf] }
  0x60   : > { %1240 = vmatpush.bf16.msra.mxu1 %v2580_v60  ;;  %1795 = vmatpush.bf16.msra.mxu0 %v3089_v27  ;;  %v3115_v60 = vld [vmem:[%s2728_s6 + $0x44] sm:$0x1]  ;;  %v1477_v48 = vrot.slane %v1475_v19, 5  ;;  %v2274_v53 = vrot.slane %v2266_v38, 9  ;;  %v1136_v54 = vrot.slane %v2980_v46, 5  ;;  %v1003_v44 = vunpack.c.l.b16 %v965_v40 }
  0x61   : > { %v976_v14 = vshll.u32 %v3115_v60, 16  ;;  %v1468_v24 = vrot.slane %v1466_v16, 4  ;;  %v1471_v32 = vrot.slane %v1469_v17, 5  ;;  %2650 = vmatpush.bf16.msra.mxu2 %v3089_v27  ;;  %v1459_v27 = vrot.slane %v1458_v30, 4  ;;  %v2409_v6 = vld [vmem:[%s2728_s6 + $0x38] sm:$0xf] }
  0x62   : > { %v1137_v61 = vsel %vm2775_vm5, %v2274_v53, %v1136_v54  ;;  %v1679_v62 = vrot.slane %v3064_v5, 5  ;;  %v1480_v11 = vshrl.u32 %v2407_v4, 16  ;;  %v1483_v13 = vshll.u32 %v2407_v4, 16  ;;  %v2357_v17 = vld [vmem:[%s2728_s6 + $0x20] sm:$0xf] }
  0x63   : > { %v978_v47 = vrot.slane %v976_v14, 5  ;;  %v1472_v35 = vor.u32 %v1471_v32, %v1468_v24  ;;  %v1174_v0 = vunpack.c.l.b16 %v1137_v61  ;;  %v1464_v46 = vsel %vm2766_vm4, %v1459_v27, %v1463_v43  ;;  %v2267_v53 = vld [vmem:[%s2728_s6 + $0x28] sm:$0xe]  ;;  %v2268_v54 = vld [vmem:[%s2728_s6 + $0x30] sm:$0xe] }
  0x64   : > { %1241 = vmatpush.bf16.msra.mxu1 %v2579_v1  ;;  %1796 = vmatpush.bf16.msra.mxu0 %v2607_v15  ;;  %v1007_v1 = vpack.c.b16 %v1002_v59, %v1001_v58  ;;  %v1133_v59 = vsel %vm2775_vm5, %v2273_v50, %v1132_v52  ;;  %v1494_v5 = vshrl.u32 %v2409_v6, 16  ;;  %v1683_v16 = vrot.slane %v3067_v7, 5  ;;  %v2361_v50 = vld [vmem:[%s2728_s6 + $0x30] sm:$0xf]  ;;  %v2465_v4 = vld [vmem:[%s2728_s6 + $0x20] sm:$0xe] }
  0x65   : > { %v979_v41 = vsel %vm2766_vm4, %v974_v29, %v978_v47  ;;  %2651 = vmatpush.bf16.msra.mxu2 %v2607_v15  ;;  %v1473_v51 = vrot.slane %v1472_v35, 4  ;;  %v2533_v15 = vld [vmem:[%s2728_s6 + $0x34] sm:$0xf0]  ;;  %v1173_v45 = vunpack.c.l.b16 %v1133_v59  ;;  %v1554_v20 = vunpack.c.l.b16 %v1464_v46  ;;  %v3172_v29 = vld [vmem:[%s2728_s6 + $0x34] sm:$0x1] }
  0x66   : > { %v1004_v58 = vunpack.c.l.b16 %v979_v41  ;;  %v2038_v28 = vor.u32 %v2533_v15, %v2037_v55  ;;  %v1482_v24 = vrot.slane %v1480_v11, 4  ;;  %v1485_v32 = vrot.slane %v1483_v13, 5  ;;  %v3175_v47 = vld [vmem:[%s2728_s6 + $0x3c] sm:$0x1]  ;;  %v2411_v55 = vld [vmem:[%s2728_s6 + $0x40] sm:$0xf] }
  0x67   : > { %v1478_v2 = vsel %vm2766_vm4, %v1473_v51, %v1477_v48  ;;  %v3166_v9 = vpack.c.b16 %v1174_v0, %v1173_v45  ;;  %v1503_v35 = vshll.u32 %v3175_v47, 16  ;;  %v2276_v59 = vrot.slane %v2268_v54, 9  ;;  %v2413_v15 = vld [vmem:[%s2728_s6 + $0x48] sm:$0xf] }
  0x68   : > { %1242 = vmatpush.bf16.msra.mxu1 %v2578_v31  ;;  %v1560_v31 = vpack.c.b16 %v1553_v22, %v1552_v10  ;;  %1797 = vmatpush.bf16.msra.mxu0 %v2606_v34  ;;  %v1008_v14 = vpack.c.b16 %v1004_v58, %v1003_v44  ;;  %v1555_v21 = vunpack.c.l.b16 %v1478_v2  ;;  %v2471_v10 = vrot.slane %v2463_v63, 9  ;;  %v2466_v11 = vld [vmem:[%s2728_s6 + $0x28] sm:$0xe] }
  0x69   : > { %2652 = vmatpush.bf16.msra.mxu2 %v2606_v34  ;;  %v2472_v22 = vrot.slane %v2464_v3, 9  ;;  %v1486_v19 = vor.u32 %v1485_v32, %v1482_v24  ;;  %v1505_v43 = vrot.slane %v1503_v35, 5  ;;  %v2275_v44 = vrot.slane %v2267_v53, 9 }
  0x6a   : > { %v1561_v30 = vpack.c.b16 %v1555_v21, %v1554_v20  ;;  %v1680_v7 = vsel %vm2775_vm5, %v2471_v10, %v1679_v62  ;;  %v1140_v58 = vrot.slane %v3043_v33, 5  ;;  %v1144_v61 = vrot.slane %v3046_v39, 5  ;;  %v2588_v62 = vld [vmem:[%s2728_s6 + $0x34] sm:$0xf0] }
  0x6b   : > { %529 = vmatmul.bf16.gmra.mxu1 %v2034_v18  ;;  %1079 = vmatmul.bf16.gmra.mxu0 %v1007_v1  ;;  %v2587_v18 = vld [vmem:[%s2728_s6 + $0x24] sm:$0xf0]  ;;  %v1497_v1 = vshll.u32 %v2409_v6, 16  ;;  %v1684_v56 = vsel %vm2775_vm5, %v2472_v22, %v1683_v16  ;;  %v1726_v37 = vunpack.c.l.b16 %v1680_v7  ;;  %v1487_v40 = vrot.slane %v1486_v19, 4  ;;  %v3202_v16 = vld [vmem:[%s2728_s6 + $0x44] sm:$0x1] }
  0x6c   : > { %v2358_v26 = vor.u32 %v2587_v18, %v2357_v17  ;;  %v1727_v38 = vunpack.c.l.b16 %v1684_v56  ;;  %v1508_v63 = vshrl.u32 %v2411_v55, 16  ;;  %v1511_v45 = vshll.u32 %v2411_v55, 16  ;;  %v3205_v17 = vld [vmem:[%s2728_s6 + $0x4c] sm:$0x1] }
  0x6d   : > { %1624 = vmatmul.bf16.vlgmr.msrb.gmra.mxu3 %v1560_v31  ;;  %v1499_v25 = vrot.slane %v1497_v1, 5  ;;  %v1489_v31 = vshll.u32 %v3172_v29, 16  ;;  %v1522_v0 = vshrl.u32 %v2413_v15, 16  ;;  %v1525_v46 = vshll.u32 %v2413_v15, 16 }
  0x6e   : > { %1378 = vmatmul.bf16.vlgmr.msrb.gmra.mxu2 %v2354_v36  ;;  %v1496_v36 = vrot.slane %v1494_v5, 4  ;;  %v1734_v48 = vpack.c.b16 %v1727_v38, %v1726_v37  ;;  %v1141_v6 = vsel %vm2775_vm5, %v2275_v44, %v1140_v58  ;;  %v1145_v33 = vsel %vm2775_vm5, %v2276_v59, %v1144_v61  ;;  %v2269_v38 = vld [vmem:[%s2728_s6 + $0x38] sm:$0xe] }
  0x6f   : > { %v1491_v41 = vrot.slane %v1489_v31, 5  ;;  %v1175_v13 = vunpack.c.l.b16 %v1141_v6  ;;  %v1176_v39 = vunpack.c.l.b16 %v1145_v33  ;;  %v1510_v5 = vrot.slane %v1508_v63, 4  ;;  %v2468_v61 = vld [vmem:[%s2728_s6 + $0x38] sm:$0xe]  ;;  %v2470_v63 = vld [vmem:[%s2728_s6 + $0x48] sm:$0xe] }
  0x70   : > { %v1500_v34 = vor.u32 %v1499_v25, %v1496_v36  ;;  %v1524_v18 = vrot.slane %v1522_v0, 4  ;;  %v1527_v1 = vrot.slane %v1525_v46, 5  ;;  %v2473_v20 = vrot.slane %v2465_v4, 9 }
  0x71   : > { %v1492_v51 = vsel %vm2766_vm4, %v1487_v40, %v1491_v41  ;;  %v3207_v21 = vpack.c.b16 %v1176_v39, %v1175_v13  ;;  %v1687_v22 = vrot.slane %v3132_v12, 5  ;;  %v2474_v24 = vrot.slane %v2466_v11, 9  ;;  %v2270_v40 = vld [vmem:[%s2728_s6 + $0x40] sm:$0xe] }
  0x72   : > { %v1501_v27 = vrot.slane %v1500_v34, 4  ;;  %v1556_v2 = vunpack.c.l.b16 %v1492_v51  ;;  %v1691_v32 = vrot.slane %v3135_v23, 5  ;;  %v1517_v25 = vshll.u32 %v3202_v16, 16  ;;  %v2589_v51 = vld [vmem:[%s2728_s6 + $0x44] sm:$0xf0] }
  0x73   : > { %v1688_v7 = vsel %vm2775_vm5, %v2473_v20, %v1687_v22  ;;  %v2277_v41 = vrot.slane %v2269_v38, 9  ;;  %v1695_v0 = vrot.slane %v3172_v29, 5  ;;  %v2476_v46 = vrot.slane %v2468_v61, 9 }
  0x74   : > { %v1506_v52 = vsel %vm2766_vm4, %v1501_v27, %v1505_v43  ;;  %v1692_v12 = vsel %vm2775_vm5, %v2474_v24, %v1691_v32  ;;  %v1519_v23 = vrot.slane %v1517_v25, 5  ;;  %v1728_v31 = vunpack.c.l.b16 %v1688_v7 }
  0x75   : > { %v1557_v3 = vunpack.c.l.b16 %v1506_v52  ;;  %v1729_v34 = vunpack.c.l.b16 %v1692_v12  ;;  %v1148_v27 = vrot.slane %v3102_v42, 5  ;;  %v2278_v43 = vrot.slane %v2270_v40, 9  ;;  %v2467_v42 = vld [vmem:[%s2728_s6 + $0x30] sm:$0xe] }
  0x76   : > { %v1707_v4 = vrot.slane %v3205_v17, 5  ;;  %v2478_v33 = vrot.slane %v2470_v63, 9 }
  0x77   : > { %v1562_v10 = vpack.c.b16 %v1557_v3, %v1556_v2  ;;  %v1735_v52 = vpack.c.b16 %v1729_v34, %v1728_v31  ;;  %v1149_v53 = vsel %vm2775_vm5, %v2277_v41, %v1148_v27  ;;  %v1699_v2 = vrot.slane %v3175_v47, 5 }
  0x78   : > { %v1177_v44 = vunpack.c.l.b16 %v1149_v53  ;;  %v1703_v3 = vrot.slane %v3202_v16, 5  ;;  %v1708_v29 = vsel %vm2775_vm5, %v2478_v33, %v1707_v4 }
  0x7b   : > { %534 = vmatmul.bf16.gmra.mxu1 %v2038_v28  ;;  %1084 = vmatmul.bf16.gmra.mxu0 %v1008_v14  ;;  %v1513_v28 = vrot.slane %v1511_v45, 5  ;;  %v2362_v14 = vor.u32 %v2588_v62, %v2361_v50  ;;  %v2365_v50 = vld [vmem:[%s2728_s6 + $0x40] sm:$0xf]  ;;  %v2475_v45 = vrot.slane %v2467_v42, 9 }
  0x7c   : > { %v2366_v59 = vor.u32 %v2589_v51, %v2365_v50  ;;  %v2469_v62 = vld [vmem:[%s2728_s6 + $0x40] sm:$0xe]  ;;  %s2529_s6 = sshll.u32 %s3312_s13, 5 }
  0x7d   : > { %1629 = vmatmul.bf16.gmra.mxu3 %v1561_v30  ;;  %v1514_v36 = vor.u32 %v1513_v28, %v1510_v5  ;;  %v1531_v30 = vshll.u32 %v3205_v17, 16  ;;  %v2477_v6 = vrot.slane %v2469_v62, 9  ;;  %v1696_v11 = vsel %vm2775_vm5, %v2475_v45, %v1695_v0  ;;  %s3279_s19 = scalar_lea.vmem %s3305_s2, %s2529_s6 }
  0x7e   : > { %1383 = vmatmul.bf16.gmra.mxu2 %v2358_v26  ;;  %v1528_v26 = vor.u32 %v1527_v1, %v1524_v18  ;;  %v1730_v47 = vunpack.c.l.b16 %v1696_v11  ;;  %v1733_v28 = vunpack.c.l.b16 %v1708_v29 }
  0x7f   : > { %v1533_v19 = vrot.slane %v1531_v30, 5  ;;  %v1704_v13 = vsel %vm2775_vm5, %v2477_v6, %v1703_v3 }
  0x80   : > { %v1529_v56 = vrot.slane %v1528_v26, 4  ;;  %v1732_v5 = vunpack.c.l.b16 %v1704_v13 }
  0x82   : > { %v1534_v37 = vsel %vm2766_vm4, %v1529_v56, %v1533_v19  ;;  %v1737_v18 = vpack.c.b16 %v1733_v28, %v1732_v5 }
  0x83   : > { %v1559_v55 = vunpack.c.l.b16 %v1534_v37 }
  0x8b   : > { %1243 = vmatmul.bf16.vlgmr.msra.gmra.mxu1 %v3126_v8  ;;  %1798 = vmatmul.bf16.vlgmr.msra.gmra.mxu0 %v1734_v48  ;;  %v1515_v8 = vrot.slane %v1514_v36, 4  ;;  %v1152_v48 = vrot.slane %v3115_v60, 5 }
  0x8d   : > { %1634 = vmatmul.bf16.gmra.mxu3 %v1562_v10  ;;  %v1520_v35 = vsel %vm2766_vm4, %v1515_v8, %v1519_v23  ;;  %v1153_v49 = vsel %vm2775_vm5, %v2278_v43, %v1152_v48 }
  0x8e   : > { %1388 = vmatmul.bf16.gmra.mxu2 %v2362_v14  ;;  %v1558_v54 = vunpack.c.l.b16 %v1520_v35  ;;  %v1178_v58 = vunpack.c.l.b16 %v1153_v49 }
  0x90   : > { %v1182_v15 = vpack.c.b16 %v1178_v58, %v1177_v44  ;;  %v1563_v60 = vpack.c.b16 %v1559_v55, %v1558_v54 }
  0x9b   : > { %1248 = vmatmul.bf16.gmra.mxu1 %v3166_v9  ;;  %1803 = vmatmul.bf16.gmra.mxu0 %v1735_v52  ;;  %v1700_v9 = vsel %vm2775_vm5, %v2476_v46, %v1699_v2 }
  0x9c   : > { %v1731_v39 = vunpack.c.l.b16 %v1700_v9 }
  0x9d   : > { %1639 = vmatmul.bf16.gmra.mxu3 %v1563_v60 }
  0x9e   : > { %1393 = vmatmul.bf16.gmra.mxu2 %v2366_v59  ;;  %v1736_v14 = vpack.c.b16 %v1731_v39, %v1730_v47 }
  0xa8   : > { %v429_v16 = vpop.f32.mrf.mxu1  ;;  %v419_v17 = vpop.f32.mrf.mxu0 }
  0xab   : > { %1253 = vmatmul.bf16.gmra.mxu1 %v3207_v21  ;;  %1808 = vmatmul.bf16.gmra.mxu0 %v1736_v14 }
  0xae   : > { %1813 = vmatmul.bf16.vlgmr.msra.gmra.mxu2 %v1737_v18 }
  0xb0   : > { %v431_v20 = vpop.f32.mrf.mxu1  ;;  %v421_v10 = vpop.f32.mrf.mxu0 }
  0xb1   : > { %v689_v1 = vpop.f32.mrf.mxu2  ;;  %v824_v22 = vpop.f32.mrf.mxu3 }
  0xb8   : > { %v434_v32 = vpop.f32.mrf.mxu1  ;;  %v424_v57 = vpop.f32.mrf.mxu0 }
  0xb9   : > { %v691_v24 = vpop.f32.mrf.mxu2  ;;  %v3250_v36 = vpop.f32.mrf.mxu3 }
  0xbb   : > { %1258 = vmatmul.bf16.gmra.mxu1 %v1182_v15 }
  0xc0   : > { %v436_v26 = vpop.f32.mrf.mxu1  ;;  %v426_v30 = vpop.f32.mrf.mxu0 }
  0xc1   : > { %v694_v25 = vpop.f32.mrf.mxu2  ;;  %v829_v7 = vpop.f32.mrf.mxu3 }
  0xc8   : > { %v520_v8 = vpop.f32.mrf.mxu1  ;;  %v1070_v23 = vpop.f32.mrf.mxu0 }
  0xc9   : > { %v696_v12 = vpop.f32.mrf.mxu2  ;;  %v521_v21 = vadd.f32 %v520_v8, %v419_v17  ;;  %v3252_v19 = vpop.f32.mrf.mxu3 }
  0xcb   : > { %v709_v56 = vadd.f32 %v689_v1, %v521_v21 }
  0xcd   : > { %v844_v31 = vadd.f32 %v824_v22, %v709_v56 }
  0xcf   : > { %v1090_v34 = vadd.f32 %v1070_v23, %v844_v31 }
  0xd0   : > { %v522_v37 = vpop.f32.mrf.mxu1  ;;  %v1072_v38 = vpop.f32.mrf.mxu0 }
  0xd1   : > { %v699_v35 = vpop.f32.mrf.mxu2  ;;  %v523_v40 = vadd.f32 %v522_v37, %v421_v10  ;;  %v834_v27 = vpop.f32.mrf.mxu3 }
  0xd3   : > { %v710_v41 = vadd.f32 %v691_v24, %v523_v40 }
  0xd8   : > { %v525_v48 = vpop.f32.mrf.mxu1  ;;  %v1075_v50 = vpop.f32.mrf.mxu0 }
  0xd9   : > { %v701_v43 = vpop.f32.mrf.mxu2  ;;  %v526_v51 = vadd.f32 %v525_v48, %v424_v57  ;;  %v3254_v55 = vpop.f32.mrf.mxu3  ;;  %v845_v57 = vadd.f32 %v3250_v36, %v710_v41 }
  0xdb   : > { %v711_v52 = vadd.f32 %v694_v25, %v526_v51 }
  0xdd   : > { %v846_v53 = vadd.f32 %v829_v7, %v711_v52 }
  0xdf   : > { %v1092_v49 = vadd.f32 %v1075_v50, %v846_v53 }
  0xe0   : > { %v527_v44 = vpop.f32.mrf.mxu1  ;;  %v1077_v58 = vpop.f32.mrf.mxu0 }
  0xe1   : > { %v704_v54 = vpop.f32.mrf.mxu2  ;;  %v528_v59 = vadd.f32 %v527_v44, %v426_v30  ;;  %v3256_v60 = vpop.f32.mrf.mxu3 }
  0xe3   : > { %v712_v42 = vadd.f32 %v696_v12, %v528_v59 }
  0xe8   : > { %v530_v15 = vpop.f32.mrf.mxu1  ;;  %v1080_v62 = vpop.f32.mrf.mxu0 }
  0xe9   : > { %v706_v61 = vpop.f32.mrf.mxu2  ;;  %v531_v63 = vadd.f32 %v530_v15, %v429_v16  ;;  %v3264_v11 = vpop.f32.mrf.mxu3 }
  0xeb   : > { %v713_v45 = vadd.f32 %v699_v35, %v531_v63 }
  0xed   : > { %v848_v0 = vadd.f32 %v834_v27, %v713_v45 }
  0xef   : > { %v3258_v46 = vadd.f32 %v1080_v62, %v848_v0 }
  0xf0   : > { %v532_v3 = vpop.f32.mrf.mxu1  ;;  %v3260_v4 = vpop.f32.mrf.mxu0 }
  0xf1   : > { %v1379_v2 = vpop.f32.mrf.mxu2  ;;  %v533_v6 = vadd.f32 %v532_v3, %v431_v20  ;;  %v1625_v5 = vpop.f32.mrf.mxu3 }
  0xf3   : > { %v3262_v33 = vadd.f32 %v701_v43, %v533_v6  ;;  %v847_v43 = vadd.f32 %v3252_v19, %v712_v42 }
  0xf8   : > { %v535_v13 = vpop.f32.mrf.mxu1  ;;  %v3266_v29 = vpop.f32.mrf.mxu0 }
  0xf9   : > { %v1381_v9 = vpop.f32.mrf.mxu2  ;;  %v536_v47 = vadd.f32 %v535_v13, %v434_v32  ;;  %v1627_v1 = vpop.f32.mrf.mxu3  ;;  %v1091_v32 = vadd.f32 %v1072_v38, %v845_v57 }
  0xfb   : > { %v3268_v39 = vadd.f32 %v704_v54, %v536_v47  ;;  %v1093_v54 = vadd.f32 %v1077_v58, %v847_v43 }
 0x100   : > { %v537_v14 = vpop.f32.mrf.mxu1  ;;  %v3270_v16 = vpop.f32.mrf.mxu0 }
 0x101   : > { %v1384_v28 = vpop.f32.mrf.mxu2  ;;  %v538_v17 = vadd.f32 %v537_v14, %v436_v26  ;;  %v1630_v23 = vpop.f32.mrf.mxu3 }
 0x103   : > { %v3272_v18 = vadd.f32 %v706_v61, %v538_v17 }
 0x108   : > { %v1244_v20 = vpop.f32.mrf.mxu1  ;;  %v1799_v10 = vpop.f32.mrf.mxu0 }
 0x109   : > { %v1264_v22 = vadd.f32 %v1244_v20, %v1090_v34  ;;  %v1386_v24 = vpop.f32.mrf.mxu2  ;;  %v1632_v51 = vpop.f32.mrf.mxu3 }
 0x10b   : > { %v1399_v25 = vadd.f32 %v1379_v2, %v1264_v22 }
 0x10d   : > { %v1645_v30 = vadd.f32 %v1625_v5, %v1399_v25  ;;  %v849_v5 = vadd.f32 %v3254_v55, %v3262_v33 }
 0x10f   : > { %v1819_v56 = vadd.f32 %v1799_v10, %v1645_v30 }
 0x110   : > { %v1246_v7 = vpop.f32.mrf.mxu1  ;;  %v1801_v12 = vpop.f32.mrf.mxu0 }
 0x111   : > { %v1265_v8 = vadd.f32 %v1246_v7, %v1091_v32  ;;  %v1389_v26 = vpop.f32.mrf.mxu2  ;;  %v1856_v37 = vmul.f32 %v1819_v56, %v1819_v56 }
 0x113   : > { %v1400_v21 = vadd.f32 %v1381_v9, %v1265_v8 }
 0x115   : > { %v1646_v31 = vadd.f32 %v1627_v1, %v1400_v21  ;;  %v1095_v1 = vadd.f32 %v3260_v4, %v849_v5 }
 0x117   : > { %v1820_v35 = vadd.f32 %v1801_v12, %v1646_v31 }
 0x118   : > { %v1249_v36 = vpop.f32.mrf.mxu1  ;;  %v1804_v34 = vpop.f32.mrf.mxu0 }
 0x119   : > { %v2617_v38 = vpack.c.bf16 %v1820_v35, %v1819_v56  ;;  %v1843_v40 = vadd.f32 %v1820_v35, %v1819_v56  ;;  %v1857_v41 = vmul.f32 %v1820_v35, %v1820_v35  ;;  %v1266_v27 = vadd.f32 %v1249_v36, %v1092_v49  ;;  %v1391_v53 = vpop.f32.mrf.mxu2  ;;  %v1635_v49 = vpop.f32.mrf.mxu3 }
 0x11a   : > { %v851_v35 = vadd.f32 %v3264_v11, %v3272_v18 }
 0x11b   : > { %2618 = vst [vmem:[%s3279_s19] sm:$0xff] %v2617_v38   ;;  %v1864_v48 = vadd.f32 %v1857_v41, %v1856_v37  ;;  %v1401_v50 = vadd.f32 %v1384_v28, %v1266_v27 }
 0x11d   : > { %v1647_v52 = vadd.f32 %v1630_v23, %v1401_v50 }
 0x11f   : > { %v1821_v44 = vadd.f32 %v1804_v34, %v1647_v52  ;;  %v1097_v34 = vadd.f32 %v3270_v16, %v851_v35 }
 0x120   : > { %v1251_v59 = vpop.f32.mrf.mxu1  ;;  %v1806_v61 = vpop.f32.mrf.mxu0 }
 0x121   : > { %v1844_v15 = vadd.f32 %v1843_v40, %v1821_v44  ;;  %v1858_v62 = vmul.f32 %v1821_v44, %v1821_v44  ;;  %v1267_v63 = vadd.f32 %v1251_v59, %v1093_v54  ;;  %v1394_v19 = vpop.f32.mrf.mxu2  ;;  %v1637_v10 = vpop.f32.mrf.mxu3 }
 0x123   : > { %v1865_v45 = vadd.f32 %v1864_v48, %v1858_v62  ;;  %v1402_v0 = vadd.f32 %v1386_v24, %v1267_v63 }
 0x125   : > { %v1648_v2 = vadd.f32 %v1632_v51, %v1402_v0 }
 0x127   : > { %v1822_v3 = vadd.f32 %v1806_v61, %v1648_v2 }
 0x128   : > { %v1254_v42 = vpop.f32.mrf.mxu1  ;;  %v1809_v58 = vpop.f32.mrf.mxu0 }
 0x129   : > { %v2622_v6 = vpack.c.bf16 %v1822_v3, %v1821_v44  ;;  %v1845_v9 = vadd.f32 %v1844_v15, %v1822_v3  ;;  %v1859_v13 = vmul.f32 %v1822_v3, %v1822_v3  ;;  %v1268_v47 = vadd.f32 %v1254_v42, %v3258_v46  ;;  %v1396_v32 = vpop.f32.mrf.mxu2  ;;  %v1640_v31 = vpop.f32.mrf.mxu3 }
 0x12a   : > { %v850_v46 = vadd.f32 %v3256_v60, %v3268_v39 }
 0x12b   : > { %2634 = vst [vmem:[%s3279_s19 + $0x8] sm:$0xff] %v2622_v6   ;;  %v1866_v28 = vadd.f32 %v1865_v45, %v1859_v13  ;;  %v1403_v14 = vadd.f32 %v1389_v26, %v1268_v47 }
 0x12c   : > { %v1096_v12 = vadd.f32 %v3266_v29, %v850_v46 }
 0x12d   : > { %v1649_v17 = vadd.f32 %v1635_v49, %v1403_v14 }
 0x12f   : > { %v1823_v20 = vadd.f32 %v1809_v58, %v1649_v17 }
 0x130   : > { %v1256_v22 = vpop.f32.mrf.mxu1  ;;  %v1811_v55 = vpop.f32.mrf.mxu0 }
 0x131   : > { %v1846_v24 = vadd.f32 %v1845_v9, %v1823_v20  ;;  %v1860_v57 = vmul.f32 %v1823_v20, %v1823_v20  ;;  %v1269_v25 = vadd.f32 %v1256_v22, %v1095_v1  ;;  %v1814_v60 = vpop.f32.mrf.mxu2  ;;  %v1642_v50 = vpop.f32.mrf.mxu3 }
 0x133   : > { %v1867_v30 = vadd.f32 %v1866_v28, %v1860_v57  ;;  %v1404_v7 = vadd.f32 %v1391_v53, %v1269_v25 }
 0x135   : > { %v1650_v33 = vadd.f32 %v1637_v10, %v1404_v7 }
 0x137   : > { %v1824_v8 = vadd.f32 %v1811_v55, %v1650_v33 }
 0x138   : > { %v1259_v23 = vpop.f32.mrf.mxu1 }
 0x139   : > { %v2627_v4 = vpack.c.bf16 %v1824_v8, %v1823_v20  ;;  %v1847_v21 = vadd.f32 %v1846_v24, %v1824_v8  ;;  %v1861_v56 = vmul.f32 %v1824_v8, %v1824_v8  ;;  %v1270_v26 = vadd.f32 %v1259_v23, %v1096_v12  ;;  %v1816_v52 = vpop.f32.mrf.mxu2 }
 0x13b   : > { %2635 = vst [vmem:[%s3279_s19 + $0x10] sm:$0xff] %v2627_v4   ;;  %v1868_v37 = vadd.f32 %v1867_v30, %v1861_v56  ;;  %v1405_v36 = vadd.f32 %v1394_v19, %v1270_v26 }
 0x13d   : > { %v1651_v39 = vadd.f32 %v1640_v31, %v1405_v36 }
 0x13f   : > { %v1825_v38 = vadd.f32 %v1814_v60, %v1651_v39 }
 0x140   : > { %v1261_v29 = vpop.f32.mrf.mxu1 }
 0x141   : > { %v1848_v40 = vadd.f32 %v1847_v21, %v1825_v38  ;;  %v1862_v41 = vmul.f32 %v1825_v38, %v1825_v38  ;;  %v1271_v27 = vadd.f32 %v1261_v29, %v1097_v34 }
 0x143   : > { %v1869_v43 = vadd.f32 %v1868_v37, %v1862_v41  ;;  %v1406_v48 = vadd.f32 %v1396_v32, %v1271_v27 }
 0x145   : > { %v1652_v51 = vadd.f32 %v1642_v50, %v1406_v48 }
 0x147   : > { %v1826_v11 = vadd.f32 %v1816_v52, %v1652_v51 }
 0x149   : > { %v2632_v18 = vpack.c.bf16 %v1826_v11, %v1825_v38  ;;  %v1849_v53 = vadd.f32 %v1848_v40, %v1826_v11  ;;  %v1863_v54 = vmul.f32 %v1826_v11, %v1826_v11 }
 0x14b   : > { %2636 = vst [vmem:[%s3279_s19 + $0x18] sm:$0xff] %v2632_v18   ;;  %v1850_v44 = vrot.slane %v1849_v53, 4  ;;  %v1870_v59 = vadd.f32 %v1869_v43, %v1863_v54 }
 0x14d   : > { %v1851_v61 = vadd.f32 %v1850_v44, %v1849_v53  ;;  %v1871_v16 = vrot.slane %v1870_v59, 4 }
 0x14f   : > { %v1852_v15 = vrot.slane %v1851_v61, 2  ;;  %v1872_v62 = vadd.f32 %v1871_v16, %v1870_v59 }
 0x151   : > { %v1853_v63 = vadd.f32 %v1852_v15, %v1851_v61  ;;  %v1873_v45 = vrot.slane %v1872_v62, 2 }
 0x153   : > { %v1854_v0 = vrot.slane %v1853_v63, 1  ;;  %v1874_v2 = vadd.f32 %v1873_v45, %v1872_v62 }
 0x155   : > { %v1875_v49 = vrot.slane %v1874_v2, 1  ;;  %v1855_v3 = vadd.f32 %v1854_v0, %v1853_v63 }
 0x157   : > { %v1876_v19 = vadd.f32 %v1875_v49, %v1874_v2 }
 0x159   : > { %v1878_v42 = vsel %vm1877_vm6, %v1855_v3, %v1876_v19 }
 0x15a   : > { %1879 = vst [vmem:[%s181_s23] sm:$0x3] %v1878_v42 }
 0x15b PF: > { %s14_s12 = sadd.s32 1, %s2668_s12  }
 0x15c   : > { %p11_p4 = scmp.ge.s32.totalorder %s14_s12, 4  }
 0x15e   :  { %13 = sbr.rel (!%p11_p4) target bundleno = 1 (0x1), region = 80 }

// kernel: _lambda_.4
= control target key start
LH: loop header
LB: loop body
LE: loop exit
PB: predicated region body
PF: predicated region fallthrough
CT: control target
= control target key end

     0   :  { %s2622_s12 = smov 0   ;;  %s3055_s0 = inlined_call_operand.vmem [shape: bf16[2,4,9,9,128], index: 0, kind: input, shape index: {}]   ;;  %s3056_s1 = inlined_call_operand.vmem [shape: bf16[9,128,128], index: 1, kind: input, shape index: {}]   ;;  %s3057_s2 = inlined_call_operand.vmem [shape: bf16[2,8,8,128], index: 2, kind: output, shape index: {0}]   ;;  %s3058_s3 = inlined_call_operand.vmem [shape: f32[2,2,128], index: 3, kind: output, shape index: {1}]  }
   0x1 LB: > { %s1854_s13 = sadd.s32 4294967295, %s2600_s12   ;;  %p1858_p0 = scmp.ge.s32.totalorder %s2600_s12, 1  ;;  %s2600_s12 = sphi %s2622_s12, %s14_s12  }
   0x2   : > { %p140_p1 = scmp.lt.s32.totalorder %s2600_s12, 3 }
   0x4   : > { %p141_p2 = pnand %p1858_p0, %p140_p1 }
   0x5   : > { %p168_p3 = scmp.lt.s32.totalorder (!%p141_p2), %s1854_s13, 1 }
   0x6   : > { %144 = sbr.rel (%p141_p2) target bundleno = 347 (0x15b), region = 28 }
   0xb   : > { %v2473_v0 = vld [vmem:[%s3056_s1 + $0x78] sm:$0xff]  ;;  %v2472_v2 = vld [vmem:[%s3056_s1 + $0x70] sm:$0xff]  ;;  %s3062_s13 = smov (!%p168_p3, %s1854_s13), 1  ;;  %v2471_v6 = vld [vmem:[%s3056_s1 + $0x68] sm:$0xff]  ;;  %vm450_vm0 = vsmask.f32 3328 }
   0xc   : > { %v2481_v1 = vld [vmem:[%s3056_s1 + $0xb8] sm:$0xff]  ;;  %2569 = vmatpush.bf16.msra.mxu1 %v2473_v0  ;;  %304 = vmatpush.bf16.msra.mxu0 %v2473_v0  ;;  %v2480_v3 = vld [vmem:[%s3056_s1 + $0xb0] sm:$0xff]  ;;  %s2585_s24 = smul.u32 288, %s3062_s13  ;;  %v2479_v7 = vld [vmem:[%s3056_s1 + $0xa8] sm:$0xff]  ;;  %vm451_vm1 = vsmask.f32 7440 }
   0xd   : > { %646 = vmatpush.bf16.msra.mxu2 %v2481_v1  ;;  %v2493_v4 = vld [vmem:[%s3056_s1 + $0xf8] sm:$0xff]  ;;  %v2492_v5 = vld [vmem:[%s3056_s1 + $0xf0] sm:$0xff]  ;;  %v2491_v8 = vld [vmem:[%s3056_s1 + $0xe8] sm:$0xff]  ;;  %s1862_s20 = sshll.u32 %s3062_s13, 1  ;;  %vm1765_vm3 = vcmask 1040384  }
   0xe   : > { %781 = vmatpush.bf16.msra.mxu3 %v2493_v4  ;;  %s2657_s4 = scalar_lea.vmem %s3055_s0, %s2585_s24  ;;  %v2470_v10 = vld [vmem:[%s3056_s1 + $0x60] sm:$0xff]  ;;  %v2469_v23 = vld [vmem:[%s3056_s1 + $0x58] sm:$0xff]  ;;  %v2468_v31 = vld [vmem:[%s3056_s1 + $0x50] sm:$0xff]  ;;  %s181_s23 = scalar_lea.vmem %s3058_s3, %s1862_s20 }
   0xf   : > { %v434_v9 = vld [vmem:[%s2657_s4] sm:$0xf]  ;;  %v436_v11 = vld [vmem:[%s2657_s4 + $0x8] sm:$0xf]  ;;  %v435_v16 = vld [vmem:[%s2657_s4 + $0x4] sm:$0x1] }
  0x10   : > { %2570 = vmatpush.bf16.msra.mxu1 %v2472_v2  ;;  %305 = vmatpush.bf16.msra.mxu0 %v2472_v2  ;;  %v2478_v12 = vld [vmem:[%s3056_s1 + $0xa0] sm:$0xff]  ;;  %v454_v13 = vshrl.u32 %v434_v9, 16  ;;  %v457_v14 = vshll.u32 %v434_v9, 16  ;;  %v468_v15 = vshrl.u32 %v436_v11, 16  ;;  %v437_v17 = vld [vmem:[%s2657_s4 + $0xc] sm:$0x1]  ;;  %vm2695_vm2 = vmor %vm450_vm0, %vm451_vm1 }
  0x11   : > { %647 = vmatpush.bf16.msra.mxu2 %v2480_v3  ;;  %v471_v18 = vshll.u32 %v436_v11, 16  ;;  %v2490_v19 = vld [vmem:[%s3056_s1 + $0xe0] sm:$0xff]  ;;  %v2477_v25 = vld [vmem:[%s3056_s1 + $0x98] sm:$0xff]  ;;  %v463_v27 = vshll.u32 %v435_v16, 16  ;;  %v477_v28 = vshll.u32 %v437_v17, 16  ;;  %v2476_v34 = vld [vmem:[%s3056_s1 + $0x90] sm:$0xff] }
  0x12   : > { %782 = vmatpush.bf16.msra.mxu3 %v2492_v5  ;;  %v456_v20 = vrot.slane %v454_v13, 4  ;;  %v459_v21 = vrot.slane %v457_v14, 5  ;;  %v470_v22 = vrot.slane %v468_v15, 4  ;;  %v2489_v30 = vld [vmem:[%s3056_s1 + $0xd8] sm:$0xff]  ;;  %v438_v32 = vld [vmem:[%s2657_s4 + $0x10] sm:$0xf] }
  0x13   : > { %v473_v24 = vrot.slane %v471_v18, 5  ;;  %v440_v33 = vld [vmem:[%s2657_s4 + $0x18] sm:$0xf]  ;;  %v465_v36 = vrot.slane %v463_v27, 5  ;;  %v479_v38 = vrot.slane %v477_v28, 5  ;;  %v2488_v40 = vld [vmem:[%s3056_s1 + $0xd0] sm:$0xff] }
  0x14   : > { %2571 = vmatpush.bf16.msra.mxu1 %v2471_v6  ;;  %306 = vmatpush.bf16.msra.mxu0 %v2471_v6  ;;  %v460_v26 = vor.u32 %v459_v21, %v456_v20  ;;  %v482_v41 = vshrl.u32 %v438_v32, 16  ;;  %v485_v42 = vshll.u32 %v438_v32, 16  ;;  %v496_v43 = vshrl.u32 %v440_v33, 16  ;;  %v2467_v45 = vld [vmem:[%s3056_s1 + $0x48] sm:$0xff]  ;;  %v2466_v49 = vld [vmem:[%s3056_s1 + $0x40] sm:$0xff]  ;;  %v2461_v63 = vld [vmem:[%s3056_s1 + $0x38] sm:$0xff] }
  0x15   : > { %648 = vmatpush.bf16.msra.mxu2 %v2479_v7  ;;  %v474_v29 = vor.u32 %v473_v24, %v470_v22  ;;  %v499_v44 = vshll.u32 %v440_v33, 16  ;;  %v2475_v46 = vld [vmem:[%s3056_s1 + $0x88] sm:$0xff]  ;;  %v2464_v51 = vld [vmem:[%s2657_s4 + $0x6c] sm:$0xf0]  ;;  %v439_v53 = vld [vmem:[%s2657_s4 + $0x14] sm:$0x1] }
  0x16   : > { %783 = vmatpush.bf16.msra.mxu3 %v2491_v8  ;;  %v461_v35 = vrot.slane %v460_v26, 4  ;;  %v1897_v50 = vld [vmem:[%s2657_s4 + $0x68] sm:$0xf]  ;;  %v484_v54 = vrot.slane %v482_v41, 4  ;;  %v487_v55 = vrot.slane %v485_v42, 5  ;;  %v498_v56 = vrot.slane %v496_v43, 4 }
  0x17   : > { %v475_v37 = vrot.slane %v474_v29, 4  ;;  %v2487_v52 = vld [vmem:[%s3056_s1 + $0xc8] sm:$0xff]  ;;  %v501_v57 = vrot.slane %v499_v44, 5  ;;  %v2462_v59 = vld [vmem:[%s2657_s4 + $0x4c] sm:$0xf0]  ;;  %v2474_v0 = vld [vmem:[%s3056_s1 + $0x80] sm:$0xff]  ;;  %v1898_v1 = vor.u32 %v2464_v51, %v1897_v50 }
  0x18   : > { %2572 = vmatpush.bf16.msra.mxu1 %v2470_v10  ;;  %307 = vmatpush.bf16.msra.mxu0 %v2470_v10  ;;  %v466_v47 = vsel %vm2695_vm2, %v461_v35, %v465_v36  ;;  %v1889_v58 = vld [vmem:[%s2657_s4 + $0x48] sm:$0xf]  ;;  %v441_v62 = vld [vmem:[%s2657_s4 + $0x1c] sm:$0x1]  ;;  %v491_v4 = vshll.u32 %v439_v53, 16  ;;  %v488_v6 = vor.u32 %v487_v55, %v484_v54  ;;  %v2486_v10 = vld [vmem:[%s3056_s1 + $0xc0] sm:$0xff] }
  0x19   : > { %649 = vmatpush.bf16.msra.mxu2 %v2478_v12  ;;  %v480_v48 = vsel %vm2695_vm2, %v475_v37, %v479_v38  ;;  %v582_v60 = vunpack.c.l.b16 %v466_v47  ;;  %v2505_v2 = vld [vmem:[%s3056_s1 + $0x138] sm:$0xff]  ;;  %v1890_v5 = vor.u32 %v2462_v59, %v1889_v58  ;;  %v502_v7 = vor.u32 %v501_v57, %v498_v56  ;;  %v2057_v11 = vld [vmem:[%s2657_s4 + $0x90] sm:$0xf]  ;;  %v2459_v22 = vld [vmem:[%s3056_s1 + $0x28] sm:$0xff] }
  0x1a   : > { %784 = vmatpush.bf16.msra.mxu3 %v2490_v19  ;;  %v583_v61 = vunpack.c.l.b16 %v480_v48  ;;  %v2525_v3 = vld [vmem:[%s3056_s1 + $0x1b8] sm:$0xff]  ;;  %v505_v8 = vshll.u32 %v441_v62, 16  ;;  %v2460_v13 = vld [vmem:[%s3056_s1 + $0x30] sm:$0xff]  ;;  %v493_v16 = vrot.slane %v491_v4, 5  ;;  %v489_v19 = vrot.slane %v488_v6, 4  ;;  %v2503_v26 = vld [vmem:[%s3056_s1 + $0x128] sm:$0xff] }
  0x1b   : > { %v2482_v12 = vld [vmem:[%s2657_s4 + $0x94] sm:$0xf0]  ;;  %v2504_v15 = vld [vmem:[%s3056_s1 + $0x130] sm:$0xff]  ;;  %v503_v20 = vrot.slane %v502_v7, 4  ;;  %v442_v24 = vld [vmem:[%s2657_s4 + $0x20] sm:$0xf] }
  0x1c   : > { %2573 = vmatpush.bf16.msra.mxu1 %v2469_v23  ;;  %308 = vmatpush.bf16.msra.mxu0 %v2469_v23  ;;  %v590_v9 = vpack.c.b16 %v583_v61, %v582_v60  ;;  %v2537_v14 = vld [vmem:[%s3056_s1 + $0x1f8] sm:$0xff]  ;;  %v2524_v17 = vld [vmem:[%s3056_s1 + $0x1b0] sm:$0xff]  ;;  %v2058_v18 = vor.u32 %v2482_v12, %v2057_v11  ;;  %v507_v21 = vrot.slane %v505_v8, 5  ;;  %v2523_v27 = vld [vmem:[%s3056_s1 + $0x1a8] sm:$0xff]  ;;  %v494_v28 = vsel %vm2695_vm2, %v489_v19, %v493_v16 }
  0x1d   : > { %650 = vmatpush.bf16.msra.mxu2 %v2477_v25  ;;  %v2536_v23 = vld [vmem:[%s3056_s1 + $0x1f0] sm:$0xff]  ;;  %v444_v25 = vld [vmem:[%s2657_s4 + $0x28] sm:$0xf]  ;;  %v2502_v36 = vld [vmem:[%s3056_s1 + $0x120] sm:$0xff]  ;;  %v584_v42 = vunpack.c.l.b16 %v494_v28 }
  0x1e   : > { %785 = vmatpush.bf16.msra.mxu3 %v2489_v30  ;;  %v508_v29 = vsel %vm2695_vm2, %v503_v20, %v507_v21  ;;  %v510_v30 = vshrl.u32 %v442_v24, 16  ;;  %v524_v32 = vshrl.u32 %v444_v25, 16  ;;  %v527_v33 = vshll.u32 %v444_v25, 16  ;;  %v2535_v35 = vld [vmem:[%s3056_s1 + $0x1e8] sm:$0xff]  ;;  %v2522_v37 = vld [vmem:[%s3056_s1 + $0x1a0] sm:$0xff]  ;;  %v2456_v62 = vld [vmem:[%s3056_s1 + $0x10] sm:$0xff] }
  0x1f   : > { %v1901_v38 = vld [vmem:[%s2657_s4 + $0x78] sm:$0xf]  ;;  %v585_v43 = vunpack.c.l.b16 %v508_v29  ;;  %v2463_v44 = vld [vmem:[%s2657_s4 + $0x5c] sm:$0xf0]  ;;  %v443_v50 = vld [vmem:[%s2657_s4 + $0x24] sm:$0x1] }
  0x20   : > { %2574 = vmatpush.bf16.msra.mxu1 %v2468_v31  ;;  %309 = vmatpush.bf16.msra.mxu0 %v2468_v31  ;;  %v513_v31 = vshll.u32 %v442_v24, 16  ;;  %v1893_v41 = vld [vmem:[%s2657_s4 + $0x58] sm:$0xf]  ;;  %v526_v47 = vrot.slane %v524_v32, 4  ;;  %v529_v48 = vrot.slane %v527_v33, 5  ;;  %v519_v59 = vshll.u32 %v443_v50, 16 }
  0x21   : > { %651 = vmatpush.bf16.msra.mxu2 %v2476_v34  ;;  %v2458_v34 = vld [vmem:[%s3056_s1 + $0x20] sm:$0xff]  ;;  %v445_v51 = vld [vmem:[%s2657_s4 + $0x2c] sm:$0x1]  ;;  %v1894_v54 = vor.u32 %v2463_v44, %v1893_v41  ;;  %v591_v55 = vpack.c.b16 %v585_v43, %v584_v42  ;;  %v2483_v57 = vld [vmem:[%s2657_s4 + $0xa4] sm:$0xf0] }
  0x22   : > { %786 = vmatpush.bf16.msra.mxu3 %v2488_v40  ;;  %v2465_v40 = vld [vmem:[%s2657_s4 + $0x7c] sm:$0xf0]  ;;  %v530_v60 = vor.u32 %v529_v48, %v526_v47  ;;  %v533_v61 = vshll.u32 %v445_v51, 16  ;;  %v2455_v6 = vld [vmem:[%s3056_s1 + $0x8] sm:$0xff]  ;;  %v2520_v11 = vld [vmem:[%s3056_s1 + $0x190] sm:$0xff] }
  0x23   : > { %v1902_v53 = vor.u32 %v2465_v40, %v1901_v38  ;;  %v2061_v56 = vld [vmem:[%s2657_s4 + $0xa0] sm:$0xf]  ;;  %v2499_v7 = vld [vmem:[%s3056_s1 + $0x108] sm:$0xff]  ;;  %v2513_v20 = vld [vmem:[%s3056_s1 + $0x178] sm:$0xff] }
  0x24   : > { %2575 = vmatpush.bf16.msra.mxu1 %v2467_v45  ;;  %310 = vmatpush.bf16.msra.mxu0 %v2467_v45  ;;  %v512_v45 = vrot.slane %v510_v30, 4  ;;  %v531_v4 = vrot.slane %v530_v60, 4  ;;  %v2534_v8 = vld [vmem:[%s3056_s1 + $0x1e0] sm:$0xff]  ;;  %v2450_v24 = vld [vmem:[%s2657_s4 + $0x4] sm:$0xf0]  ;;  %v2512_v33 = vld [vmem:[%s3056_s1 + $0x170] sm:$0xff] }
  0x25   : > { %652 = vmatpush.bf16.msra.mxu2 %v2475_v46  ;;  %v515_v46 = vrot.slane %v513_v31, 5  ;;  %v2498_v21 = vld [vmem:[%s3056_s1 + $0x100] sm:$0xff]  ;;  %v2129_v25 = vld [vmem:[%s2657_s4 + $0xd8] sm:$0xf]  ;;  %v2065_v40 = vld [vmem:[%s2657_s4 + $0xb0] sm:$0xf] }
  0x26   : > { %787 = vmatpush.bf16.msra.mxu3 %v2487_v52  ;;  %v2501_v52 = vld [vmem:[%s3056_s1 + $0x118] sm:$0xff]  ;;  %v2544_v42 = vld [vmem:[%s3056_s1 + $0x230] sm:$0xff]  ;;  %v2511_v47 = vld [vmem:[%s3056_s1 + $0x168] sm:$0xff] }
  0x27   : > { %v516_v58 = vor.u32 %v515_v46, %v512_v45  ;;  %v2484_v41 = vld [vmem:[%s2657_s4 + $0xb4] sm:$0xf0]  ;;  %v2519_v48 = vld [vmem:[%s3056_s1 + $0x188] sm:$0xff] }
  0x28   : > { %2576 = vmatpush.bf16.msra.mxu1 %v2466_v49  ;;  %311 = vmatpush.bf16.msra.mxu0 %v2466_v49  ;;  %v2457_v49 = vld [vmem:[%s3056_s1 + $0x18] sm:$0xff]  ;;  %v2543_v50 = vld [vmem:[%s3056_s1 + $0x228] sm:$0xff] }
  0x29   : > { %653 = vmatpush.bf16.msra.mxu2 %v2474_v0  ;;  %v2062_v0 = vor.u32 %v2483_v57, %v2061_v56  ;;  %v2532_v56 = vld [vmem:[%s3056_s1 + $0x1d0] sm:$0xff]  ;;  %v2510_v57 = vld [vmem:[%s3056_s1 + $0x160] sm:$0xff] }
  0x2a   : > { %788 = vmatpush.bf16.msra.mxu3 %v2486_v10  ;;  %v448_v10 = vld [vmem:[%s2657_s4 + $0x38] sm:$0xf] }
  0x2b   : > { %322 = vmatmul.bf16.vlgmr.msra.gmra.mxu1 %v1898_v1  ;;  %312 = vmatmul.bf16.vlgmr.msra.gmra.mxu0 %v1890_v5  ;;  %v2521_v1 = vld [vmem:[%s3056_s1 + $0x198] sm:$0xff]  ;;  %v535_v5 = vrot.slane %v533_v61, 5  ;;  %v555_v19 = vshll.u32 %v448_v10, 16 }
  0x2c   : > { %405 = vmatpush.bf16.msrb.mxu1 %v2461_v63  ;;  %916 = vmatpush.bf16.msrb.mxu0 %v2505_v2  ;;  %v2500_v63 = vld [vmem:[%s3056_s1 + $0x110] sm:$0xff]  ;;  %v517_v2 = vrot.slane %v516_v58, 4  ;;  %v2542_v58 = vld [vmem:[%s3056_s1 + $0x220] sm:$0xff] }
  0x2d   : > { %1297 = vmatpush.bf16.msrb.mxu2 %v2525_v3  ;;  %789 = vmatmul.bf16.vlgmr.msra.gmra.mxu3 %v2058_v18  ;;  %v521_v3 = vrot.slane %v519_v59, 5  ;;  %v552_v18 = vshrl.u32 %v448_v10, 16  ;;  %v557_v32 = vrot.slane %v555_v19, 5  ;;  %v2531_v59 = vld [vmem:[%s3056_s1 + $0x1c8] sm:$0xff] }
  0x2e   : > { %654 = vmatmul.bf16.vlgmr.msra.gmra.mxu2 %v590_v9  ;;  %1432 = vmatpush.bf16.msrb.mxu3 %v2537_v14  ;;  %v446_v9 = vld [vmem:[%s2657_s4 + $0x30] sm:$0xf]  ;;  %v2533_v14 = vld [vmem:[%s3056_s1 + $0x1d8] sm:$0xff]  ;;  %v2485_v10 = vld [vmem:[%s2657_s4 + $0xc4] sm:$0xf0] }
  0x2f   : > { %v522_v12 = vsel %vm2695_vm2, %v517_v2, %v521_v3  ;;  %v538_v16 = vshrl.u32 %v446_v9, 16  ;;  %v554_v31 = vrot.slane %v552_v18, 4  ;;  %v2495_v2 = vld [vmem:[%s2657_s4 + $0xec] sm:$0xf0]  ;;  %v1945_v18 = vld [vmem:[%s2657_s4 + $0x20] sm:$0xf] }
  0x30   : > { %406 = vmatpush.bf16.msrb.mxu1 %v2460_v13  ;;  %917 = vmatpush.bf16.msrb.mxu0 %v2504_v15  ;;  %v536_v13 = vsel %vm2695_vm2, %v531_v4, %v535_v5  ;;  %v2454_v15 = vld [vmem:[%s3056_s1] sm:$0xff]  ;;  %v2508_v5 = vld [vmem:[%s3056_s1 + $0x150] sm:$0xff]  ;;  %v2452_v19 = vld [vmem:[%s2657_s4 + $0x24] sm:$0xf0] }
  0x31   : > { %1298 = vmatpush.bf16.msrb.mxu2 %v2524_v17  ;;  %v541_v17 = vshll.u32 %v446_v9, 16  ;;  %v587_v28 = vunpack.c.l.b16 %v536_v13  ;;  %v540_v29 = vrot.slane %v538_v16, 4  ;;  %v558_v45 = vor.u32 %v557_v32, %v554_v31  ;;  %v2069_v9 = vld [vmem:[%s2657_s4 + $0xc0] sm:$0xf]  ;;  %v2541_v13 = vld [vmem:[%s3056_s1 + $0x218] sm:$0xff]  ;;  %v2540_v16 = vld [vmem:[%s3056_s1 + $0x210] sm:$0xff] }
  0x32   : > { %1433 = vmatpush.bf16.msrb.mxu3 %v2536_v23  ;;  %v2545_v23 = vld [vmem:[%s3056_s1 + $0x238] sm:$0xff]  ;;  %v2175_v31 = vld [vmem:[%s2657_s4 + $0x90] sm:$0xf] }
  0x33   : > { %v543_v30 = vrot.slane %v541_v17, 5  ;;  %v2539_v17 = vld [vmem:[%s3056_s1 + $0x208] sm:$0xff]  ;;  %v2177_v32 = vld [vmem:[%s2657_s4 + $0x98] sm:$0xf] }
  0x34   : > { %407 = vmatpush.bf16.msrb.mxu1 %v2459_v22  ;;  %918 = vmatpush.bf16.msrb.mxu0 %v2503_v26  ;;  %v1937_v22 = vld [vmem:[%s2657_s4] sm:$0xf] }
  0x35   : > { %1299 = vmatpush.bf16.msrb.mxu2 %v2523_v27  ;;  %v2494_v26 = vld [vmem:[%s2657_s4 + $0xdc] sm:$0xf0]  ;;  %v586_v27 = vunpack.c.l.b16 %v522_v12  ;;  %v544_v43 = vor.u32 %v543_v30, %v540_v29  ;;  %v2507_v12 = vld [vmem:[%s3056_s1 + $0x148] sm:$0xff] }
  0x36   : > { %1434 = vmatpush.bf16.msrb.mxu3 %v2535_v35  ;;  %v449_v35 = vld [vmem:[%s2657_s4 + $0x3c] sm:$0x1]  ;;  %v2538_v30 = vld [vmem:[%s3056_s1 + $0x200] sm:$0xff] }
  0x37   : > { %v592_v38 = vpack.c.b16 %v587_v28, %v586_v27  ;;  %v561_v46 = vshll.u32 %v449_v35, 16  ;;  %v545_v51 = vrot.slane %v544_v43, 4  ;;  %v2337_v27 = vld [vmem:[%s2657_s4 + $0x50] sm:$0xf]  ;;  %v2526_v28 = vld [vmem:[%s2657_s4 + $0x54] sm:$0xf0] }
  0x38   : > { %408 = vmatpush.bf16.msrb.mxu1 %v2458_v34  ;;  %919 = vmatpush.bf16.msrb.mxu0 %v2502_v36  ;;  %v447_v34 = vld [vmem:[%s2657_s4 + $0x34] sm:$0x1]  ;;  %v1938_v36 = vor.u32 %v2450_v24, %v1937_v22  ;;  %v2265_v22 = vld [vmem:[%s2657_s4 + $0x8] sm:$0xf]  ;;  %v1946_v24 = vor.u32 %v2452_v19, %v1945_v18  ;;  %v2338_v29 = vor.u32 %v2526_v28, %v2337_v27  ;;  %v970_v35 = vshrl.u32 %v2175_v31, 16 }
  0x39   : > { %1300 = vmatpush.bf16.msrb.mxu2 %v2522_v37  ;;  %v2130_v37 = vor.u32 %v2494_v26, %v2129_v25  ;;  %v547_v44 = vshll.u32 %v447_v34, 16  ;;  %v2385_v34 = vld [vmem:[%s2657_s4 + $0x10] sm:$0xf]  ;;  %v2387_v18 = vld [vmem:[%s2657_s4 + $0x18] sm:$0xf] }
  0x3a   : > { %1435 = vmatpush.bf16.msrb.mxu3 %v2534_v8  ;;  %v1503_v43 = vshll.u32 %v2385_v34, 16  ;;  %v2389_v19 = vld [vmem:[%s2657_s4 + $0x20] sm:$0xf]  ;;  %v1514_v28 = vshrl.u32 %v2387_v18, 16 }
  0x3b   : > { %327 = vmatmul.bf16.gmra.mxu1 %v1902_v53  ;;  %317 = vmatmul.bf16.gmra.mxu0 %v1894_v54  ;;  %v559_v53 = vrot.slane %v558_v45, 4  ;;  %v563_v54 = vrot.slane %v561_v46, 5  ;;  %v2453_v45 = vld [vmem:[%s2657_s4 + $0x34] sm:$0xf0]  ;;  %v2141_v46 = vld [vmem:[%s2657_s4 + $0x108] sm:$0xf] }
  0x3c   : > { %409 = vmatpush.bf16.msrb.mxu1 %v2457_v49  ;;  %920 = vmatpush.bf16.msrb.mxu0 %v2501_v52  ;;  %v2066_v49 = vor.u32 %v2484_v41, %v2065_v40  ;;  %v549_v52 = vrot.slane %v547_v44, 5  ;;  %v1949_v44 = vld [vmem:[%s2657_s4 + $0x30] sm:$0xf] }
  0x3d   : > { %1301 = vmatpush.bf16.msrb.mxu2 %v2521_v1  ;;  %794 = vmatmul.bf16.gmra.mxu3 %v2062_v0  ;;  %v564_v61 = vsel %vm2695_vm2, %v559_v53, %v563_v54  ;;  %v2451_v0 = vld [vmem:[%s2657_s4 + $0x14] sm:$0xf0]  ;;  %v2133_v1 = vld [vmem:[%s2657_s4 + $0xe8] sm:$0xf] }
  0x3e   : > { %659 = vmatmul.bf16.gmra.mxu2 %v591_v55  ;;  %1436 = vmatpush.bf16.msrb.mxu3 %v2533_v14  ;;  %v2518_v55 = vld [vmem:[%s3056_s1 + $0x180] sm:$0xff]  ;;  %v550_v60 = vsel %vm2695_vm2, %v545_v51, %v549_v52  ;;  %v589_v4 = vunpack.c.l.b16 %v564_v61  ;;  %v972_v51 = vrot.slane %v970_v35, 4  ;;  %v2386_v61 = vld [vmem:[%s2657_s4 + $0x14] sm:$0x1] }
  0x3f   : > { %v588_v3 = vunpack.c.l.b16 %v550_v60  ;;  %v2530_v14 = vld [vmem:[%s3056_s1 + $0x1c0] sm:$0xff]  ;;  %v2384_v60 = vld [vmem:[%s2657_s4 + $0xc] sm:$0x1] }
  0x40   : > { %410 = vmatpush.bf16.msrb.mxu1 %v2456_v62  ;;  %921 = vmatpush.bf16.msrb.mxu0 %v2500_v63  ;;  %v2509_v62 = vld [vmem:[%s3056_s1 + $0x158] sm:$0xff]  ;;  %v1941_v63 = vld [vmem:[%s2657_s4 + $0x10] sm:$0xf] }
  0x41   : > { %1302 = vmatpush.bf16.msrb.mxu2 %v2520_v11  ;;  %v593_v8 = vpack.c.b16 %v589_v4, %v588_v3  ;;  %v2070_v11 = vor.u32 %v2485_v10, %v2069_v9  ;;  %v1509_v10 = vshll.u32 %v2386_v61, 16 }
  0x42   : > { %1437 = vmatpush.bf16.msrb.mxu3 %v2532_v56 }
  0x44   : > { %411 = vmatpush.bf16.msrb.mxu1 %v2455_v6  ;;  %922 = vmatpush.bf16.msrb.mxu0 %v2499_v7  ;;  %v1942_v6 = vor.u32 %v2451_v0, %v1941_v63  ;;  %v2134_v7 = vor.u32 %v2495_v2, %v2133_v1 }
  0x45   : > { %1303 = vmatpush.bf16.msrb.mxu2 %v2519_v48  ;;  %v2269_v48 = vld [vmem:[%s2657_s4 + $0x18] sm:$0xf] }
  0x46   : > { %1438 = vmatpush.bf16.msrb.mxu3 %v2531_v59  ;;  %v1505_v59 = vrot.slane %v1503_v43, 5  ;;  %v1516_v43 = vrot.slane %v1514_v28, 4 }
  0x48   : > { %412 = vmatpush.bf16.msrb.mxu1 %v2454_v15  ;;  %923 = vmatpush.bf16.msrb.mxu0 %v2498_v21  ;;  %v2506_v15 = vld [vmem:[%s3056_s1 + $0x140] sm:$0xff] }
  0x49   : > { %1304 = vmatpush.bf16.msrb.mxu2 %v2518_v55  ;;  %v2496_v21 = vld [vmem:[%s2657_s4 + $0xfc] sm:$0xf0] }
  0x4a   : > { %1439 = vmatpush.bf16.msrb.mxu3 %v2530_v14  ;;  %v2515_v55 = vld [vmem:[%s2657_s4 + $0x1c] sm:$0xf0]  ;;  %v2181_v14 = vld [vmem:[%s2657_s4 + $0xa8] sm:$0xf] }
  0x4b   : > { %413 = vmatmul.bf16.vlgmr.msrb.gmra.mxu1 %v1938_v36  ;;  %924 = vmatmul.bf16.vlgmr.msrb.gmra.mxu0 %v2130_v37  ;;  %v973_v36 = vshll.u32 %v2175_v31, 16  ;;  %v984_v37 = vshrl.u32 %v2177_v32, 16  ;;  %v2270_v2 = vor.u32 %v2515_v55, %v2269_v48  ;;  %v1015_v27 = vshll.u32 %v2181_v14, 16 }
  0x4c   : > { %1162 = vmatpush.bf16.msra.mxu1 %v2513_v20  ;;  %1678 = vmatpush.bf16.msra.mxu0 %v2545_v23  ;;  %v2137_v20 = vld [vmem:[%s2657_s4 + $0xf8] sm:$0xf]  ;;  %v1531_v31 = vshll.u32 %v2389_v19, 16 }
  0x4d   : > { %799 = vmatmul.bf16.gmra.mxu3 %v2066_v49  ;;  %2577 = vmatpush.bf16.msra.mxu2 %v2545_v23  ;;  %v2514_v23 = vld [vmem:[%s2657_s4 + $0xc] sm:$0xf0]  ;;  %v2138_v25 = vor.u32 %v2496_v21, %v2137_v20  ;;  %v2176_v49 = vld [vmem:[%s2657_s4 + $0x94] sm:$0x1]  ;;  %v975_v52 = vrot.slane %v973_v36, 5  ;;  %v986_v53 = vrot.slane %v984_v37, 4 }
  0x4e   : > { %664 = vmatmul.bf16.gmra.mxu2 %v592_v38  ;;  %v2266_v26 = vor.u32 %v2514_v23, %v2265_v22  ;;  %v987_v38 = vshll.u32 %v2177_v32, 16  ;;  %v979_v63 = vshll.u32 %v2176_v49, 16  ;;  %v1511_v23 = vrot.slane %v1509_v10, 5  ;;  %v2180_v36 = vld [vmem:[%s2657_s4 + $0xa4] sm:$0x1] }
  0x4f   : > { %v976_v3 = vor.u32 %v975_v52, %v972_v51  ;;  %v2388_v51 = vld [vmem:[%s2657_s4 + $0x1c] sm:$0x1]  ;;  %v2390_v52 = vld [vmem:[%s2657_s4 + $0x24] sm:$0x1] }
  0x50   : > { %1163 = vmatpush.bf16.msra.mxu1 %v2512_v33  ;;  %1679 = vmatpush.bf16.msra.mxu0 %v2544_v42  ;;  %v2383_v33 = vld [vmem:[%s2657_s4 + $0x8] sm:$0xf]  ;;  %v989_v54 = vrot.slane %v987_v38, 5 }
  0x51   : > { %2578 = vmatpush.bf16.msra.mxu2 %v2544_v42  ;;  %v1486_v40 = vshrl.u32 %v2383_v33, 16  ;;  %v1489_v41 = vshll.u32 %v2383_v33, 16  ;;  %v1500_v42 = vshrl.u32 %v2385_v34, 16 }
  0x52   : > { %v990_v4 = vor.u32 %v989_v54, %v986_v53  ;;  %v2273_v53 = vld [vmem:[%s2657_s4 + $0x28] sm:$0xf]  ;;  %v2516_v54 = vld [vmem:[%s2657_s4 + $0x2c] sm:$0xf0] }
  0x53   : > { %v1488_v56 = vrot.slane %v1486_v40, 4 }
  0x54   : > { %1164 = vmatpush.bf16.msra.mxu1 %v2511_v47  ;;  %1680 = vmatpush.bf16.msra.mxu0 %v2543_v50  ;;  %v2497_v47 = vld [vmem:[%s2657_s4 + $0x10c] sm:$0xf0] }
  0x55   : > { %2579 = vmatpush.bf16.msra.mxu2 %v2543_v50  ;;  %v2178_v50 = vld [vmem:[%s2657_s4 + $0x9c] sm:$0x1]  ;;  %v2142_v1 = vor.u32 %v2497_v47, %v2141_v46  ;;  %v1533_v46 = vrot.slane %v1531_v31, 5 }
  0x56   : > { %v993_v0 = vshll.u32 %v2178_v50, 16 }
  0x58   : > { %1165 = vmatpush.bf16.msra.mxu1 %v2510_v57  ;;  %1681 = vmatpush.bf16.msra.mxu0 %v2542_v58  ;;  %v1491_v57 = vrot.slane %v1489_v41, 5  ;;  %v1017_v41 = vrot.slane %v1015_v27, 5 }
  0x59   : > { %2580 = vmatpush.bf16.msra.mxu2 %v2542_v58  ;;  %v1502_v58 = vrot.slane %v1500_v42, 4  ;;  %v2182_v42 = vld [vmem:[%s2657_s4 + $0xac] sm:$0x1] }
  0x5b   : > { %418 = vmatmul.bf16.gmra.mxu1 %v1942_v6  ;;  %929 = vmatmul.bf16.gmra.mxu0 %v2134_v7  ;;  %v2527_v6 = vld [vmem:[%s2657_s4 + $0x64] sm:$0xf0]  ;;  %v1492_v7 = vor.u32 %v1491_v57, %v1488_v56  ;;  %v1506_v9 = vor.u32 %v1505_v59, %v1502_v58  ;;  %v1007_v56 = vshll.u32 %v2180_v36, 16  ;;  %v1021_v58 = vshll.u32 %v2182_v42, 16  ;;  %v2184_v42 = vld [vmem:[%s2657_s4 + $0xb4] sm:$0x1] }
  0x5c   : > { %1166 = vmatpush.bf16.msra.mxu1 %v2509_v62  ;;  %1682 = vmatpush.bf16.msra.mxu0 %v2541_v13  ;;  %v1950_v62 = vor.u32 %v2453_v45, %v1949_v44 }
  0x5d   : > { %804 = vmatmul.bf16.gmra.mxu3 %v2070_v11  ;;  %2581 = vmatpush.bf16.msra.mxu2 %v2541_v13  ;;  %v981_v11 = vrot.slane %v979_v63, 5  ;;  %v2179_v13 = vld [vmem:[%s2657_s4 + $0xa0] sm:$0xf]  ;;  %v1493_v20 = vrot.slane %v1492_v7, 4  ;;  %v1507_v22 = vrot.slane %v1506_v9, 4  ;;  %v1023_v7 = vrot.slane %v1021_v58, 5 }
  0x5e   : > { %669 = vmatmul.bf16.gmra.mxu2 %v593_v8  ;;  %v1495_v8 = vshll.u32 %v2384_v60, 16  ;;  %v1523_v60 = vshll.u32 %v2388_v51, 16  ;;  %v2277_v51 = vld [vmem:[%s2657_s4 + $0x38] sm:$0xf]  ;;  %v2396_v58 = vld [vmem:[%s2657_s4 + $0x3c] sm:$0x1] }
  0x5f   : > { %v1512_v35 = vsel %vm2695_vm2, %v1507_v22, %v1511_v23 }
  0x60   : > { %1167 = vmatpush.bf16.msra.mxu1 %v2508_v5  ;;  %1683 = vmatpush.bf16.msra.mxu0 %v2540_v16  ;;  %v2341_v5 = vld [vmem:[%s2657_s4 + $0x60] sm:$0xf]  ;;  %v1497_v21 = vrot.slane %v1495_v8, 5  ;;  %v1615_v50 = vunpack.c.l.b16 %v1512_v35  ;;  %v1525_v9 = vrot.slane %v1523_v60, 5 }
  0x61   : > { %2582 = vmatpush.bf16.msra.mxu2 %v2540_v16  ;;  %v991_v16 = vrot.slane %v990_v4, 4 }
  0x62   : > { %v1498_v34 = vsel %vm2695_vm2, %v1493_v20, %v1497_v21  ;;  %v2395_v21 = vld [vmem:[%s2657_s4 + $0x38] sm:$0xf] }
  0x63   : > { %v1614_v49 = vunpack.c.l.b16 %v1498_v34  ;;  %v1573_v34 = vshll.u32 %v2395_v21, 16 }
  0x64   : > { %1168 = vmatpush.bf16.msra.mxu1 %v2507_v12  ;;  %1684 = vmatpush.bf16.msra.mxu0 %v2539_v17  ;;  %v995_v12 = vrot.slane %v993_v0, 5 }
  0x65   : > { %2583 = vmatpush.bf16.msra.mxu2 %v2539_v17  ;;  %v2342_v17 = vor.u32 %v2527_v6, %v2341_v5  ;;  %v1622_v0 = vpack.c.b16 %v1615_v50, %v1614_v49  ;;  %v1009_v5 = vrot.slane %v1007_v56, 5  ;;  %v2517_v56 = vld [vmem:[%s2657_s4 + $0x3c] sm:$0xf0] }
  0x66   : > { %v996_v33 = vsel %vm2695_vm2, %v991_v16, %v995_v12  ;;  %v2183_v12 = vld [vmem:[%s2657_s4 + $0xb0] sm:$0xf] }
  0x67   : > { %v1099_v48 = vunpack.c.l.b16 %v996_v33  ;;  %v2393_v16 = vld [vmem:[%s2657_s4 + $0x30] sm:$0xf]  ;;  %v1029_v20 = vshll.u32 %v2183_v12, 16  ;;  %v1570_v33 = vshrl.u32 %v2395_v21, 16 }
  0x68   : > { %1169 = vmatpush.bf16.msra.mxu1 %v2506_v15  ;;  %1685 = vmatpush.bf16.msra.mxu0 %v2538_v30  ;;  %v977_v15 = vrot.slane %v976_v3, 4  ;;  %v2528_v3 = vld [vmem:[%s2657_s4 + $0x74] sm:$0xf0] }
  0x69   : > { %2584 = vmatpush.bf16.msra.mxu2 %v2538_v30  ;;  %v1528_v30 = vshrl.u32 %v2389_v19, 16  ;;  %v1026_v19 = vshrl.u32 %v2183_v12, 16  ;;  %v1031_v36 = vrot.slane %v1029_v20, 5 }
  0x6a   : > { %v982_v32 = vsel %vm2695_vm2, %v977_v15, %v981_v11  ;;  %v2391_v15 = vld [vmem:[%s2657_s4 + $0x28] sm:$0xf] }
  0x6b   : > { %423 = vmatmul.bf16.gmra.mxu1 %v1946_v24  ;;  %934 = vmatmul.bf16.gmra.mxu0 %v2138_v25  ;;  %v998_v24 = vshrl.u32 %v2179_v13, 16  ;;  %v1001_v25 = vshll.u32 %v2179_v13, 16  ;;  %v1530_v45 = vrot.slane %v1528_v30, 4  ;;  %v1098_v47 = vunpack.c.l.b16 %v982_v32 }
  0x6c   : > { %v1542_v27 = vshrl.u32 %v2391_v15, 16  ;;  %v1545_v28 = vshll.u32 %v2391_v15, 16  ;;  %v1559_v30 = vshll.u32 %v2393_v16, 16  ;;  %v1028_v35 = vrot.slane %v1026_v19, 4 }
  0x6d   : > { %1440 = vmatmul.bf16.vlgmr.msrb.gmra.mxu3 %v2338_v29  ;;  %v1517_v29 = vshll.u32 %v2387_v18, 16  ;;  %v1000_v37 = vrot.slane %v998_v24, 4  ;;  %v1003_v38 = vrot.slane %v1001_v25, 5  ;;  %v1534_v61 = vor.u32 %v1533_v46, %v1530_v45  ;;  %v2392_v46 = vld [vmem:[%s2657_s4 + $0x2c] sm:$0x1] }
  0x6e   : > { %1305 = vmatmul.bf16.vlgmr.msrb.gmra.mxu2 %v2266_v26  ;;  %v1012_v26 = vshrl.u32 %v2181_v14, 16  ;;  %v1106_v63 = vpack.c.b16 %v1099_v48, %v1098_v47  ;;  %v2185_v14 = vld [vmem:[%s2657_s4 + $0xb8] sm:$0xf]  ;;  %v1544_v47 = vrot.slane %v1542_v27, 4  ;;  %v1547_v48 = vrot.slane %v1545_v28, 5 }
  0x6f   : > { %v1519_v44 = vrot.slane %v1517_v29, 5  ;;  %v1004_v55 = vor.u32 %v1003_v38, %v1000_v37  ;;  %v1535_v10 = vrot.slane %v1534_v61, 4  ;;  %v1040_v24 = vshrl.u32 %v2185_v14, 16  ;;  %v2189_v27 = vld [vmem:[%s2657_s4 + $0xc8] sm:$0xf] }
  0x70   : > { %v1014_v40 = vrot.slane %v1012_v26, 4  ;;  %v1043_v25 = vshll.u32 %v2185_v14, 16  ;;  %v2397_v26 = vld [vmem:[%s2657_s4 + $0x40] sm:$0xf]  ;;  %v1556_v29 = vshrl.u32 %v2393_v16, 16  ;;  %v1561_v50 = vrot.slane %v1559_v30, 5 }
  0x71   : > { %v1520_v59 = vor.u32 %v1519_v44, %v1516_v43  ;;  %v1005_v4 = vrot.slane %v1004_v55, 4  ;;  %v1584_v37 = vshrl.u32 %v2397_v26, 16  ;;  %v1587_v38 = vshll.u32 %v2397_v26, 16  ;;  %v2186_v43 = vld [vmem:[%s2657_s4 + $0xbc] sm:$0x1] }
  0x72   : > { %v1018_v57 = vor.u32 %v1017_v41, %v1014_v40  ;;  %v1042_v44 = vrot.slane %v1040_v24, 4  ;;  %v1045_v45 = vrot.slane %v1043_v25, 5  ;;  %v1558_v49 = vrot.slane %v1556_v29, 4  ;;  %v2187_v24 = vld [vmem:[%s2657_s4 + $0xc0] sm:$0xf] }
  0x73   : > { %v1521_v8 = vrot.slane %v1520_v59, 4  ;;  %v1586_v59 = vrot.slane %v1584_v37, 4  ;;  %v1589_v60 = vrot.slane %v1587_v38, 5  ;;  %v1035_v61 = vshll.u32 %v2184_v42, 16 }
  0x74   : > { %v1019_v6 = vrot.slane %v1018_v57, 4  ;;  %v1032_v57 = vor.u32 %v1031_v36, %v1028_v35  ;;  %v1068_v35 = vshrl.u32 %v2189_v27, 16  ;;  %v1071_v36 = vshll.u32 %v2189_v27, 16 }
  0x75   : > { %v1526_v22 = vsel %vm2695_vm2, %v1521_v8, %v1525_v9  ;;  %v2529_v8 = vld [vmem:[%s2657_s4 + $0x84] sm:$0xf0]  ;;  %v1590_v12 = vor.u32 %v1589_v60, %v1586_v59  ;;  %v1037_v14 = vrot.slane %v1035_v61, 5 }
  0x76   : > { %v1024_v18 = vsel %vm2695_vm2, %v1019_v6, %v1023_v7  ;;  %v1616_v40 = vunpack.c.l.b16 %v1526_v22  ;;  %v2278_v6 = vor.u32 %v2517_v56, %v2277_v51  ;;  %v2349_v7 = vld [vmem:[%s2657_s4 + $0x80] sm:$0xf] }
  0x77   : > { %v1101_v32 = vunpack.c.l.b16 %v1024_v18  ;;  %v2350_v18 = vor.u32 %v2529_v8, %v2349_v7  ;;  %v1591_v25 = vrot.slane %v1590_v12, 4 }
  0x7b   : > { %428 = vmatmul.bf16.gmra.mxu1 %v1950_v62  ;;  %939 = vmatmul.bf16.gmra.mxu0 %v2142_v1  ;;  %v1537_v62 = vshll.u32 %v2390_v52, 16  ;;  %v2274_v1 = vor.u32 %v2516_v54, %v2273_v53  ;;  %v2394_v52 = vld [vmem:[%s2657_s4 + $0x34] sm:$0x1]  ;;  %v1572_v53 = vrot.slane %v1570_v33, 4  ;;  %v1575_v54 = vrot.slane %v1573_v34, 5 }
  0x7c   : > { %v1057_v34 = vshll.u32 %v2187_v24, 16 }
  0x7d   : > { %1445 = vmatmul.bf16.gmra.mxu3 %v2342_v17  ;;  %v1539_v11 = vrot.slane %v1537_v62, 5  ;;  %v1010_v17 = vsel %vm2695_vm2, %v1005_v4, %v1009_v5  ;;  %v1046_v62 = vor.u32 %v1045_v45, %v1042_v44  ;;  %v1562_v4 = vor.u32 %v1561_v50, %v1558_v49  ;;  %v2190_v50 = vld [vmem:[%s2657_s4 + $0xcc] sm:$0x1] }
  0x7e   : > { %1310 = vmatmul.bf16.gmra.mxu2 %v2270_v2  ;;  %v2345_v2 = vld [vmem:[%s2657_s4 + $0x70] sm:$0xf]  ;;  %v1100_v31 = vunpack.c.l.b16 %v1010_v17  ;;  %v1565_v5 = vshll.u32 %v2394_v52, 16  ;;  %v1576_v9 = vor.u32 %v1575_v54, %v1572_v53  ;;  %v1073_v49 = vrot.slane %v1071_v36, 5 }
  0x7f   : > { %v2346_v13 = vor.u32 %v2528_v3, %v2345_v2  ;;  %v1540_v23 = vsel %vm2695_vm2, %v1535_v10, %v1539_v11  ;;  %v1548_v3 = vor.u32 %v1547_v48, %v1544_v47  ;;  %v1579_v10 = vshll.u32 %v2396_v58, 16 }
  0x80   : > { %v1617_v41 = vunpack.c.l.b16 %v1540_v23  ;;  %v1107_v55 = vpack.c.b16 %v1101_v32, %v1100_v31  ;;  %v1033_v11 = vrot.slane %v1032_v57, 4  ;;  %v1047_v15 = vrot.slane %v1046_v62, 4 }
  0x81   : > { %v1549_v19 = vrot.slane %v1548_v3, 4  ;;  %v1563_v20 = vrot.slane %v1562_v4, 4  ;;  %v1567_v21 = vrot.slane %v1565_v5, 5  ;;  %v1577_v22 = vrot.slane %v1576_v9, 4 }
  0x82   : > { %v1623_v2 = vpack.c.b16 %v1617_v41, %v1616_v40  ;;  %v1581_v23 = vrot.slane %v1579_v10, 5  ;;  %v1038_v28 = vsel %vm2695_vm2, %v1033_v11, %v1037_v14  ;;  %v1054_v32 = vshrl.u32 %v2187_v24, 16 }
  0x83   : > { %v1568_v31 = vsel %vm2695_vm2, %v1563_v20, %v1567_v21  ;;  %v1102_v38 = vunpack.c.l.b16 %v1038_v28  ;;  %v1059_v47 = vrot.slane %v1057_v34, 5  ;;  %v1070_v48 = vrot.slane %v1068_v35, 4 }
  0x84   : > { %v1582_v33 = vsel %vm2695_vm2, %v1577_v22, %v1581_v23  ;;  %v1619_v42 = vunpack.c.l.b16 %v1568_v31  ;;  %v1056_v44 = vrot.slane %v1054_v32, 4  ;;  %v1077_v59 = vshll.u32 %v2190_v50, 16 }
  0x85   : > { %v1074_v58 = vor.u32 %v1073_v49, %v1070_v48 }
  0x86   : > { %v1060_v57 = vor.u32 %v1059_v47, %v1056_v44 }
  0x87   : > { %v1075_v62 = vrot.slane %v1074_v58, 4 }
  0x88   : > { %v1061_v60 = vrot.slane %v1060_v57, 4 }
  0x8b   : > { %1170 = vmatmul.bf16.vlgmr.msra.gmra.mxu1 %v1106_v63  ;;  %1686 = vmatmul.bf16.vlgmr.msra.gmra.mxu0 %v1622_v0  ;;  %v1049_v63 = vshll.u32 %v2186_v43, 16  ;;  %v1551_v0 = vshll.u32 %v2392_v46, 16  ;;  %v1620_v43 = vunpack.c.l.b16 %v1582_v33  ;;  %v2188_v46 = vld [vmem:[%s2657_s4 + $0xc4] sm:$0x1] }
  0x8c   : > { %v1063_v53 = vshll.u32 %v2188_v46, 16 }
  0x8d   : > { %1450 = vmatmul.bf16.gmra.mxu3 %v2346_v13  ;;  %v1051_v16 = vrot.slane %v1049_v63, 5  ;;  %v1553_v17 = vrot.slane %v1551_v0, 5  ;;  %v1079_v63 = vrot.slane %v1077_v59, 5 }
  0x8e   : > { %1315 = vmatmul.bf16.gmra.mxu2 %v2274_v1  ;;  %v2398_v1 = vld [vmem:[%s2657_s4 + $0x44] sm:$0x1]  ;;  %v1065_v61 = vrot.slane %v1063_v53, 5  ;;  %s2449_s4 = sshll.u32 %s3062_s13, 5 }
  0x8f   : > { %v1593_v13 = vshll.u32 %v2398_v1, 16  ;;  %v1052_v29 = vsel %vm2695_vm2, %v1047_v15, %v1051_v16  ;;  %v1554_v30 = vsel %vm2695_vm2, %v1549_v19, %v1553_v17  ;;  %v1080_v4 = vsel %vm2695_vm2, %v1075_v62, %v1079_v63  ;;  %s3031_s19 = scalar_lea.vmem %s3057_s2, %s2449_s4 }
  0x90   : > { %v1103_v40 = vunpack.c.l.b16 %v1052_v29  ;;  %v1618_v41 = vunpack.c.l.b16 %v1554_v30  ;;  %v1066_v3 = vsel %vm2695_vm2, %v1061_v60, %v1065_v61  ;;  %v1105_v7 = vunpack.c.l.b16 %v1080_v4 }
  0x91   : > { %v1595_v26 = vrot.slane %v1593_v13, 5 }
  0x92   : > { %v1108_v51 = vpack.c.b16 %v1103_v40, %v1102_v38  ;;  %v1624_v52 = vpack.c.b16 %v1619_v42, %v1618_v41 }
  0x93   : > { %v1596_v37 = vsel %vm2695_vm2, %v1591_v25, %v1595_v26 }
  0x94   : > { %v1621_v45 = vunpack.c.l.b16 %v1596_v37 }
  0x96   : > { %v1625_v56 = vpack.c.b16 %v1621_v45, %v1620_v43 }
  0x9b   : > { %1175 = vmatmul.bf16.gmra.mxu1 %v1107_v55  ;;  %1691 = vmatmul.bf16.gmra.mxu0 %v1623_v2 }
  0x9d   : > { %1455 = vmatmul.bf16.gmra.mxu3 %v2350_v18 }
  0x9e   : > { %1320 = vmatmul.bf16.gmra.mxu2 %v2278_v6  ;;  %v1104_v6 = vunpack.c.l.b16 %v1066_v3 }
  0xa0   : > { %v1109_v8 = vpack.c.b16 %v1105_v7, %v1104_v6 }
  0xa8   : > { %v323_v54 = vpop.f32.mrf.mxu1  ;;  %v313_v55 = vpop.f32.mrf.mxu0 }
  0xab   : > { %1180 = vmatmul.bf16.gmra.mxu1 %v1108_v51  ;;  %1696 = vmatmul.bf16.gmra.mxu0 %v1624_v52 }
  0xae   : > { %1701 = vmatmul.bf16.vlgmr.msra.gmra.mxu2 %v1625_v56 }
  0xb0   : > { %v325_v1 = vpop.f32.mrf.mxu1  ;;  %v315_v2 = vpop.f32.mrf.mxu0 }
  0xb1   : > { %v655_v0 = vpop.f32.mrf.mxu2  ;;  %v790_v5 = vpop.f32.mrf.mxu3 }
  0xb8   : > { %v328_v10 = vpop.f32.mrf.mxu1  ;;  %v318_v11 = vpop.f32.mrf.mxu0 }
  0xb9   : > { %v657_v9 = vpop.f32.mrf.mxu2  ;;  %v3002_v12 = vpop.f32.mrf.mxu3 }
  0xbb   : > { %1185 = vmatmul.bf16.gmra.mxu1 %v1109_v8 }
  0xc0   : > { %v330_v14 = vpop.f32.mrf.mxu1  ;;  %v320_v15 = vpop.f32.mrf.mxu0 }
  0xc1   : > { %v660_v13 = vpop.f32.mrf.mxu2  ;;  %v795_v16 = vpop.f32.mrf.mxu3 }
  0xc8   : > { %v414_v18 = vpop.f32.mrf.mxu1  ;;  %v925_v19 = vpop.f32.mrf.mxu0 }
  0xc9   : > { %v662_v17 = vpop.f32.mrf.mxu2  ;;  %v415_v20 = vadd.f32 %v414_v18, %v313_v55  ;;  %v3004_v21 = vpop.f32.mrf.mxu3 }
  0xcb   : > { %v675_v39 = vadd.f32 %v655_v0, %v415_v20 }
  0xcd   : > { %v810_v22 = vadd.f32 %v790_v5, %v675_v39 }
  0xcf   : > { %v945_v23 = vadd.f32 %v925_v19, %v810_v22 }
  0xd0   : > { %v416_v25 = vpop.f32.mrf.mxu1  ;;  %v927_v26 = vpop.f32.mrf.mxu0 }
  0xd1   : > { %v665_v24 = vpop.f32.mrf.mxu2  ;;  %v417_v27 = vadd.f32 %v416_v25, %v315_v2  ;;  %v800_v29 = vpop.f32.mrf.mxu3 }
  0xd3   : > { %v676_v28 = vadd.f32 %v657_v9, %v417_v27 }
  0xd8   : > { %v419_v31 = vpop.f32.mrf.mxu1  ;;  %v930_v32 = vpop.f32.mrf.mxu0 }
  0xd9   : > { %v667_v30 = vpop.f32.mrf.mxu2  ;;  %v420_v33 = vadd.f32 %v419_v31, %v318_v11  ;;  %v3006_v38 = vpop.f32.mrf.mxu3  ;;  %v811_v11 = vadd.f32 %v3002_v12, %v676_v28 }
  0xdb   : > { %v677_v34 = vadd.f32 %v660_v13, %v420_v33 }
  0xdd   : > { %v812_v35 = vadd.f32 %v795_v16, %v677_v34 }
  0xdf   : > { %v947_v36 = vadd.f32 %v930_v32, %v812_v35 }
  0xe0   : > { %v421_v40 = vpop.f32.mrf.mxu1  ;;  %v932_v41 = vpop.f32.mrf.mxu0 }
  0xe1   : > { %v670_v37 = vpop.f32.mrf.mxu2  ;;  %v422_v42 = vadd.f32 %v421_v40, %v320_v15  ;;  %v3008_v48 = vpop.f32.mrf.mxu3 }
  0xe3   : > { %v678_v43 = vadd.f32 %v662_v17, %v422_v42 }
  0xe8   : > { %v424_v45 = vpop.f32.mrf.mxu1  ;;  %v935_v46 = vpop.f32.mrf.mxu0 }
  0xe9   : > { %v672_v44 = vpop.f32.mrf.mxu2  ;;  %v425_v47 = vadd.f32 %v424_v45, %v323_v54  ;;  %v3016_v58 = vpop.f32.mrf.mxu3 }
  0xeb   : > { %v679_v49 = vadd.f32 %v665_v24, %v425_v47 }
  0xed   : > { %v814_v50 = vadd.f32 %v800_v29, %v679_v49 }
  0xef   : > { %v3010_v51 = vadd.f32 %v935_v46, %v814_v50 }
  0xf0   : > { %v426_v53 = vpop.f32.mrf.mxu1  ;;  %v3012_v55 = vpop.f32.mrf.mxu0 }
  0xf1   : > { %v1306_v52 = vpop.f32.mrf.mxu2  ;;  %v427_v56 = vadd.f32 %v426_v53, %v325_v1  ;;  %v1441_v63 = vpop.f32.mrf.mxu3 }
  0xf3   : > { %v3014_v57 = vadd.f32 %v667_v30, %v427_v56  ;;  %v813_v30 = vadd.f32 %v3004_v21, %v678_v43 }
  0xf8   : > { %v429_v60 = vpop.f32.mrf.mxu1  ;;  %v3018_v61 = vpop.f32.mrf.mxu0 }
  0xf9   : > { %v1308_v59 = vpop.f32.mrf.mxu2  ;;  %v430_v54 = vadd.f32 %v429_v60, %v328_v10  ;;  %v1443_v1 = vpop.f32.mrf.mxu3  ;;  %v946_v10 = vadd.f32 %v927_v26, %v811_v11 }
  0xfb   : > { %v3020_v62 = vadd.f32 %v670_v37, %v430_v54  ;;  %v948_v37 = vadd.f32 %v932_v41, %v813_v30 }
 0x100   : > { %v431_v2 = vpop.f32.mrf.mxu1  ;;  %v3022_v3 = vpop.f32.mrf.mxu0 }
 0x101   : > { %v1311_v0 = vpop.f32.mrf.mxu2  ;;  %v432_v4 = vadd.f32 %v431_v2, %v330_v14  ;;  %v1446_v19 = vpop.f32.mrf.mxu3 }
 0x103   : > { %v3024_v5 = vadd.f32 %v672_v44, %v432_v4 }
 0x108   : > { %v1171_v6 = vpop.f32.mrf.mxu1  ;;  %v1687_v7 = vpop.f32.mrf.mxu0 }
 0x109   : > { %v1191_v8 = vadd.f32 %v1171_v6, %v945_v23  ;;  %v1313_v9 = vpop.f32.mrf.mxu2  ;;  %v1448_v33 = vpop.f32.mrf.mxu3 }
 0x10b   : > { %v1326_v13 = vadd.f32 %v1306_v52, %v1191_v8 }
 0x10d   : > { %v1461_v15 = vadd.f32 %v1441_v63, %v1326_v13  ;;  %v815_v63 = vadd.f32 %v3006_v38, %v3014_v57 }
 0x10f   : > { %v1707_v39 = vadd.f32 %v1687_v7, %v1461_v15 }
 0x110   : > { %v1173_v16 = vpop.f32.mrf.mxu1  ;;  %v1689_v17 = vpop.f32.mrf.mxu0 }
 0x111   : > { %v1192_v18 = vadd.f32 %v1173_v16, %v946_v10  ;;  %v1316_v14 = vpop.f32.mrf.mxu2  ;;  %v1744_v25 = vmul.f32 %v1707_v39, %v1707_v39 }
 0x113   : > { %v1327_v20 = vadd.f32 %v1308_v59, %v1192_v18 }
 0x115   : > { %v1462_v22 = vadd.f32 %v1443_v1, %v1327_v20  ;;  %v950_v1 = vadd.f32 %v3012_v55, %v815_v63 }
 0x117   : > { %v1708_v24 = vadd.f32 %v1689_v17, %v1462_v22 }
 0x118   : > { %v1176_v12 = vpop.f32.mrf.mxu1  ;;  %v1692_v23 = vpop.f32.mrf.mxu0 }
 0x119   : > { %v2549_v26 = vpack.c.bf16 %v1708_v24, %v1707_v39  ;;  %v1731_v27 = vadd.f32 %v1708_v24, %v1707_v39  ;;  %v1745_v28 = vmul.f32 %v1708_v24, %v1708_v24  ;;  %v1193_v29 = vadd.f32 %v1176_v12, %v947_v36  ;;  %v1318_v35 = vpop.f32.mrf.mxu2  ;;  %v1451_v36 = vpop.f32.mrf.mxu3 }
 0x11a   : > { %v817_v24 = vadd.f32 %v3016_v58, %v3024_v5 }
 0x11b   : > { %2550 = vst [vmem:[%s3031_s19] sm:$0xff] %v2549_v26   ;;  %v1752_v31 = vadd.f32 %v1745_v28, %v1744_v25  ;;  %v1328_v32 = vadd.f32 %v1311_v0, %v1193_v29 }
 0x11d   : > { %v1463_v34 = vadd.f32 %v1446_v19, %v1328_v32 }
 0x11f   : > { %v1709_v40 = vadd.f32 %v1692_v23, %v1463_v34  ;;  %v952_v23 = vadd.f32 %v3022_v3, %v817_v24 }
 0x120   : > { %v1178_v42 = vpop.f32.mrf.mxu1  ;;  %v1694_v44 = vpop.f32.mrf.mxu0 }
 0x121   : > { %v1732_v45 = vadd.f32 %v1731_v27, %v1709_v40  ;;  %v1746_v46 = vmul.f32 %v1709_v40, %v1709_v40  ;;  %v1194_v47 = vadd.f32 %v1178_v42, %v948_v37  ;;  %v1321_v21 = vpop.f32.mrf.mxu2  ;;  %v1453_v7 = vpop.f32.mrf.mxu3 }
 0x123   : > { %v1753_v49 = vadd.f32 %v1752_v31, %v1746_v46  ;;  %v1329_v50 = vadd.f32 %v1313_v9, %v1194_v47 }
 0x125   : > { %v1464_v52 = vadd.f32 %v1448_v33, %v1329_v50 }
 0x127   : > { %v1710_v53 = vadd.f32 %v1694_v44, %v1464_v52 }
 0x128   : > { %v1181_v43 = vpop.f32.mrf.mxu1  ;;  %v1697_v41 = vpop.f32.mrf.mxu0 }
 0x129   : > { %v2554_v56 = vpack.c.bf16 %v1710_v53, %v1709_v40  ;;  %v1733_v59 = vadd.f32 %v1732_v45, %v1710_v53  ;;  %v1747_v60 = vmul.f32 %v1710_v53, %v1710_v53  ;;  %v1195_v54 = vadd.f32 %v1181_v43, %v3010_v51  ;;  %v1323_v10 = vpop.f32.mrf.mxu2  ;;  %v1456_v22 = vpop.f32.mrf.mxu3 }
 0x12a   : > { %v816_v51 = vadd.f32 %v3008_v48, %v3020_v62 }
 0x12b   : > { %2566 = vst [vmem:[%s3031_s19 + $0x8] sm:$0xff] %v2554_v56   ;;  %v1754_v0 = vadd.f32 %v1753_v49, %v1747_v60  ;;  %v1330_v2 = vadd.f32 %v1316_v14, %v1195_v54 }
 0x12c   : > { %v951_v17 = vadd.f32 %v3018_v61, %v816_v51 }
 0x12d   : > { %v1465_v4 = vadd.f32 %v1451_v36, %v1330_v2 }
 0x12f   : > { %v1711_v6 = vadd.f32 %v1697_v41, %v1465_v4 }
 0x130   : > { %v1183_v8 = vpop.f32.mrf.mxu1  ;;  %v1699_v38 = vpop.f32.mrf.mxu0 }
 0x131   : > { %v1734_v9 = vadd.f32 %v1733_v59, %v1711_v6  ;;  %v1748_v11 = vmul.f32 %v1711_v6, %v1711_v6  ;;  %v1196_v13 = vadd.f32 %v1183_v8, %v950_v1  ;;  %v1702_v48 = vpop.f32.mrf.mxu2  ;;  %v1458_v32 = vpop.f32.mrf.mxu3 }
 0x133   : > { %v1755_v15 = vadd.f32 %v1754_v0, %v1748_v11  ;;  %v1331_v16 = vadd.f32 %v1318_v35, %v1196_v13 }
 0x135   : > { %v1466_v57 = vadd.f32 %v1453_v7, %v1331_v16 }
 0x137   : > { %v1712_v18 = vadd.f32 %v1699_v38, %v1466_v57 }
 0x138   : > { %v1186_v19 = vpop.f32.mrf.mxu1 }
 0x139   : > { %v2559_v55 = vpack.c.bf16 %v1712_v18, %v1711_v6  ;;  %v1735_v20 = vadd.f32 %v1734_v9, %v1712_v18  ;;  %v1749_v39 = vmul.f32 %v1712_v18, %v1712_v18  ;;  %v1197_v14 = vadd.f32 %v1186_v19, %v951_v17  ;;  %v1704_v34 = vpop.f32.mrf.mxu2 }
 0x13b   : > { %2567 = vst [vmem:[%s3031_s19 + $0x10] sm:$0xff] %v2559_v55   ;;  %v1756_v25 = vadd.f32 %v1755_v15, %v1749_v39  ;;  %v1332_v12 = vadd.f32 %v1321_v21, %v1197_v14 }
 0x13d   : > { %v1467_v62 = vadd.f32 %v1456_v22, %v1332_v12 }
 0x13f   : > { %v1713_v26 = vadd.f32 %v1702_v48, %v1467_v62 }
 0x140   : > { %v1188_v61 = vpop.f32.mrf.mxu1 }
 0x141   : > { %v1736_v27 = vadd.f32 %v1735_v20, %v1713_v26  ;;  %v1750_v28 = vmul.f32 %v1713_v26, %v1713_v26  ;;  %v1198_v29 = vadd.f32 %v1188_v61, %v952_v23 }
 0x143   : > { %v1757_v30 = vadd.f32 %v1756_v25, %v1750_v28  ;;  %v1333_v31 = vadd.f32 %v1323_v10, %v1198_v29 }
 0x145   : > { %v1468_v33 = vadd.f32 %v1458_v32, %v1333_v31 }
 0x147   : > { %v1714_v58 = vadd.f32 %v1704_v34, %v1468_v33 }
 0x149   : > { %v2564_v5 = vpack.c.bf16 %v1714_v58, %v1713_v26  ;;  %v1737_v35 = vadd.f32 %v1736_v27, %v1714_v58  ;;  %v1751_v37 = vmul.f32 %v1714_v58, %v1714_v58 }
 0x14b   : > { %2568 = vst [vmem:[%s3031_s19 + $0x18] sm:$0xff] %v2564_v5   ;;  %v1738_v40 = vrot.slane %v1737_v35, 4  ;;  %v1758_v42 = vadd.f32 %v1757_v30, %v1751_v37 }
 0x14d   : > { %v1739_v44 = vadd.f32 %v1738_v40, %v1737_v35  ;;  %v1759_v3 = vrot.slane %v1758_v42, 4 }
 0x14f   : > { %v1740_v45 = vrot.slane %v1739_v44, 2  ;;  %v1760_v46 = vadd.f32 %v1759_v3, %v1758_v42 }
 0x151   : > { %v1741_v47 = vadd.f32 %v1740_v45, %v1739_v44  ;;  %v1761_v49 = vrot.slane %v1760_v46, 2 }
 0x153   : > { %v1742_v50 = vrot.slane %v1741_v47, 1  ;;  %v1762_v52 = vadd.f32 %v1761_v49, %v1760_v46 }
 0x155   : > { %v1763_v36 = vrot.slane %v1762_v52, 1  ;;  %v1743_v53 = vadd.f32 %v1742_v50, %v1741_v47 }
 0x157   : > { %v1764_v21 = vadd.f32 %v1763_v36, %v1762_v52 }
 0x159   : > { %v1766_v43 = vsel %vm1765_vm3, %v1743_v53, %v1764_v21 }
 0x15a   : > { %1767 = vst [vmem:[%s181_s23] sm:$0x3] %v1766_v43 }
 0x15b PF: > { %s14_s12 = sadd.s32 1, %s2600_s12  }
 0x15c   : > { %p11_p4 = scmp.ge.s32.totalorder %s14_s12, 4  }
 0x15e   :  { %13 = sbr.rel (!%p11_p4) target bundleno = 1 (0x1), region = 83 }

// kernel: _lambda_.7
= control target key start
LH: loop header
LB: loop body
LE: loop exit
PB: predicated region body
PF: predicated region fallthrough
CT: control target
= control target key end

     0   :  { %s465_s15 = smov 0   ;;  %s495_s0 = inlined_call_operand.vmem [shape: bf16[128,128], index: 0, kind: input, shape index: {}]   ;;  %s496_s1 = inlined_call_operand.vmem [shape: f32[1,128], index: 1, kind: input, shape index: {}]   ;;  %s497_s2 = inlined_call_operand.vmem [shape: f32[1,128], index: 2, kind: input, shape index: {}]   ;;  %s498_s3 = inlined_call_operand.vmem [shape: bf16[128,128], index: 3, kind: input, shape index: {}]   ;;  %s499_s4 = inlined_call_operand.vmem [shape: f32[128,128], index: 4, kind: output, shape index: {}]  }
   0x1 LB: > { %s371_s16 = sadd.s32 4294967295, %s438_s15   ;;  %p375_p0 = scmp.ge.s32.totalorder %s438_s15, 1  ;;  %s438_s15 = sphi %s465_s15, %s14_s15  }
   0x2   : > { %p174_p1 = scmp.lt.s32.totalorder %s438_s15, 3 }
   0x4   : > { %p175_p2 = pnand %p375_p0, %p174_p1 }
   0x5   : > { %s376_s17 = sshll.u32 (!%p175_p2), %s371_s16, 3 }
   0x6   : > { %178 = sbr.rel (%p175_p2) target bundleno = 33 (0x21), region = 36  ;;  %p206_p3 = scmp.lt.s32.totalorder (!%p175_p2), %s376_s17, 15 }
   0xb   : > { %s501_s17 = smov (!%p206_p3, %s376_s17), 15  ;;  %v430_v0 = vld [vmem:[%s496_s1] ss:$0 sm:$0xff] }
   0xc   : > { %s377_s18 = sshll.u32 %s501_s17, 2  ;;  %v431_v1 = vld [vmem:[%s497_s2] ss:$0 sm:$0xff]  ;;  %s381_s29 = sshll.u32 %s501_s17, 3 }
   0xd   : > { %s209_s21 = scalar_lea.vmem %s495_s0, %s377_s18  ;;  %s215_s24 = scalar_lea.vmem %s498_s3, %s377_s18 }
   0xe   : > { %v385_v2 = vld [vmem:[%s209_s21] sm:$0xff]   ;;  %v416_v4 = vld [vmem:[%s209_s21 + $0x8] sm:$0xff]   ;;  %v417_v10 = vld [vmem:[%s209_s21 + $0x10] sm:$0xff]   ;;  %s221_s6 = scalar_lea.vmem %s499_s4, %s381_s29 }
   0xf   : > { %v401_v3 = vld [vmem:[%s215_s24] sm:$0xff]   ;;  %v386_v5 = vunpack.c.l.bf16 %v385_v2  ;;  %v387_v7 = vunpack.c.h.bf16 %v385_v2  ;;  %v419_v9 = vld [vmem:[%s215_s24 + $0x8] sm:$0xff]   ;;  %v420_v11 = vld [vmem:[%s215_s24 + $0x10] sm:$0xff]   ;;  %v390_v12 = vunpack.c.l.bf16 %v416_v4  ;;  %v391_v14 = vunpack.c.h.bf16 %v416_v4 }
  0x10   : > { %v402_v6 = vunpack.c.l.bf16 %v401_v3  ;;  %v403_v8 = vunpack.c.h.bf16 %v401_v3  ;;  %v406_v13 = vunpack.c.l.bf16 %v419_v9  ;;  %v407_v15 = vunpack.c.h.bf16 %v419_v9  ;;  %v418_v16 = vld [vmem:[%s209_s21 + $0x18] sm:$0xff]  }
  0x11   : > { %v243_v17 = vmul.f32 %v430_v0, %v386_v5  ;;  %v244_v18 = vmul.f32 %v430_v0, %v387_v7  ;;  %v394_v19 = vunpack.c.l.bf16 %v417_v10  ;;  %v410_v20 = vunpack.c.l.bf16 %v420_v11  ;;  %v421_v21 = vld [vmem:[%s215_s24 + $0x18] sm:$0xff]  }
  0x12   : > { %v245_v22 = vmul.f32 %v430_v0, %v390_v12  ;;  %v246_v23 = vmul.f32 %v430_v0, %v391_v14  ;;  %v395_v24 = vunpack.c.h.bf16 %v417_v10  ;;  %v411_v25 = vunpack.c.h.bf16 %v420_v11 }
  0x13   : > { %v255_v26 = vadd.f32 %v431_v1, %v243_v17  ;;  %v256_v27 = vadd.f32 %v431_v1, %v244_v18  ;;  %v247_v28 = vmul.f32 %v430_v0, %v394_v19  ;;  %v398_v29 = vunpack.c.l.bf16 %v418_v16 }
  0x14   : > { %v257_v30 = vadd.f32 %v431_v1, %v245_v22  ;;  %v258_v31 = vadd.f32 %v431_v1, %v246_v23  ;;  %v248_v32 = vmul.f32 %v430_v0, %v395_v24  ;;  %v414_v33 = vunpack.c.l.bf16 %v421_v21 }
  0x15   : > { %v279_v34 = vadd.f32 %v402_v6, %v255_v26  ;;  %v280_v35 = vadd.f32 %v403_v8, %v256_v27  ;;  %v259_v36 = vadd.f32 %v431_v1, %v247_v28  ;;  %v249_v37 = vmul.f32 %v430_v0, %v398_v29 }
  0x16   : > { %v281_v38 = vadd.f32 %v406_v13, %v257_v30  ;;  %v282_v39 = vadd.f32 %v407_v15, %v258_v31  ;;  %v260_v40 = vadd.f32 %v431_v1, %v248_v32  ;;  %v399_v41 = vunpack.c.h.bf16 %v418_v16 }
  0x17   : > { %v287_v42 = vmax.f32 %v279_v34, 0.0  ;;  %v288_v43 = vmax.f32 %v280_v35, 0.0  ;;  %v283_v44 = vadd.f32 %v410_v20, %v259_v36  ;;  %v261_v45 = vadd.f32 %v431_v1, %v249_v37 }
  0x18   : > { %v289_v46 = vmax.f32 %v281_v38, 0.0  ;;  %v290_v47 = vmax.f32 %v282_v39, 0.0  ;;  %v284_v48 = vadd.f32 %v411_v25, %v260_v40  ;;  %v250_v49 = vmul.f32 %v430_v0, %v399_v41 }
  0x19   : > { %295 = vst [vmem:[%s221_s6] sm:$0xff] %v287_v42  ;;  %v291_v50 = vmax.f32 %v283_v44, 0.0  ;;  %v285_v51 = vadd.f32 %v414_v33, %v261_v45  ;;  %v415_v52 = vunpack.c.h.bf16 %v421_v21 }
  0x1a   : > { %296 = vst [vmem:[%s221_s6 + $0x8] sm:$0xff] %v288_v43  ;;  %v292_v53 = vmax.f32 %v284_v48, 0.0  ;;  %v262_v54 = vadd.f32 %v431_v1, %v250_v49 }
  0x1b   : > { %297 = vst [vmem:[%s221_s6 + $0x10] sm:$0xff] %v289_v46  ;;  %v293_v55 = vmax.f32 %v285_v51, 0.0 }
  0x1c   : > { %298 = vst [vmem:[%s221_s6 + $0x18] sm:$0xff] %v290_v47  ;;  %v286_v56 = vadd.f32 %v415_v52, %v262_v54 }
  0x1d   : > { %299 = vst [vmem:[%s221_s6 + $0x20] sm:$0xff] %v291_v50 }
  0x1e   : > { %300 = vst [vmem:[%s221_s6 + $0x28] sm:$0xff] %v292_v53  ;;  %v294_v57 = vmax.f32 %v286_v56, 0.0 }
  0x1f   : > { %301 = vst [vmem:[%s221_s6 + $0x30] sm:$0xff] %v293_v55 }
  0x20   : > { %302 = vst [vmem:[%s221_s6 + $0x38] sm:$0xff] %v294_v57 }
  0x21 PF: > { %s14_s15 = sadd.s32 1, %s438_s15  }
  0x22   : > { %p11_p4 = scmp.ge.s32.totalorder %s14_s15, 4  }
  0x24   :  { %13 = sbr.rel (!%p11_p4) target bundleno = 1 (0x1), region = 69 }

</bundles_post_ra>
